<compile_context>
chip_gen: v7x
topology: tpu7x:2x2x1
jax: 0.10.0
libtpu: 0.0.40
codegen_flags: <defaults>
</compile_context>

<pallas_src>
import jax
import jax.numpy as jnp
from jax import lax
from jax.experimental import pallas as pl
from jax.experimental.pallas import tpu as pltpu


LANE = 128        # feature dims padded to the 128-lane vreg width
TILE_DST = 128    # destination-node tile (output rows, "parallel" grid axis)
TILE_SRC = 256    # source-node tile ("arbitrary" reduction grid axis)
PROJ_TILE = 256   # row tile of the fc_pool projection matmul
SRC_CHUNK = 16    # src rows transposed + max-accumulated per inner loop step
NODE_PAD = 256    # node count padded to a multiple of every row tile above

assert TILE_SRC % SRC_CHUNK == 0
assert NODE_PAD % TILE_DST == 0 and NODE_PAD % TILE_SRC == 0
assert NODE_PAD % PROJ_TILE == 0


def _round_up(x, m):
    return (x + m - 1) // m * m


def _pad2(a, rows, cols):
    return jnp.pad(a, ((0, rows - a.shape[0]), (0, cols - a.shape[1])))


# ---------------------------------------------------------------------------
# Kernel 1: hp = relu(x @ Wp + bp)      (fc_pool), 256-row M tiles, bf16 out.
# ---------------------------------------------------------------------------
def pool_proj_kernel(x_ref, wp_ref, bp_ref, hp_ref):
    h = jnp.dot(x_ref[...], wp_ref[...], preferred_element_type=jnp.float32)
    hp_ref[...] = jnp.maximum(h + bp_ref[...], 0.0).astype(hp_ref.dtype)


# ---------------------------------------------------------------------------
# Kernel 2: blocked max-pool over in-neighbors + fused [self + neigh] projection
#           + bias + L2 normalize + relu.
#   grid = (dst tiles [parallel], src tiles [arbitrary])
#   adj_t[src, dst] = adj[dst, src]  (src on the sublane/tileable axis)
#   cnt[i, j] > 0  iff the (dst tile i, src tile j) adjacency block has edges.
# ---------------------------------------------------------------------------
def sage_agg_kernel(cnt_ref, adjt_ref, hp_ref, x_ref, ws_ref, wn_ref, b_ref,
                    out_ref, acc_ref):
    i = pl.program_id(0)          # dst tile
    j = pl.program_id(1)          # src tile (reduction axis)

    @pl.when(j == 0)
    def _init():
        acc_ref[...] = jnp.zeros_like(acc_ref)

    @pl.when(cnt_ref[i, j] > 0)
    def _accumulate():
        def chunk_body(c, acc):
            base = pl.multiple_of(c * SRC_CHUNK, SRC_CHUNK)
            # [SRC_CHUNK, TILE_DST] mask rows; transpose through f32 (aligned
            # 2-D transpose), then back to bf16 for the VALU max.
            m = adjt_ref[pl.ds(base, SRC_CHUNK), :].astype(jnp.float32)
            m_t = m.T.astype(jnp.bfloat16)              # [TILE_DST, SRC_CHUNK]
            hp_c = hp_ref[pl.ds(base, SRC_CHUNK), :]    # [SRC_CHUNK, F] bf16
            for k in range(SRC_CHUNK):                  # static unroll
                contrib = m_t[:, k:k + 1] * hp_c[k:k + 1, :]   # [TILE_DST, F]
                acc = jnp.maximum(acc, contrib)
            return acc

        acc = lax.fori_loop(0, TILE_SRC // SRC_CHUNK, chunk_body, acc_ref[...])
        acc_ref[...] = acc

    @pl.when(j == pl.num_programs(1) - 1)
    def _finalize():
        # fused self + neighbor projection: two bf16 MXU dots, f32 accumulate
        h = jnp.dot(x_ref[...], ws_ref[...], preferred_element_type=jnp.float32)
        h = h + jnp.dot(acc_ref[...], wn_ref[...],
                        preferred_element_type=jnp.float32)
        h = h + b_ref[...]
        # F.normalize(p=2, dim=1, eps=1e-12) == h * rsqrt(max(sum(h^2), eps^2))
        sumsq = jnp.sum(h * h, axis=1, keepdims=True)
        h = h * lax.rsqrt(jnp.maximum(sumsq, jnp.float32(1e-24)))
        out_ref[...] = jnp.maximum(h, 0.0).astype(out_ref.dtype)


# ---------------------------------------------------------------------------
# One SAGEConv('pool') layer + F.normalize + relu on padded tensors.
# ---------------------------------------------------------------------------
def _sage_pool_layer(adj_t, cnt, x, wp, bp, ws, wn, b, out_dtype):
    np_, fin = x.shape
    fout = ws.shape[1]
    n_dst = np_ // TILE_DST
    n_src = np_ // TILE_SRC

    hp = pl.pallas_call(
        pool_proj_kernel,
        out_shape=jax.ShapeDtypeStruct((np_, fin), jnp.bfloat16),
        grid=(np_ // PROJ_TILE,),
        in_specs=[
            pl.BlockSpec((PROJ_TILE, fin), lambda i: (i, 0)),
            pl.BlockSpec((fin, fin), lambda i: (0, 0)),
            pl.BlockSpec((1, fin), lambda i: (0, 0)),
        ],
        out_specs=pl.BlockSpec((PROJ_TILE, fin), lambda i: (i, 0)),
        compiler_params=pltpu.CompilerParams(dimension_semantics=("parallel",)),
    )(x, wp, bp)

    out = pl.pallas_call(
        sage_agg_kernel,
        out_shape=jax.ShapeDtypeStruct((np_, fout), out_dtype),
        grid_spec=pltpu.PrefetchScalarGridSpec(
            num_scalar_prefetch=1,
            grid=(n_dst, n_src),
            in_specs=[
                pl.BlockSpec((TILE_SRC, TILE_DST), lambda i, j, _: (j, i)),  # adj_t
                pl.BlockSpec((TILE_SRC, fin), lambda i, j, _: (j, 0)),       # h_pool
                pl.BlockSpec((TILE_DST, fin), lambda i, j, _: (i, 0)),       # x (self)
                pl.BlockSpec((fin, fout), lambda i, j, _: (0, 0)),           # Ws
                pl.BlockSpec((fin, fout), lambda i, j, _: (0, 0)),           # Wn
                pl.BlockSpec((1, fout), lambda i, j, _: (0, 0)),             # bias
            ],
            out_specs=pl.BlockSpec((TILE_DST, fout), lambda i, j, _: (i, 0)),
            scratch_shapes=[pltpu.VMEM((TILE_DST, fin), jnp.bfloat16)],
        ),
        compiler_params=pltpu.CompilerParams(
            dimension_semantics=("parallel", "arbitrary")),
    )(cnt, adj_t, hp, x, ws, wn, b)
    return out


def _block_counts(adj_t, n_dst, n_src):
    """cnt[i, j] = 1 iff the (dst tile i, src tile j) adjacency block has edges."""
    blk = adj_t.reshape(n_src, TILE_SRC, n_dst, TILE_DST)
    nz = jnp.any(blk != 0, axis=(1, 3))          # [n_src, n_dst]
    return nz.T.astype(jnp.int32)                # [n_dst, n_src]


# ---------------------------------------------------------------------------
# Full 2-layer forward (padding / packing done once, host side).
# ---------------------------------------------------------------------------
def sage_forward(adj, x, params):
    n, in_feats = x.shape
    out_feats = params["ws2"].shape[1]
    hid = params["ws1"].shape[1]

    np_ = _round_up(n, NODE_PAD)
    fin_p = _round_up(in_feats, LANE)
    hid_p = _round_up(hid, LANE)
    out_p = _round_up(out_feats, LANE)

    # adj_t[src, dst]; bf16 (values 0/1 exact) halves adj HBM/VMEM traffic.
    adj_t = _pad2(adj.T, np_, np_).astype(jnp.bfloat16)
    cnt = _block_counts(adj_t, np_ // TILE_DST, np_ // TILE_SRC)
    x_p = _pad2(x, np_, fin_p).astype(jnp.bfloat16)

    # layer 1 parameters (weights bf16 for the MXU, biases f32)
    wp1 = _pad2(params["wp1"], fin_p, fin_p).astype(jnp.bfloat16)
    bp1 = _pad2(params["bp1"], 1, fin_p).astype(jnp.float32)
    ws1 = _pad2(params["ws1"], fin_p, hid_p).astype(jnp.bfloat16)
    wn1 = _pad2(params["wn1"], fin_p, hid_p).astype(jnp.bfloat16)
    b1 = _pad2(params["b1"], 1, hid_p).astype(jnp.float32)

    # layer 2 parameters
    wp2 = _pad2(params["wp2"], hid_p, hid_p).astype(jnp.bfloat16)
    bp2 = _pad2(params["bp2"], 1, hid_p).astype(jnp.float32)
    ws2 = _pad2(params["ws2"], hid_p, out_p).astype(jnp.bfloat16)
    wn2 = _pad2(params["wn2"], hid_p, out_p).astype(jnp.bfloat16)
    b2 = _pad2(params["b2"], 1, out_p).astype(jnp.float32)

    # inter-layer activation stored bf16 (it is consumed as a bf16 MXU operand)
    h1 = _sage_pool_layer(adj_t, cnt, x_p, wp1, bp1, ws1, wn1, b1, jnp.bfloat16)
    h2 = _sage_pool_layer(adj_t, cnt, h1, wp2, bp2, ws2, wn2, b2, jnp.float32)
    return h2[:n, :out_feats]


def init_params(key, in_feats, hid_feats, out_feats):
    """Deterministic synthetic parameters (shapes follow dglnn.SAGEConv('pool'))."""
    ks = jax.random.split(key, 10)

    def lin(k, fan_in, fan_out, bound_fan=None):
        bound_fan = fan_in if bound_fan is None else bound_fan
        scale = 1.0 / jnp.sqrt(jnp.float32(bound_fan))
        return jax.random.uniform(k, (fan_in, fan_out), jnp.float32, -scale, scale)

    return {
        # layer 1: SAGEConv(in_feats -> hid_feats, 'pool')
        "wp1": lin(ks[0], in_feats, in_feats),                 # fc_pool weight
        "bp1": lin(ks[1], 1, in_feats, bound_fan=in_feats),    # fc_pool bias
        "ws1": lin(ks[2], in_feats, hid_feats),                # fc_self (no bias)
        "wn1": lin(ks[3], in_feats, hid_feats),                # fc_neigh (no bias)
        "b1": jnp.zeros((1, hid_feats), jnp.float32),          # SAGEConv bias
        # layer 2: SAGEConv(hid_feats -> out_feats, 'pool')
        "wp2": lin(ks[4], hid_feats, hid_feats),
        "bp2": lin(ks[5], 1, hid_feats, bound_fan=hid_feats),
        "ws2": lin(ks[6], hid_feats, out_feats),
        "wn2": lin(ks[7], hid_feats, out_feats),
        "b2": jnp.zeros((1, out_feats), jnp.float32),
    }


if __name__ == "__main__":
    N, IN_FEATS, HID_FEATS, OUT_FEATS = 16, 16, 32, 8

    key = jax.random.PRNGKey(0)
    k_adj, k_x, k_p = jax.random.split(key, 3)

    # random directed graph, dense adjacency adj[dst, src]
    adj = (jax.random.uniform(k_adj, (N, N)) < 0.3).astype(jnp.float32)
    x = jax.random.normal(k_x, (N, IN_FEATS), jnp.float32)
    params = init_params(k_p, IN_FEATS, HID_FEATS, OUT_FEATS)

    out = jax.jit(sage_forward)(adj, x, params)
    out = jax.block_until_ready(out)

    assert out.shape == (N, OUT_FEATS)
    assert bool(jnp.all(jnp.isfinite(out)))
    print("KERNEL_OK")
</pallas_src>

<mosaic_0001>
module attributes {stable_mosaic.version = 11 : i64} {
  func.func @pool_proj_kernel(%arg0: i32, %arg1: memref<256x128xbf16, #tpu.memory_space<vmem>>, %arg2: memref<128x128xbf16, #tpu.memory_space<vmem>>, %arg3: memref<1x128xf32, #tpu.memory_space<vmem>>, %arg4: memref<256x128xbf16, #tpu.memory_space<vmem>>) attributes {dimension_semantics = [#tpu.dimension_semantics<parallel>], iteration_bounds = array<i64: 1>, scalar_prefetch = 0 : i64, scratch_operands = 0 : i64, tpu.core_type = #tpu.core_type<tc>, window_params = [{transform_indices = @transform_0, window_bounds = array<i64: 256, 128>}, {pipeline_mode = #tpu.pipeline_mode<synchronous>, transform_indices = @transform_1, window_bounds = array<i64: 128, 128>}, {pipeline_mode = #tpu.pipeline_mode<synchronous>, transform_indices = @transform_2, window_bounds = array<i64: 1, 128>}, {transform_indices = @transform_3, window_bounds = array<i64: 256, 128>}]} {
    %c0 = arith.constant 0 : index
    %c0_0 = arith.constant 0 : index
    %0 = vector.load %arg1[%c0, %c0_0] : memref<256x128xbf16, #tpu.memory_space<vmem>>, vector<256x128xbf16>
    %c0_1 = arith.constant 0 : index
    %c0_2 = arith.constant 0 : index
    %1 = vector.load %arg2[%c0_1, %c0_2] : memref<128x128xbf16, #tpu.memory_space<vmem>>, vector<128x128xbf16>
    %cst = arith.constant dense<0.000000e+00> : vector<256x128xf32>
    %2 = tpu.matmul %0, %1, %cst {dimension_numbers = #tpu.dot_dimension_numbers<[1], [0], [0], [1], [0, 0, 1, 1], [], []>} : vector<256x128xbf16>, vector<128x128xbf16>, vector<256x128xf32> -> vector<256x128xf32>
    %c0_3 = arith.constant 0 : index
    %c0_4 = arith.constant 0 : index
    %3 = vector.load %arg3[%c0_3, %c0_4] : memref<1x128xf32, #tpu.memory_space<vmem>>, vector<1x128xf32>
    %4 = vector.broadcast %3 : vector<1x128xf32> to vector<256x128xf32>
    %5 = arith.addf %2, %4 : vector<256x128xf32>
    %cst_5 = arith.constant 0.000000e+00 : f32
    %6 = vector.broadcast %cst_5 : f32 to vector<256x128xf32>
    %7 = arith.maximumf %5, %6 : vector<256x128xf32>
    %8 = arith.truncf %7 : vector<256x128xf32> to vector<256x128xbf16>
    %c0_6 = arith.constant 0 : index
    %c0_7 = arith.constant 0 : index
    %9 = vector.load %arg4[%c0_6, %c0_7] : memref<256x128xbf16, #tpu.memory_space<vmem>>, vector<256x128xbf16>
    tpu.vector_store %arg4[%c0_6, %c0_7], %8 {strides = array<i32>} : memref<256x128xbf16, #tpu.memory_space<vmem>>, vector<256x128xbf16>,
    return
  }
  func.func @transform_0(%arg0: i32) -> (i32, i32) {
    %c0_i32 = arith.constant 0 : i32
    %c0_i32_0 = arith.constant 0 : i32
    return %arg0, %c0_i32 : i32, i32
  }
  func.func @transform_1(%arg0: i32) -> (i32, i32) {
    %c0_i32 = arith.constant 0 : i32
    %c0_i32_0 = arith.constant 0 : i32
    %c0_i32_1 = arith.constant 0 : i32
    return %c0_i32, %c0_i32_0 : i32, i32
  }
  func.func @transform_2(%arg0: i32) -> (i32, i32) {
    %c0_i32 = arith.constant 0 : i32
    %c0_i32_0 = arith.constant 0 : i32
    %c0_i32_1 = arith.constant 0 : i32
    return %c0_i32, %c0_i32_0 : i32, i32
  }
  func.func @transform_3(%arg0: i32) -> (i32, i32) {
    %c0_i32 = arith.constant 0 : i32
    %c0_i32_0 = arith.constant 0 : i32
    return %arg0, %c0_i32 : i32, i32
  }
}

module attributes {stable_mosaic.version = 11 : i64} {
  func.func @sage_agg_kernel(%arg0: i32, %arg1: i32, %arg2: memref<2x1xi32, #tpu.memory_space<smem>>, %arg3: memref<256x128xbf16, #tpu.memory_space<vmem>>, %arg4: memref<256x128xbf16, #tpu.memory_space<vmem>>, %arg5: memref<128x128xbf16, #tpu.memory_space<vmem>>, %arg6: memref<128x128xbf16, #tpu.memory_space<vmem>>, %arg7: memref<128x128xbf16, #tpu.memory_space<vmem>>, %arg8: memref<1x128xf32, #tpu.memory_space<vmem>>, %arg9: memref<128x128xbf16, #tpu.memory_space<vmem>>, %arg10: memref<128x128xbf16, #tpu.memory_space<vmem>>) attributes {dimension_semantics = [#tpu.dimension_semantics<parallel>, #tpu.dimension_semantics<arbitrary>], iteration_bounds = array<i64: 2, 1>, scalar_prefetch = 1 : i64, scratch_operands = 1 : i64, tpu.core_type = #tpu.core_type<tc>, window_params = [{transform_indices = @transform_0, window_bounds = array<i64: 256, 128>}, {transform_indices = @transform_1, window_bounds = array<i64: 256, 128>}, {transform_indices = @transform_2, window_bounds = array<i64: 128, 128>}, {pipeline_mode = #tpu.pipeline_mode<synchronous>, transform_indices = @transform_3, window_bounds = array<i64: 128, 128>}, {pipeline_mode = #tpu.pipeline_mode<synchronous>, transform_indices = @transform_4, window_bounds = array<i64: 128, 128>}, {pipeline_mode = #tpu.pipeline_mode<synchronous>, transform_indices = @transform_5, window_bounds = array<i64: 1, 128>}, {transform_indices = @transform_6, window_bounds = array<i64: 128, 128>}]} {
    %c0_i32 = arith.constant 0 : i32
    %0 = arith.cmpi eq, %arg1, %c0_i32 : i32
    %1 = arith.extui %0 : i1 to i32
    %c0_i32_0 = arith.constant 0 : i32
    %2 = arith.cmpi ne, %1, %c0_i32_0 : i32
    scf.if %2 {
      %cst = arith.constant 0.000000e+00 : bf16
      %12 = vector.broadcast %cst : bf16 to vector<128x128xbf16>
      %c0 = arith.constant 0 : index
      %c0_5 = arith.constant 0 : index
      %13 = vector.load %arg10[%c0, %c0_5] : memref<128x128xbf16, #tpu.memory_space<vmem>>, vector<128x128xbf16>
      tpu.vector_store %arg10[%c0, %c0_5], %12 {strides = array<i32>} : memref<128x128xbf16, #tpu.memory_space<vmem>>, vector<128x128xbf16>,
    } else {
    }
    %3 = arith.index_cast %arg0 : i32 to index
    %4 = arith.index_cast %arg1 : i32 to index
    %5 = memref.load %arg2[%3, %4] : memref<2x1xi32, #tpu.memory_space<smem>>
    %c0_i32_1 = arith.constant 0 : i32
    %6 = arith.cmpi sgt, %5, %c0_i32_1 : i32
    %7 = arith.extui %6 : i1 to i32
    %c0_i32_2 = arith.constant 0 : i32
    %8 = arith.cmpi ne, %7, %c0_i32_2 : i32
    scf.if %8 {
      %c0 = arith.constant 0 : index
      %c0_5 = arith.constant 0 : index
      %12 = vector.load %arg10[%c0, %c0_5] : memref<128x128xbf16, #tpu.memory_space<vmem>>, vector<128x128xbf16>
      %c0_i32_6 = arith.constant 0 : i32
      %c16_i32 = arith.constant 16 : i32
      %13 = arith.addi %c0_i32_6, %c16_i32 : i32
      %c1_i32 = arith.constant 1 : i32
      %14 = scf.for %arg11 = %c0_i32_6 to %13 step %c1_i32 iter_args(%arg12 = %12) -> (vector<128x128xbf16>)  : i32 {
        %c16_i32_10 = arith.constant 16 : i32
        %16 = arith.muli %arg11, %c16_i32_10 : i32
        %17 = tpu.assume_multiple %16, 16 : i32
        %18 = arith.index_cast %17 : i32 to index
        %c0_11 = arith.constant 0 : index
        %19 = vector.load %arg3[%18, %c0_11] : memref<256x128xbf16, #tpu.memory_space<vmem>>, vector<16x128xbf16>
        %20 = arith.extf %19 : vector<16x128xbf16> to vector<16x128xf32>
        %21 = tpu.transpose %20, [1, 0] : vector<16x128xf32> -> vector<128x16xf32>
        %22 = arith.truncf %21 : vector<128x16xf32> to vector<128x16xbf16>
        %23 = arith.index_cast %17 : i32 to index
        %c0_12 = arith.constant 0 : index
        %24 = vector.load %arg4[%23, %c0_12] : memref<256x128xbf16, #tpu.memory_space<vmem>>, vector<16x128xbf16>
        %25 = vector.extract_strided_slice %22 {offsets = [0, 0], sizes = [128, 1], strides = [1, 1]} : vector<128x16xbf16> to vector<128x1xbf16>
        %26 = vector.extract_strided_slice %24 {offsets = [0, 0], sizes = [1, 128], strides = [1, 1]} : vector<16x128xbf16> to vector<1x128xbf16>
        %27 = vector.broadcast %25 : vector<128x1xbf16> to vector<128x128xbf16>
        %28 = vector.broadcast %26 : vector<1x128xbf16> to vector<128x128xbf16>
        %29 = arith.mulf %27, %28 : vector<128x128xbf16>
        %30 = arith.maximumf %arg12, %29 : vector<128x128xbf16>
        %31 = vector.extract_strided_slice %22 {offsets = [0, 1], sizes = [128, 1], strides = [1, 1]} : vector<128x16xbf16> to vector<128x1xbf16>
        %32 = vector.extract_strided_slice %24 {offsets = [1, 0], sizes = [1, 128], strides = [1, 1]} : vector<16x128xbf16> to vector<1x128xbf16>
        %33 = vector.broadcast %31 : vector<128x1xbf16> to vector<128x128xbf16>
        %34 = vector.broadcast %32 : vector<1x128xbf16> to vector<128x128xbf16>
        %35 = arith.mulf %33, %34 : vector<128x128xbf16>
        %36 = arith.maximumf %30, %35 : vector<128x128xbf16>
        %37 = vector.extract_strided_slice %22 {offsets = [0, 2], sizes = [128, 1], strides = [1, 1]} : vector<128x16xbf16> to vector<128x1xbf16>
        %38 = vector.extract_strided_slice %24 {offsets = [2, 0], sizes = [1, 128], strides = [1, 1]} : vector<16x128xbf16> to vector<1x128xbf16>
        %39 = vector.broadcast %37 : vector<128x1xbf16> to vector<128x128xbf16>
        %40 = vector.broadcast %38 : vector<1x128xbf16> to vector<128x128xbf16>
        %41 = arith.mulf %39, %40 : vector<128x128xbf16>
        %42 = arith.maximumf %36, %41 : vector<128x128xbf16>
        %43 = vector.extract_strided_slice %22 {offsets = [0, 3], sizes = [128, 1], strides = [1, 1]} : vector<128x16xbf16> to vector<128x1xbf16>
        %44 = vector.extract_strided_slice %24 {offsets = [3, 0], sizes = [1, 128], strides = [1, 1]} : vector<16x128xbf16> to vector<1x128xbf16>
        %45 = vector.broadcast %43 : vector<128x1xbf16> to vector<128x128xbf16>
        %46 = vector.broadcast %44 : vector<1x128xbf16> to vector<128x128xbf16>
        %47 = arith.mulf %45, %46 : vector<128x128xbf16>
        %48 = arith.maximumf %42, %47 : vector<128x128xbf16>
        %49 = vector.extract_strided_slice %22 {offsets = [0, 4], sizes = [128, 1], strides = [1, 1]} : vector<128x16xbf16> to vector<128x1xbf16>
        %50 = vector.extract_strided_slice %24 {offsets = [4, 0], sizes = [1, 128], strides = [1, 1]} : vector<16x128xbf16> to vector<1x128xbf16>
        %51 = vector.broadcast %49 : vector<128x1xbf16> to vector<128x128xbf16>
        %52 = vector.broadcast %50 : vector<1x128xbf16> to vector<128x128xbf16>
        %53 = arith.mulf %51, %52 : vector<128x128xbf16>
        %54 = arith.maximumf %48, %53 : vector<128x128xbf16>
        %55 = vector.extract_strided_slice %22 {offsets = [0, 5], sizes = [128, 1], strides = [1, 1]} : vector<128x16xbf16> to vector<128x1xbf16>
        %56 = vector.extract_strided_slice %24 {offsets = [5, 0], sizes = [1, 128], strides = [1, 1]} : vector<16x128xbf16> to vector<1x128xbf16>
        %57 = vector.broadcast %55 : vector<128x1xbf16> to vector<128x128xbf16>
        %58 = vector.broadcast %56 : vector<1x128xbf16> to vector<128x128xbf16>
        %59 = arith.mulf %57, %58 : vector<128x128xbf16>
        %60 = arith.maximumf %54, %59 : vector<128x128xbf16>
        %61 = vector.extract_strided_slice %22 {offsets = [0, 6], sizes = [128, 1], strides = [1, 1]} : vector<128x16xbf16> to vector<128x1xbf16>
        %62 = vector.extract_strided_slice %24 {offsets = [6, 0], sizes = [1, 128], strides = [1, 1]} : vector<16x128xbf16> to vector<1x128xbf16>
        %63 = vector.broadcast %61 : vector<128x1xbf16> to vector<128x128xbf16>
        %64 = vector.broadcast %62 : vector<1x128xbf16> to vector<128x128xbf16>
        %65 = arith.mulf %63, %64 : vector<128x128xbf16>
        %66 = arith.maximumf %60, %65 : vector<128x128xbf16>
        %67 = vector.extract_strided_slice %22 {offsets = [0, 7], sizes = [128, 1], strides = [1, 1]} : vector<128x16xbf16> to vector<128x1xbf16>
        %68 = vector.extract_strided_slice %24 {offsets = [7, 0], sizes = [1, 128], strides = [1, 1]} : vector<16x128xbf16> to vector<1x128xbf16>
        %69 = vector.broadcast %67 : vector<128x1xbf16> to vector<128x128xbf16>
        %70 = vector.broadcast %68 : vector<1x128xbf16> to vector<128x128xbf16>
        %71 = arith.mulf %69, %70 : vector<128x128xbf16>
        %72 = arith.maximumf %66, %71 : vector<128x128xbf16>
        %73 = vector.extract_strided_slice %22 {offsets = [0, 8], sizes = [128, 1], strides = [1, 1]} : vector<128x16xbf16> to vector<128x1xbf16>
        %74 = vector.extract_strided_slice %24 {offsets = [8, 0], sizes = [1, 128], strides = [1, 1]} : vector<16x128xbf16> to vector<1x128xbf16>
        %75 = vector.broadcast %73 : vector<128x1xbf16> to vector<128x128xbf16>
        %76 = vector.broadcast %74 : vector<1x128xbf16> to vector<128x128xbf16>
        %77 = arith.mulf %75, %76 : vector<128x128xbf16>
        %78 = arith.maximumf %72, %77 : vector<128x128xbf16>
        %79 = vector.extract_strided_slice %22 {offsets = [0, 9], sizes = [128, 1], strides = [1, 1]} : vector<128x16xbf16> to vector<128x1xbf16>
        %80 = vector.extract_strided_slice %24 {offsets = [9, 0], sizes = [1, 128], strides = [1, 1]} : vector<16x128xbf16> to vector<1x128xbf16>
        %81 = vector.broadcast %79 : vector<128x1xbf16> to vector<128x128xbf16>
        %82 = vector.broadcast %80 : vector<1x128xbf16> to vector<128x128xbf16>
        %83 = arith.mulf %81, %82 : vector<128x128xbf16>
        %84 = arith.maximumf %78, %83 : vector<128x128xbf16>
        %85 = vector.extract_strided_slice %22 {offsets = [0, 10], sizes = [128, 1], strides = [1, 1]} : vector<128x16xbf16> to vector<128x1xbf16>
        %86 = vector.extract_strided_slice %24 {offsets = [10, 0], sizes = [1, 128], strides = [1, 1]} : vector<16x128xbf16> to vector<1x128xbf16>
        %87 = vector.broadcast %85 : vector<128x1xbf16> to vector<128x128xbf16>
        %88 = vector.broadcast %86 : vector<1x128xbf16> to vector<128x128xbf16>
        %89 = arith.mulf %87, %88 : vector<128x128xbf16>
        %90 = arith.maximumf %84, %89 : vector<128x128xbf16>
        %91 = vector.extract_strided_slice %22 {offsets = [0, 11], sizes = [128, 1], strides = [1, 1]} : vector<128x16xbf16> to vector<128x1xbf16>
        %92 = vector.extract_strided_slice %24 {offsets = [11, 0], sizes = [1, 128], strides = [1, 1]} : vector<16x128xbf16> to vector<1x128xbf16>
        %93 = vector.broadcast %91 : vector<128x1xbf16> to vector<128x128xbf16>
        %94 = vector.broadcast %92 : vector<1x128xbf16> to vector<128x128xbf16>
        %95 = arith.mulf %93, %94 : vector<128x128xbf16>
        %96 = arith.maximumf %90, %95 : vector<128x128xbf16>
        %97 = vector.extract_strided_slice %22 {offsets = [0, 12], sizes = [128, 1], strides = [1, 1]} : vector<128x16xbf16> to vector<128x1xbf16>
        %98 = vector.extract_strided_slice %24 {offsets = [12, 0], sizes = [1, 128], strides = [1, 1]} : vector<16x128xbf16> to vector<1x128xbf16>
        %99 = vector.broadcast %97 : vector<128x1xbf16> to vector<128x128xbf16>
        %100 = vector.broadcast %98 : vector<1x128xbf16> to vector<128x128xbf16>
        %101 = arith.mulf %99, %100 : vector<128x128xbf16>
        %102 = arith.maximumf %96, %101 : vector<128x128xbf16>
        %103 = vector.extract_strided_slice %22 {offsets = [0, 13], sizes = [128, 1], strides = [1, 1]} : vector<128x16xbf16> to vector<128x1xbf16>
        %104 = vector.extract_strided_slice %24 {offsets = [13, 0], sizes = [1, 128], strides = [1, 1]} : vector<16x128xbf16> to vector<1x128xbf16>
        %105 = vector.broadcast %103 : vector<128x1xbf16> to vector<128x128xbf16>
        %106 = vector.broadcast %104 : vector<1x128xbf16> to vector<128x128xbf16>
        %107 = arith.mulf %105, %106 : vector<128x128xbf16>
        %108 = arith.maximumf %102, %107 : vector<128x128xbf16>
        %109 = vector.extract_strided_slice %22 {offsets = [0, 14], sizes = [128, 1], strides = [1, 1]} : vector<128x16xbf16> to vector<128x1xbf16>
        %110 = vector.extract_strided_slice %24 {offsets = [14, 0], sizes = [1, 128], strides = [1, 1]} : vector<16x128xbf16> to vector<1x128xbf16>
        %111 = vector.broadcast %109 : vector<128x1xbf16> to vector<128x128xbf16>
        %112 = vector.broadcast %110 : vector<1x128xbf16> to vector<128x128xbf16>
        %113 = arith.mulf %111, %112 : vector<128x128xbf16>
        %114 = arith.maximumf %108, %113 : vector<128x128xbf16>
        %115 = vector.extract_strided_slice %22 {offsets = [0, 15], sizes = [128, 1], strides = [1, 1]} : vector<128x16xbf16> to vector<128x1xbf16>
        %116 = vector.extract_strided_slice %24 {offsets = [15, 0], sizes = [1, 128], strides = [1, 1]} : vector<16x128xbf16> to vector<1x128xbf16>
        %117 = vector.broadcast %115 : vector<128x1xbf16> to vector<128x128xbf16>
        %118 = vector.broadcast %116 : vector<1x128xbf16> to vector<128x128xbf16>
        %119 = arith.mulf %117, %118 : vector<128x128xbf16>
        %120 = arith.maximumf %114, %119 : vector<128x128xbf16>
        scf.yield %120 : vector<128x128xbf16>
      }
      %c16_i32_7 = arith.constant 16 : i32
      %c0_8 = arith.constant 0 : index
      %c0_9 = arith.constant 0 : index
      %15 = vector.load %arg10[%c0_8, %c0_9] : memref<128x128xbf16, #tpu.memory_space<vmem>>, vector<128x128xbf16>
      tpu.vector_store %arg10[%c0_8, %c0_9], %14 {strides = array<i32>} : memref<128x128xbf16, #tpu.memory_space<vmem>>, vector<128x128xbf16>,
    } else {
    }
    %c0_i32_3 = arith.constant 0 : i32
    %9 = arith.cmpi eq, %arg1, %c0_i32_3 : i32
    %10 = arith.extui %9 : i1 to i32
    %c0_i32_4 = arith.constant 0 : i32
    %11 = arith.cmpi ne, %10, %c0_i32_4 : i32
    scf.if %11 {
      %c0 = arith.constant 0 : index
      %c0_5 = arith.constant 0 : index
      %12 = vector.load %arg5[%c0, %c0_5] : memref<128x128xbf16, #tpu.memory_space<vmem>>, vector<128x128xbf16>
      %c0_6 = arith.constant 0 : index
      %c0_7 = arith.constant 0 : index
      %13 = vector.load %arg6[%c0_6, %c0_7] : memref<128x128xbf16, #tpu.memory_space<vmem>>, vector<128x128xbf16>
      %cst = arith.constant dense<0.000000e+00> : vector<128x128xf32>
      %14 = tpu.matmul %12, %13, %cst {dimension_numbers = #tpu.dot_dimension_numbers<[1], [0], [0], [1], [0, 0, 1, 1], [], []>} : vector<128x128xbf16>, vector<128x128xbf16>, vector<128x128xf32> -> vector<128x128xf32>
      %c0_8 = arith.constant 0 : index
      %c0_9 = arith.constant 0 : index
      %15 = vector.load %arg10[%c0_8, %c0_9] : memref<128x128xbf16, #tpu.memory_space<vmem>>, vector<128x128xbf16>
      %c0_10 = arith.constant 0 : index
      %c0_11 = arith.constant 0 : index
      %16 = vector.load %arg7[%c0_10, %c0_11] : memref<128x128xbf16, #tpu.memory_space<vmem>>, vector<128x128xbf16>
      %cst_12 = arith.constant dense<0.000000e+00> : vector<128x128xf32>
      %17 = tpu.matmul %15, %16, %cst_12 {dimension_numbers = #tpu.dot_dimension_numbers<[1], [0], [0], [1], [0, 0, 1, 1], [], []>} : vector<128x128xbf16>, vector<128x128xbf16>, vector<128x128xf32> -> vector<128x128xf32>
      %18 = arith.addf %14, %17 : vector<128x128xf32>
      %c0_13 = arith.constant 0 : index
      %c0_14 = arith.constant 0 : index
      %19 = vector.load %arg8[%c0_13, %c0_14] : memref<1x128xf32, #tpu.memory_space<vmem>>, vector<1x128xf32>
      %20 = vector.broadcast %19 : vector<1x128xf32> to vector<128x128xf32>
      %21 = arith.addf %18, %20 : vector<128x128xf32>
      %22 = arith.mulf %21, %21 : vector<128x128xf32>
      %cst_15 = arith.constant dense<0.000000e+00> : vector<128xf32>
      %23 = vector.multi_reduction <add>, %22, %cst_15 [1] : vector<128x128xf32> to vector<128xf32>
      %24 = vector.shape_cast %23 : vector<128xf32> to vector<128x1xf32>
      %cst_16 = arith.constant 1.000000e-24 : f32
      %25 = vector.broadcast %cst_16 : f32 to vector<128x1xf32>
      %26 = arith.maximumf %24, %25 : vector<128x1xf32>
      %27 = math.rsqrt %26 : vector<128x1xf32>
      %28 = vector.broadcast %27 : vector<128x1xf32> to vector<128x128xf32>
      %29 = arith.mulf %21, %28 : vector<128x128xf32>
      %cst_17 = arith.constant 0.000000e+00 : f32
      %30 = vector.broadcast %cst_17 : f32 to vector<128x128xf32>
      %31 = arith.maximumf %29, %30 : vector<128x128xf32>
      %32 = arith.truncf %31 : vector<128x128xf32> to vector<128x128xbf16>
      %c0_18 = arith.constant 0 : index
      %c0_19 = arith.constant 0 : index
      %33 = vector.load %arg9[%c0_18, %c0_19] : memref<128x128xbf16, #tpu.memory_space<vmem>>, vector<128x128xbf16>
      tpu.vector_store %arg9[%c0_18, %c0_19], %32 {strides = array<i32>} : memref<128x128xbf16, #tpu.memory_space<vmem>>, vector<128x128xbf16>,
    } else {
    }
    return
  }
  func.func @transform_0(%arg0: i32, %arg1: i32, %arg2: memref<2x1xi32, #tpu.memory_space<smem>>) -> (i32, i32) {
    %c0_i32 = arith.constant 0 : i32
    return %arg1, %arg0 : i32, i32
  }
  func.func @transform_1(%arg0: i32, %arg1: i32, %arg2: memref<2x1xi32, #tpu.memory_space<smem>>) -> (i32, i32) {
    %c0_i32 = arith.constant 0 : i32
    %c0_i32_0 = arith.constant 0 : i32
    return %arg1, %c0_i32 : i32, i32
  }
  func.func @transform_2(%arg0: i32, %arg1: i32, %arg2: memref<2x1xi32, #tpu.memory_space<smem>>) -> (i32, i32) {
    %c0_i32 = arith.constant 0 : i32
    %c0_i32_0 = arith.constant 0 : i32
    return %arg0, %c0_i32 : i32, i32
  }
  func.func @transform_3(%arg0: i32, %arg1: i32, %arg2: memref<2x1xi32, #tpu.memory_space<smem>>) -> (i32, i32) {
    %c0_i32 = arith.constant 0 : i32
    %c0_i32_0 = arith.constant 0 : i32
    %c0_i32_1 = arith.constant 0 : i32
    return %c0_i32, %c0_i32_0 : i32, i32
  }
  func.func @transform_4(%arg0: i32, %arg1: i32, %arg2: memref<2x1xi32, #tpu.memory_space<smem>>) -> (i32, i32) {
    %c0_i32 = arith.constant 0 : i32
    %c0_i32_0 = arith.constant 0 : i32
    %c0_i32_1 = arith.constant 0 : i32
    return %c0_i32, %c0_i32_0 : i32, i32
  }
  func.func @transform_5(%arg0: i32, %arg1: i32, %arg2: memref<2x1xi32, #tpu.memory_space<smem>>) -> (i32, i32) {
    %c0_i32 = arith.constant 0 : i32
    %c0_i32_0 = arith.constant 0 : i32
    %c0_i32_1 = arith.constant 0 : i32
    return %c0_i32, %c0_i32_0 : i32, i32
  }
  func.func @transform_6(%arg0: i32, %arg1: i32, %arg2: memref<2x1xi32, #tpu.memory_space<smem>>) -> (i32, i32) {
    %c0_i32 = arith.constant 0 : i32
    %c0_i32_0 = arith.constant 0 : i32
    return %arg0, %c0_i32 : i32, i32
  }
}

module attributes {stable_mosaic.version = 11 : i64} {
  func.func @sage_agg_kernel(%arg0: i32, %arg1: i32, %arg2: memref<2x1xi32, #tpu.memory_space<smem>>, %arg3: memref<256x128xbf16, #tpu.memory_space<vmem>>, %arg4: memref<256x128xbf16, #tpu.memory_space<vmem>>, %arg5: memref<128x128xbf16, #tpu.memory_space<vmem>>, %arg6: memref<128x128xbf16, #tpu.memory_space<vmem>>, %arg7: memref<128x128xbf16, #tpu.memory_space<vmem>>, %arg8: memref<1x128xf32, #tpu.memory_space<vmem>>, %arg9: memref<128x128xf32, #tpu.memory_space<vmem>>, %arg10: memref<128x128xbf16, #tpu.memory_space<vmem>>) attributes {dimension_semantics = [#tpu.dimension_semantics<parallel>, #tpu.dimension_semantics<arbitrary>], iteration_bounds = array<i64: 2, 1>, scalar_prefetch = 1 : i64, scratch_operands = 1 : i64, tpu.core_type = #tpu.core_type<tc>, window_params = [{transform_indices = @transform_0, window_bounds = array<i64: 256, 128>}, {transform_indices = @transform_1, window_bounds = array<i64: 256, 128>}, {transform_indices = @transform_2, window_bounds = array<i64: 128, 128>}, {pipeline_mode = #tpu.pipeline_mode<synchronous>, transform_indices = @transform_3, window_bounds = array<i64: 128, 128>}, {pipeline_mode = #tpu.pipeline_mode<synchronous>, transform_indices = @transform_4, window_bounds = array<i64: 128, 128>}, {pipeline_mode = #tpu.pipeline_mode<synchronous>, transform_indices = @transform_5, window_bounds = array<i64: 1, 128>}, {transform_indices = @transform_6, window_bounds = array<i64: 128, 128>}]} {
    %c0_i32 = arith.constant 0 : i32
    %0 = arith.cmpi eq, %arg1, %c0_i32 : i32
    %1 = arith.extui %0 : i1 to i32
    %c0_i32_0 = arith.constant 0 : i32
    %2 = arith.cmpi ne, %1, %c0_i32_0 : i32
    scf.if %2 {
      %cst = arith.constant 0.000000e+00 : bf16
      %12 = vector.broadcast %cst : bf16 to vector<128x128xbf16>
      %c0 = arith.constant 0 : index
      %c0_5 = arith.constant 0 : index
      %13 = vector.load %arg10[%c0, %c0_5] : memref<128x128xbf16, #tpu.memory_space<vmem>>, vector<128x128xbf16>
      tpu.vector_store %arg10[%c0, %c0_5], %12 {strides = array<i32>} : memref<128x128xbf16, #tpu.memory_space<vmem>>, vector<128x128xbf16>,
    } else {
    }
    %3 = arith.index_cast %arg0 : i32 to index
    %4 = arith.index_cast %arg1 : i32 to index
    %5 = memref.load %arg2[%3, %4] : memref<2x1xi32, #tpu.memory_space<smem>>
    %c0_i32_1 = arith.constant 0 : i32
    %6 = arith.cmpi sgt, %5, %c0_i32_1 : i32
    %7 = arith.extui %6 : i1 to i32
    %c0_i32_2 = arith.constant 0 : i32
    %8 = arith.cmpi ne, %7, %c0_i32_2 : i32
    scf.if %8 {
      %c0 = arith.constant 0 : index
      %c0_5 = arith.constant 0 : index
      %12 = vector.load %arg10[%c0, %c0_5] : memref<128x128xbf16, #tpu.memory_space<vmem>>, vector<128x128xbf16>
      %c0_i32_6 = arith.constant 0 : i32
      %c16_i32 = arith.constant 16 : i32
      %13 = arith.addi %c0_i32_6, %c16_i32 : i32
      %c1_i32 = arith.constant 1 : i32
      %14 = scf.for %arg11 = %c0_i32_6 to %13 step %c1_i32 iter_args(%arg12 = %12) -> (vector<128x128xbf16>)  : i32 {
        %c16_i32_10 = arith.constant 16 : i32
        %16 = arith.muli %arg11, %c16_i32_10 : i32
        %17 = tpu.assume_multiple %16, 16 : i32
        %18 = arith.index_cast %17 : i32 to index
        %c0_11 = arith.constant 0 : index
        %19 = vector.load %arg3[%18, %c0_11] : memref<256x128xbf16, #tpu.memory_space<vmem>>, vector<16x128xbf16>
        %20 = arith.extf %19 : vector<16x128xbf16> to vector<16x128xf32>
        %21 = tpu.transpose %20, [1, 0] : vector<16x128xf32> -> vector<128x16xf32>
        %22 = arith.truncf %21 : vector<128x16xf32> to vector<128x16xbf16>
        %23 = arith.index_cast %17 : i32 to index
        %c0_12 = arith.constant 0 : index
        %24 = vector.load %arg4[%23, %c0_12] : memref<256x128xbf16, #tpu.memory_space<vmem>>, vector<16x128xbf16>
        %25 = vector.extract_strided_slice %22 {offsets = [0, 0], sizes = [128, 1], strides = [1, 1]} : vector<128x16xbf16> to vector<128x1xbf16>
        %26 = vector.extract_strided_slice %24 {offsets = [0, 0], sizes = [1, 128], strides = [1, 1]} : vector<16x128xbf16> to vector<1x128xbf16>
        %27 = vector.broadcast %25 : vector<128x1xbf16> to vector<128x128xbf16>
        %28 = vector.broadcast %26 : vector<1x128xbf16> to vector<128x128xbf16>
        %29 = arith.mulf %27, %28 : vector<128x128xbf16>
        %30 = arith.maximumf %arg12, %29 : vector<128x128xbf16>
        %31 = vector.extract_strided_slice %22 {offsets = [0, 1], sizes = [128, 1], strides = [1, 1]} : vector<128x16xbf16> to vector<128x1xbf16>
        %32 = vector.extract_strided_slice %24 {offsets = [1, 0], sizes = [1, 128], strides = [1, 1]} : vector<16x128xbf16> to vector<1x128xbf16>
        %33 = vector.broadcast %31 : vector<128x1xbf16> to vector<128x128xbf16>
        %34 = vector.broadcast %32 : vector<1x128xbf16> to vector<128x128xbf16>
        %35 = arith.mulf %33, %34 : vector<128x128xbf16>
        %36 = arith.maximumf %30, %35 : vector<128x128xbf16>
        %37 = vector.extract_strided_slice %22 {offsets = [0, 2], sizes = [128, 1], strides = [1, 1]} : vector<128x16xbf16> to vector<128x1xbf16>
        %38 = vector.extract_strided_slice %24 {offsets = [2, 0], sizes = [1, 128], strides = [1, 1]} : vector<16x128xbf16> to vector<1x128xbf16>
        %39 = vector.broadcast %37 : vector<128x1xbf16> to vector<128x128xbf16>
        %40 = vector.broadcast %38 : vector<1x128xbf16> to vector<128x128xbf16>
        %41 = arith.mulf %39, %40 : vector<128x128xbf16>
        %42 = arith.maximumf %36, %41 : vector<128x128xbf16>
        %43 = vector.extract_strided_slice %22 {offsets = [0, 3], sizes = [128, 1], strides = [1, 1]} : vector<128x16xbf16> to vector<128x1xbf16>
        %44 = vector.extract_strided_slice %24 {offsets = [3, 0], sizes = [1, 128], strides = [1, 1]} : vector<16x128xbf16> to vector<1x128xbf16>
        %45 = vector.broadcast %43 : vector<128x1xbf16> to vector<128x128xbf16>
        %46 = vector.broadcast %44 : vector<1x128xbf16> to vector<128x128xbf16>
        %47 = arith.mulf %45, %46 : vector<128x128xbf16>
        %48 = arith.maximumf %42, %47 : vector<128x128xbf16>
        %49 = vector.extract_strided_slice %22 {offsets = [0, 4], sizes = [128, 1], strides = [1, 1]} : vector<128x16xbf16> to vector<128x1xbf16>
        %50 = vector.extract_strided_slice %24 {offsets = [4, 0], sizes = [1, 128], strides = [1, 1]} : vector<16x128xbf16> to vector<1x128xbf16>
        %51 = vector.broadcast %49 : vector<128x1xbf16> to vector<128x128xbf16>
        %52 = vector.broadcast %50 : vector<1x128xbf16> to vector<128x128xbf16>
        %53 = arith.mulf %51, %52 : vector<128x128xbf16>
        %54 = arith.maximumf %48, %53 : vector<128x128xbf16>
        %55 = vector.extract_strided_slice %22 {offsets = [0, 5], sizes = [128, 1], strides = [1, 1]} : vector<128x16xbf16> to vector<128x1xbf16>
        %56 = vector.extract_strided_slice %24 {offsets = [5, 0], sizes = [1, 128], strides = [1, 1]} : vector<16x128xbf16> to vector<1x128xbf16>
        %57 = vector.broadcast %55 : vector<128x1xbf16> to vector<128x128xbf16>
        %58 = vector.broadcast %56 : vector<1x128xbf16> to vector<128x128xbf16>
        %59 = arith.mulf %57, %58 : vector<128x128xbf16>
        %60 = arith.maximumf %54, %59 : vector<128x128xbf16>
        %61 = vector.extract_strided_slice %22 {offsets = [0, 6], sizes = [128, 1], strides = [1, 1]} : vector<128x16xbf16> to vector<128x1xbf16>
        %62 = vector.extract_strided_slice %24 {offsets = [6, 0], sizes = [1, 128], strides = [1, 1]} : vector<16x128xbf16> to vector<1x128xbf16>
        %63 = vector.broadcast %61 : vector<128x1xbf16> to vector<128x128xbf16>
        %64 = vector.broadcast %62 : vector<1x128xbf16> to vector<128x128xbf16>
        %65 = arith.mulf %63, %64 : vector<128x128xbf16>
        %66 = arith.maximumf %60, %65 : vector<128x128xbf16>
        %67 = vector.extract_strided_slice %22 {offsets = [0, 7], sizes = [128, 1], strides = [1, 1]} : vector<128x16xbf16> to vector<128x1xbf16>
        %68 = vector.extract_strided_slice %24 {offsets = [7, 0], sizes = [1, 128], strides = [1, 1]} : vector<16x128xbf16> to vector<1x128xbf16>
        %69 = vector.broadcast %67 : vector<128x1xbf16> to vector<128x128xbf16>
        %70 = vector.broadcast %68 : vector<1x128xbf16> to vector<128x128xbf16>
        %71 = arith.mulf %69, %70 : vector<128x128xbf16>
        %72 = arith.maximumf %66, %71 : vector<128x128xbf16>
        %73 = vector.extract_strided_slice %22 {offsets = [0, 8], sizes = [128, 1], strides = [1, 1]} : vector<128x16xbf16> to vector<128x1xbf16>
        %74 = vector.extract_strided_slice %24 {offsets = [8, 0], sizes = [1, 128], strides = [1, 1]} : vector<16x128xbf16> to vector<1x128xbf16>
        %75 = vector.broadcast %73 : vector<128x1xbf16> to vector<128x128xbf16>
        %76 = vector.broadcast %74 : vector<1x128xbf16> to vector<128x128xbf16>
        %77 = arith.mulf %75, %76 : vector<128x128xbf16>
        %78 = arith.maximumf %72, %77 : vector<128x128xbf16>
        %79 = vector.extract_strided_slice %22 {offsets = [0, 9], sizes = [128, 1], strides = [1, 1]} : vector<128x16xbf16> to vector<128x1xbf16>
        %80 = vector.extract_strided_slice %24 {offsets = [9, 0], sizes = [1, 128], strides = [1, 1]} : vector<16x128xbf16> to vector<1x128xbf16>
        %81 = vector.broadcast %79 : vector<128x1xbf16> to vector<128x128xbf16>
        %82 = vector.broadcast %80 : vector<1x128xbf16> to vector<128x128xbf16>
        %83 = arith.mulf %81, %82 : vector<128x128xbf16>
        %84 = arith.maximumf %78, %83 : vector<128x128xbf16>
        %85 = vector.extract_strided_slice %22 {offsets = [0, 10], sizes = [128, 1], strides = [1, 1]} : vector<128x16xbf16> to vector<128x1xbf16>
        %86 = vector.extract_strided_slice %24 {offsets = [10, 0], sizes = [1, 128], strides = [1, 1]} : vector<16x128xbf16> to vector<1x128xbf16>
        %87 = vector.broadcast %85 : vector<128x1xbf16> to vector<128x128xbf16>
        %88 = vector.broadcast %86 : vector<1x128xbf16> to vector<128x128xbf16>
        %89 = arith.mulf %87, %88 : vector<128x128xbf16>
        %90 = arith.maximumf %84, %89 : vector<128x128xbf16>
        %91 = vector.extract_strided_slice %22 {offsets = [0, 11], sizes = [128, 1], strides = [1, 1]} : vector<128x16xbf16> to vector<128x1xbf16>
        %92 = vector.extract_strided_slice %24 {offsets = [11, 0], sizes = [1, 128], strides = [1, 1]} : vector<16x128xbf16> to vector<1x128xbf16>
        %93 = vector.broadcast %91 : vector<128x1xbf16> to vector<128x128xbf16>
        %94 = vector.broadcast %92 : vector<1x128xbf16> to vector<128x128xbf16>
        %95 = arith.mulf %93, %94 : vector<128x128xbf16>
        %96 = arith.maximumf %90, %95 : vector<128x128xbf16>
        %97 = vector.extract_strided_slice %22 {offsets = [0, 12], sizes = [128, 1], strides = [1, 1]} : vector<128x16xbf16> to vector<128x1xbf16>
        %98 = vector.extract_strided_slice %24 {offsets = [12, 0], sizes = [1, 128], strides = [1, 1]} : vector<16x128xbf16> to vector<1x128xbf16>
        %99 = vector.broadcast %97 : vector<128x1xbf16> to vector<128x128xbf16>
        %100 = vector.broadcast %98 : vector<1x128xbf16> to vector<128x128xbf16>
        %101 = arith.mulf %99, %100 : vector<128x128xbf16>
        %102 = arith.maximumf %96, %101 : vector<128x128xbf16>
        %103 = vector.extract_strided_slice %22 {offsets = [0, 13], sizes = [128, 1], strides = [1, 1]} : vector<128x16xbf16> to vector<128x1xbf16>
        %104 = vector.extract_strided_slice %24 {offsets = [13, 0], sizes = [1, 128], strides = [1, 1]} : vector<16x128xbf16> to vector<1x128xbf16>
        %105 = vector.broadcast %103 : vector<128x1xbf16> to vector<128x128xbf16>
        %106 = vector.broadcast %104 : vector<1x128xbf16> to vector<128x128xbf16>
        %107 = arith.mulf %105, %106 : vector<128x128xbf16>
        %108 = arith.maximumf %102, %107 : vector<128x128xbf16>
        %109 = vector.extract_strided_slice %22 {offsets = [0, 14], sizes = [128, 1], strides = [1, 1]} : vector<128x16xbf16> to vector<128x1xbf16>
        %110 = vector.extract_strided_slice %24 {offsets = [14, 0], sizes = [1, 128], strides = [1, 1]} : vector<16x128xbf16> to vector<1x128xbf16>
        %111 = vector.broadcast %109 : vector<128x1xbf16> to vector<128x128xbf16>
        %112 = vector.broadcast %110 : vector<1x128xbf16> to vector<128x128xbf16>
        %113 = arith.mulf %111, %112 : vector<128x128xbf16>
        %114 = arith.maximumf %108, %113 : vector<128x128xbf16>
        %115 = vector.extract_strided_slice %22 {offsets = [0, 15], sizes = [128, 1], strides = [1, 1]} : vector<128x16xbf16> to vector<128x1xbf16>
        %116 = vector.extract_strided_slice %24 {offsets = [15, 0], sizes = [1, 128], strides = [1, 1]} : vector<16x128xbf16> to vector<1x128xbf16>
        %117 = vector.broadcast %115 : vector<128x1xbf16> to vector<128x128xbf16>
        %118 = vector.broadcast %116 : vector<1x128xbf16> to vector<128x128xbf16>
        %119 = arith.mulf %117, %118 : vector<128x128xbf16>
        %120 = arith.maximumf %114, %119 : vector<128x128xbf16>
        scf.yield %120 : vector<128x128xbf16>
      }
      %c16_i32_7 = arith.constant 16 : i32
      %c0_8 = arith.constant 0 : index
      %c0_9 = arith.constant 0 : index
      %15 = vector.load %arg10[%c0_8, %c0_9] : memref<128x128xbf16, #tpu.memory_space<vmem>>, vector<128x128xbf16>
      tpu.vector_store %arg10[%c0_8, %c0_9], %14 {strides = array<i32>} : memref<128x128xbf16, #tpu.memory_space<vmem>>, vector<128x128xbf16>,
    } else {
    }
    %c0_i32_3 = arith.constant 0 : i32
    %9 = arith.cmpi eq, %arg1, %c0_i32_3 : i32
    %10 = arith.extui %9 : i1 to i32
    %c0_i32_4 = arith.constant 0 : i32
    %11 = arith.cmpi ne, %10, %c0_i32_4 : i32
    scf.if %11 {
      %c0 = arith.constant 0 : index
      %c0_5 = arith.constant 0 : index
      %12 = vector.load %arg5[%c0, %c0_5] : memref<128x128xbf16, #tpu.memory_space<vmem>>, vector<128x128xbf16>
      %c0_6 = arith.constant 0 : index
      %c0_7 = arith.constant 0 : index
      %13 = vector.load %arg6[%c0_6, %c0_7] : memref<128x128xbf16, #tpu.memory_space<vmem>>, vector<128x128xbf16>
      %cst = arith.constant dense<0.000000e+00> : vector<128x128xf32>
      %14 = tpu.matmul %12, %13, %cst {dimension_numbers = #tpu.dot_dimension_numbers<[1], [0], [0], [1], [0, 0, 1, 1], [], []>} : vector<128x128xbf16>, vector<128x128xbf16>, vector<128x128xf32> -> vector<128x128xf32>
      %c0_8 = arith.constant 0 : index
      %c0_9 = arith.constant 0 : index
      %15 = vector.load %arg10[%c0_8, %c0_9] : memref<128x128xbf16, #tpu.memory_space<vmem>>, vector<128x128xbf16>
      %c0_10 = arith.constant 0 : index
      %c0_11 = arith.constant 0 : index
      %16 = vector.load %arg7[%c0_10, %c0_11] : memref<128x128xbf16, #tpu.memory_space<vmem>>, vector<128x128xbf16>
      %cst_12 = arith.constant dense<0.000000e+00> : vector<128x128xf32>
      %17 = tpu.matmul %15, %16, %cst_12 {dimension_numbers = #tpu.dot_dimension_numbers<[1], [0], [0], [1], [0, 0, 1, 1], [], []>} : vector<128x128xbf16>, vector<128x128xbf16>, vector<128x128xf32> -> vector<128x128xf32>
      %18 = arith.addf %14, %17 : vector<128x128xf32>
      %c0_13 = arith.constant 0 : index
      %c0_14 = arith.constant 0 : index
      %19 = vector.load %arg8[%c0_13, %c0_14] : memref<1x128xf32, #tpu.memory_space<vmem>>, vector<1x128xf32>
      %20 = vector.broadcast %19 : vector<1x128xf32> to vector<128x128xf32>
      %21 = arith.addf %18, %20 : vector<128x128xf32>
      %22 = arith.mulf %21, %21 : vector<128x128xf32>
      %cst_15 = arith.constant dense<0.000000e+00> : vector<128xf32>
      %23 = vector.multi_reduction <add>, %22, %cst_15 [1] : vector<128x128xf32> to vector<128xf32>
      %24 = vector.shape_cast %23 : vector<128xf32> to vector<128x1xf32>
      %cst_16 = arith.constant 1.000000e-24 : f32
      %25 = vector.broadcast %cst_16 : f32 to vector<128x1xf32>
      %26 = arith.maximumf %24, %25 : vector<128x1xf32>
      %27 = math.rsqrt %26 : vector<128x1xf32>
      %28 = vector.broadcast %27 : vector<128x1xf32> to vector<128x128xf32>
      %29 = arith.mulf %21, %28 : vector<128x128xf32>
      %cst_17 = arith.constant 0.000000e+00 : f32
      %30 = vector.broadcast %cst_17 : f32 to vector<128x128xf32>
      %31 = arith.maximumf %29, %30 : vector<128x128xf32>
      %c0_18 = arith.constant 0 : index
      %c0_19 = arith.constant 0 : index
      %32 = vector.load %arg9[%c0_18, %c0_19] : memref<128x128xf32, #tpu.memory_space<vmem>>, vector<128x128xf32>
      tpu.vector_store %arg9[%c0_18, %c0_19], %31 {strides = array<i32>} : memref<128x128xf32, #tpu.memory_space<vmem>>, vector<128x128xf32>,
    } else {
    }
    return
  }
  func.func @transform_0(%arg0: i32, %arg1: i32, %arg2: memref<2x1xi32, #tpu.memory_space<smem>>) -> (i32, i32) {
    %c0_i32 = arith.constant 0 : i32
    return %arg1, %arg0 : i32, i32
  }
  func.func @transform_1(%arg0: i32, %arg1: i32, %arg2: memref<2x1xi32, #tpu.memory_space<smem>>) -> (i32, i32) {
    %c0_i32 = arith.constant 0 : i32
    %c0_i32_0 = arith.constant 0 : i32
    return %arg1, %c0_i32 : i32, i32
  }
  func.func @transform_2(%arg0: i32, %arg1: i32, %arg2: memref<2x1xi32, #tpu.memory_space<smem>>) -> (i32, i32) {
    %c0_i32 = arith.constant 0 : i32
    %c0_i32_0 = arith.constant 0 : i32
    return %arg0, %c0_i32 : i32, i32
  }
  func.func @transform_3(%arg0: i32, %arg1: i32, %arg2: memref<2x1xi32, #tpu.memory_space<smem>>) -> (i32, i32) {
    %c0_i32 = arith.constant 0 : i32
    %c0_i32_0 = arith.constant 0 : i32
    %c0_i32_1 = arith.constant 0 : i32
    return %c0_i32, %c0_i32_0 : i32, i32
  }
  func.func @transform_4(%arg0: i32, %arg1: i32, %arg2: memref<2x1xi32, #tpu.memory_space<smem>>) -> (i32, i32) {
    %c0_i32 = arith.constant 0 : i32
    %c0_i32_0 = arith.constant 0 : i32
    %c0_i32_1 = arith.constant 0 : i32
    return %c0_i32, %c0_i32_0 : i32, i32
  }
  func.func @transform_5(%arg0: i32, %arg1: i32, %arg2: memref<2x1xi32, #tpu.memory_space<smem>>) -> (i32, i32) {
    %c0_i32 = arith.constant 0 : i32
    %c0_i32_0 = arith.constant 0 : i32
    %c0_i32_1 = arith.constant 0 : i32
    return %c0_i32, %c0_i32_0 : i32, i32
  }
  func.func @transform_6(%arg0: i32, %arg1: i32, %arg2: memref<2x1xi32, #tpu.memory_space<smem>>) -> (i32, i32) {
    %c0_i32 = arith.constant 0 : i32
    %c0_i32_0 = arith.constant 0 : i32
    return %arg0, %c0_i32 : i32, i32
  }
}

</mosaic_0001>

<bundles_post_ra>
// kernel: sage_forward.4
= control target key start
LH: loop header
LB: loop body
LE: loop exit
PB: predicated region body
PF: predicated region fallthrough
CT: control target
= control target key end

     0   :  { %s1044_s1 = inlined_call_operand.vmem [shape: bf16[128,128], index: 1, kind: input, shape index: {}]   ;;  %s1045_s0 = inlined_call_operand.vmem [shape: bf16[256,128], index: 0, kind: input, shape index: {}]   ;;  %s1046_s2 = inlined_call_operand.vmem [shape: f32[1,128], index: 2, kind: input, shape index: {}]   ;;  %s1047_s3 = inlined_call_operand.vmem [shape: bf16[256,128], index: 3, kind: output, shape index: {}]  }
   0x1   :  { %v843_v0 = vld [vmem:[%s1044_s1] sm:$0xff]   ;;  %v844_v1 = vld [vmem:[%s1044_s1 + $0x8] sm:$0xff]   ;;  %v845_v2 = vld [vmem:[%s1044_s1 + $0x10] sm:$0xff]  }
   0x2   :  { %779 = vmatprep.subr.bf16.mxu0 %v843_v0  ;;  %827 = vmatprep.subr.bf16.mxu1 %v843_v0  ;;  %v846_v3 = vld [vmem:[%s1044_s1 + $0x18] sm:$0xff]   ;;  %v851_v4 = vld [vmem:[%s1045_s0] sm:$0xff]   ;;  %v848_v7 = vld [vmem:[%s1044_s1 + $0x28] sm:$0xff]  }
   0x3   :  { %780 = vmatpush3.bf16.msra.mxu0 %v843_v0  ;;  %835 = vmatpush3.bf16.msra.mxu1 %v843_v0  ;;  %v852_v5 = vld [vmem:[%s1045_s0 + $0x40] sm:$0xff]   ;;  %v849_v8 = vld [vmem:[%s1044_s1 + $0x30] sm:$0xff]   ;;  %v850_v9 = vld [vmem:[%s1044_s1 + $0x38] sm:$0xff]  }
   0x4   :  { %781 = vmatprep.subr.bf16.mxu0 %v844_v1  ;;  %828 = vmatprep.subr.bf16.mxu1 %v844_v1  ;;  %v847_v6 = vld [vmem:[%s1044_s1 + $0x20] sm:$0xff]   ;;  %v853_v10 = vld [vmem:[%s1045_s0 + $0x8] sm:$0xff]   ;;  %v855_v12 = vld [vmem:[%s1045_s0 + $0x10] sm:$0xff]  }
   0x5   :  { %795 = vmatprep.mubr.bf16.mxu0 %v851_v4  ;;  %811 = vmatprep.mubr.bf16.mxu1 %v852_v5  ;;  %v854_v11 = vld [vmem:[%s1045_s0 + $0x48] sm:$0xff]   ;;  %v856_v13 = vld [vmem:[%s1045_s0 + $0x50] sm:$0xff]   ;;  %v857_v14 = vld [vmem:[%s1045_s0 + $0x18] sm:$0xff]  }
   0x6   :  { %v858_v15 = vld [vmem:[%s1045_s0 + $0x58] sm:$0xff]   ;;  %v859_v16 = vld [vmem:[%s1045_s0 + $0x20] sm:$0xff]   ;;  %v861_v18 = vld [vmem:[%s1045_s0 + $0x28] sm:$0xff]  }
   0x7   :  { %782 = vmatpush3.bf16.msra.mxu0 %v844_v1  ;;  %836 = vmatpush3.bf16.msra.mxu1 %v844_v1  ;;  %v860_v17 = vld [vmem:[%s1045_s0 + $0x60] sm:$0xff]   ;;  %v862_v19 = vld [vmem:[%s1045_s0 + $0x68] sm:$0xff]   ;;  %v863_v20 = vld [vmem:[%s1045_s0 + $0x30] sm:$0xff]  }
   0x8   :  { %783 = vmatprep.subr.bf16.mxu0 %v845_v2  ;;  %829 = vmatprep.subr.bf16.mxu1 %v845_v2  ;;  %v864_v21 = vld [vmem:[%s1045_s0 + $0x70] sm:$0xff]   ;;  %v865_v22 = vld [vmem:[%s1045_s0 + $0x38] sm:$0xff]   ;;  %v962_v24 = vld [vmem:[%s1046_s2] ss:$0 sm:$0xff] }
   0x9   :  { %v866_v23 = vld [vmem:[%s1045_s0 + $0x78] sm:$0xff]  }
   0xb   :  { %784 = vmatpush3.bf16.msra.mxu0 %v845_v2  ;;  %837 = vmatpush3.bf16.msra.mxu1 %v845_v2 }
   0xc   :  { %785 = vmatprep.subr.bf16.mxu0 %v846_v3  ;;  %830 = vmatprep.subr.bf16.mxu1 %v846_v3 }
   0xf   :  { %786 = vmatpush3.bf16.msra.mxu0 %v846_v3  ;;  %838 = vmatpush3.bf16.msra.mxu1 %v846_v3 }
  0x10   :  { %787 = vmatprep.subr.bf16.mxu0 %v847_v6  ;;  %831 = vmatprep.subr.bf16.mxu1 %v847_v6 }
  0x13   :  { %788 = vmatpush3.bf16.msra.mxu0 %v847_v6  ;;  %839 = vmatpush3.bf16.msra.mxu1 %v847_v6 }
  0x14   :  { %789 = vmatprep.subr.bf16.mxu0 %v848_v7  ;;  %832 = vmatprep.subr.bf16.mxu1 %v848_v7 }
  0x17   :  { %790 = vmatpush3.bf16.msra.mxu0 %v848_v7  ;;  %840 = vmatpush3.bf16.msra.mxu1 %v848_v7 }
  0x18   :  { %791 = vmatprep.subr.bf16.mxu0 %v849_v8  ;;  %833 = vmatprep.subr.bf16.mxu1 %v849_v8 }
  0x1b   :  { %792 = vmatpush3.bf16.msra.mxu0 %v849_v8  ;;  %841 = vmatpush3.bf16.msra.mxu1 %v849_v8 }
  0x1c   :  { %793 = vmatprep.subr.bf16.mxu0 %v850_v9  ;;  %834 = vmatprep.subr.bf16.mxu1 %v850_v9 }
  0x1f   :  { %794 = vmatpush3.bf16.msra.mxu0 %v850_v9  ;;  %842 = vmatpush3.bf16.msra.mxu1 %v850_v9 }
  0x22   :  { %796 = vmatmul.mubr.bf16.vlgmr.msra.gmra.mrb[0].mxu0 %v853_v10  ;;  %812 = vmatmul.mubr.bf16.vlgmr.msra.gmra.mrb[0].mxu1 %v854_v11 }
  0x23   :  { %799 = vmatprep.mubr.bf16.mxu0 %v855_v12  ;;  %815 = vmatprep.mubr.bf16.mxu1 %v856_v13 }
  0x2a   :  { %800 = vmatmul.mubr.bf16.gmra.mrb[4].mxu0 %v857_v14  ;;  %816 = vmatmul.mubr.bf16.gmra.mrb[4].mxu1 %v858_v15 }
  0x2b   :  { %803 = vmatprep.mubr.bf16.mxu0 %v859_v16  ;;  %819 = vmatprep.mubr.bf16.mxu1 %v860_v17 }
  0x32   :  { %804 = vmatmul.mubr.bf16.gmra.mrb[8].mxu0 %v861_v18  ;;  %820 = vmatmul.mubr.bf16.gmra.mrb[8].mxu1 %v862_v19 }
  0x33   :  { %807 = vmatprep.mubr.bf16.mxu0 %v863_v20  ;;  %823 = vmatprep.mubr.bf16.mxu1 %v864_v21 }
  0x3a   :  { %808 = vmatmul.mubr.bf16.gmra.mrb[12].mxu0 %v865_v22  ;;  %824 = vmatmul.mubr.bf16.gmra.mrb[12].mxu1 %v866_v23 }
  0xf5   :  { %v797_v25 = vpop.f32.mrb[0].mxu0  ;;  %v813_v26 = vpop.f32.mrb[0].mxu1 }
  0xf6   :  { %v257_v27 = vadd.f32 %v797_v25, %v962_v24  ;;  %v321_v28 = vadd.f32 %v813_v26, %v962_v24  ;;  %v248_v29 = vpop.f32.mrb[1].mxu0  ;;  %v312_v30 = vpop.f32.mrb[1].mxu1 }
  0xf7   :  { %v249_v31 = vadd.f32 %v962_v24, %v248_v29  ;;  %v313_v32 = vadd.f32 %v962_v24, %v312_v30  ;;  %v798_v33 = vpop.f32.mrb[2].mxu0  ;;  %v814_v34 = vpop.f32.mrb[2].mxu1 }
  0xf8   :  { %v260_v35 = vadd.f32 %v798_v33, %v962_v24  ;;  %v324_v36 = vadd.f32 %v814_v34, %v962_v24  ;;  %v251_v37 = vpop.f32.mrb[3].mxu0  ;;  %v315_v38 = vpop.f32.mrb[3].mxu1  ;;  %v377_v41 = vmax.f32 %v257_v27, 0.0  ;;  %v393_v42 = vmax.f32 %v321_v28, 0.0 }
  0xf9   :  { %v252_v39 = vadd.f32 %v962_v24, %v251_v37  ;;  %v316_v40 = vadd.f32 %v962_v24, %v315_v38  ;;  %v375_v45 = vmax.f32 %v249_v31, 0.0  ;;  %v391_v46 = vmax.f32 %v313_v32, 0.0 }
  0xfa   :  { %v378_v43 = vmax.f32 %v260_v35, 0.0  ;;  %v394_v44 = vmax.f32 %v324_v36, 0.0 }
  0xfb   :  { %v376_v47 = vmax.f32 %v252_v39, 0.0  ;;  %v392_v48 = vmax.f32 %v316_v40, 0.0 }
  0xfc   :  { %v668_v49 = vpack.c.bf16 %v378_v43, %v377_v41  ;;  %v708_v50 = vpack.c.bf16 %v394_v44, %v393_v42 }
  0xfd   :  { %v663_v51 = vpack.c.bf16 %v376_v47, %v375_v45  ;;  %v703_v52 = vpack.c.bf16 %v392_v48, %v391_v46  ;;  %v801_v53 = vpop.f32.mrb[4].mxu0  ;;  %v817_v54 = vpop.f32.mrb[4].mxu1 }
  0xfe   :  { %740 = vst [vmem:[%s1047_s3 + $0x8] sm:$0xff] %v668_v49   ;;  %748 = vst [vmem:[%s1047_s3 + $0x48] sm:$0xff] %v708_v50   ;;  %v273_v55 = vadd.f32 %v801_v53, %v962_v24  ;;  %v337_v56 = vadd.f32 %v817_v54, %v962_v24  ;;  %v264_v57 = vpop.f32.mrb[5].mxu0  ;;  %v328_v58 = vpop.f32.mrb[5].mxu1 }
  0xff   :  { %664 = vst [vmem:[%s1047_s3] sm:$0xff] %v663_v51   ;;  %747 = vst [vmem:[%s1047_s3 + $0x40] sm:$0xff] %v703_v52   ;;  %v265_v59 = vadd.f32 %v962_v24, %v264_v57  ;;  %v329_v60 = vadd.f32 %v962_v24, %v328_v58  ;;  %v802_v61 = vpop.f32.mrb[6].mxu0  ;;  %v818_v62 = vpop.f32.mrb[6].mxu1 }
 0x100   :  { %v276_v63 = vadd.f32 %v802_v61, %v962_v24  ;;  %v340_v0 = vadd.f32 %v818_v62, %v962_v24  ;;  %v267_v1 = vpop.f32.mrb[7].mxu0  ;;  %v331_v2 = vpop.f32.mrb[7].mxu1  ;;  %v381_v5 = vmax.f32 %v273_v55, 0.0  ;;  %v397_v6 = vmax.f32 %v337_v56, 0.0 }
 0x101   :  { %v268_v3 = vadd.f32 %v962_v24, %v267_v1  ;;  %v332_v4 = vadd.f32 %v962_v24, %v331_v2  ;;  %v379_v9 = vmax.f32 %v265_v59, 0.0  ;;  %v395_v10 = vmax.f32 %v329_v60, 0.0 }
 0x102   :  { %v382_v7 = vmax.f32 %v276_v63, 0.0  ;;  %v398_v8 = vmax.f32 %v340_v0, 0.0 }
 0x103   :  { %v380_v11 = vmax.f32 %v268_v3, 0.0  ;;  %v396_v12 = vmax.f32 %v332_v4, 0.0 }
 0x104   :  { %v678_v13 = vpack.c.bf16 %v382_v7, %v381_v5  ;;  %v718_v14 = vpack.c.bf16 %v398_v8, %v397_v6 }
 0x105   :  { %v673_v15 = vpack.c.bf16 %v380_v11, %v379_v9  ;;  %v713_v16 = vpack.c.bf16 %v396_v12, %v395_v10  ;;  %v805_v17 = vpop.f32.mrb[8].mxu0  ;;  %v821_v18 = vpop.f32.mrb[8].mxu1 }
 0x106   :  { %742 = vst [vmem:[%s1047_s3 + $0x18] sm:$0xff] %v678_v13   ;;  %750 = vst [vmem:[%s1047_s3 + $0x58] sm:$0xff] %v718_v14   ;;  %v289_v19 = vadd.f32 %v805_v17, %v962_v24  ;;  %v353_v20 = vadd.f32 %v821_v18, %v962_v24  ;;  %v280_v21 = vpop.f32.mrb[9].mxu0  ;;  %v344_v22 = vpop.f32.mrb[9].mxu1 }
 0x107   :  { %741 = vst [vmem:[%s1047_s3 + $0x10] sm:$0xff] %v673_v15   ;;  %749 = vst [vmem:[%s1047_s3 + $0x50] sm:$0xff] %v713_v16   ;;  %v281_v23 = vadd.f32 %v962_v24, %v280_v21  ;;  %v345_v25 = vadd.f32 %v962_v24, %v344_v22  ;;  %v806_v26 = vpop.f32.mrb[10].mxu0  ;;  %v822_v27 = vpop.f32.mrb[10].mxu1 }
 0x108   :  { %v292_v28 = vadd.f32 %v806_v26, %v962_v24  ;;  %v356_v29 = vadd.f32 %v822_v27, %v962_v24  ;;  %v283_v30 = vpop.f32.mrb[11].mxu0  ;;  %v347_v31 = vpop.f32.mrb[11].mxu1  ;;  %v385_v34 = vmax.f32 %v289_v19, 0.0  ;;  %v401_v35 = vmax.f32 %v353_v20, 0.0 }
 0x109   :  { %v284_v32 = vadd.f32 %v962_v24, %v283_v30  ;;  %v348_v33 = vadd.f32 %v962_v24, %v347_v31  ;;  %v383_v38 = vmax.f32 %v281_v23, 0.0  ;;  %v399_v39 = vmax.f32 %v345_v25, 0.0 }
 0x10a   :  { %v386_v36 = vmax.f32 %v292_v28, 0.0  ;;  %v402_v37 = vmax.f32 %v356_v29, 0.0 }
 0x10b   :  { %v384_v40 = vmax.f32 %v284_v32, 0.0  ;;  %v400_v41 = vmax.f32 %v348_v33, 0.0 }
 0x10c   :  { %v688_v42 = vpack.c.bf16 %v386_v36, %v385_v34  ;;  %v728_v43 = vpack.c.bf16 %v402_v37, %v401_v35 }
 0x10d   :  { %v683_v44 = vpack.c.bf16 %v384_v40, %v383_v38  ;;  %v723_v45 = vpack.c.bf16 %v400_v41, %v399_v39  ;;  %v809_v46 = vpop.f32.mrb[12].mxu0  ;;  %v825_v47 = vpop.f32.mrb[12].mxu1 }
 0x10e   :  { %744 = vst [vmem:[%s1047_s3 + $0x28] sm:$0xff] %v688_v42   ;;  %752 = vst [vmem:[%s1047_s3 + $0x68] sm:$0xff] %v728_v43   ;;  %v305_v48 = vadd.f32 %v809_v46, %v962_v24  ;;  %v369_v49 = vadd.f32 %v825_v47, %v962_v24  ;;  %v296_v50 = vpop.f32.mrb[13].mxu0  ;;  %v360_v51 = vpop.f32.mrb[13].mxu1 }
 0x10f   :  { %743 = vst [vmem:[%s1047_s3 + $0x20] sm:$0xff] %v683_v44   ;;  %751 = vst [vmem:[%s1047_s3 + $0x60] sm:$0xff] %v723_v45   ;;  %v297_v52 = vadd.f32 %v962_v24, %v296_v50  ;;  %v361_v53 = vadd.f32 %v962_v24, %v360_v51  ;;  %v810_v54 = vpop.f32.mrb[14].mxu0  ;;  %v826_v55 = vpop.f32.mrb[14].mxu1 }
 0x110   :  { %v308_v56 = vadd.f32 %v810_v54, %v962_v24  ;;  %v372_v57 = vadd.f32 %v826_v55, %v962_v24  ;;  %v299_v58 = vpop.f32.mrb[15].mxu0  ;;  %v363_v59 = vpop.f32.mrb[15].mxu1  ;;  %v389_v62 = vmax.f32 %v305_v48, 0.0  ;;  %v405_v63 = vmax.f32 %v369_v49, 0.0 }
 0x111   :  { %v300_v60 = vadd.f32 %v962_v24, %v299_v58  ;;  %v364_v61 = vadd.f32 %v962_v24, %v363_v59  ;;  %v387_v2 = vmax.f32 %v297_v52, 0.0  ;;  %v403_v3 = vmax.f32 %v361_v53, 0.0 }
 0x112   :  { %v390_v0 = vmax.f32 %v308_v56, 0.0  ;;  %v406_v1 = vmax.f32 %v372_v57, 0.0 }
 0x113   :  { %v388_v4 = vmax.f32 %v300_v60, 0.0  ;;  %v404_v5 = vmax.f32 %v364_v61, 0.0 }
 0x114   :  { %v698_v6 = vpack.c.bf16 %v390_v0, %v389_v62  ;;  %v738_v7 = vpack.c.bf16 %v406_v1, %v405_v63 }
 0x115   :  { %v693_v8 = vpack.c.bf16 %v388_v4, %v387_v2  ;;  %v733_v9 = vpack.c.bf16 %v404_v5, %v403_v3 }
 0x116   :  { %746 = vst [vmem:[%s1047_s3 + $0x38] sm:$0xff] %v698_v6   ;;  %754 = vst [vmem:[%s1047_s3 + $0x78] sm:$0xff] %v738_v7  }
 0x117   :  { %745 = vst [vmem:[%s1047_s3 + $0x30] sm:$0xff] %v693_v8   ;;  %753 = vst [vmem:[%s1047_s3 + $0x70] sm:$0xff] %v733_v9  }

// kernel: sage_forward.7
= control target key start
LH: loop header
LB: loop body
LE: loop exit
PB: predicated region body
PF: predicated region fallthrough
CT: control target
= control target key end

     0   :  { %s3696_s0 = inlined_call_operand.vmem [shape: s32[2,1], index: 0, kind: input, shape index: {}]   ;;  %s3697_s1 = inlined_call_operand.vmem [shape: bf16[256,256], index: 1, kind: input, shape index: {}]   ;;  %s3698_s2 = inlined_call_operand.vmem [shape: bf16[256,128], index: 2, kind: input, shape index: {}]   ;;  %s3699_s3 = inlined_call_operand.vmem [shape: bf16[256,128], index: 3, kind: input, shape index: {}]   ;;  %s3700_s4 = inlined_call_operand.vmem [shape: bf16[128,128], index: 4, kind: input, shape index: {}]   ;;  %s3701_s5 = inlined_call_operand.vmem [shape: bf16[128,128], index: 5, kind: input, shape index: {}]   ;;  %s3702_s6 = inlined_call_operand.vmem [shape: f32[1,128], index: 6, kind: input, shape index: {}]   ;;  %s3703_s7 = inlined_call_operand.vmem [shape: f32[256,128], index: 7, kind: output, shape index: {}]  }
   0x1   :  { %s12_s26 = sshll.u32 %s3696_s0, 4  ;;  %s13_s26 = int_to_ptr.vmem [resolvable:$true] %s12_s26 }
   0x2   :  { %s2539_s27 = scalar_lea.vmem %s13_s26, 32  ;;  %p2544_p1 = scmp.lt.s32.totalorder %s13_s26, %s13_s26 }
   0x3   :  { %p2540_p0 = scmp.ne.s32.totalorder %s13_s26, %s2539_s27  ;;  %p2545_p2 = scmp.lt.s32.totalorder %s2539_s27, %s2539_s27 }
   0x5   :  { %p2546_p3 = por %p2545_p2, %p2544_p1 }
   0x7   :  { %p2547_p4 = pnand %p2546_p3, %p2540_p0 }
   0x9   :  { %2550 = shalt.err (!%p2547_p4)  }
   0xa   :  { %s2665_s28 = smov [#allocation4]  }
   0xb   :  { %15 = dma.vmem_to_smem %s13_s26, 32, %s2665_s28, [#allocation3] }
   0xc   :  { %2607 = dma.done.wait [#allocation3], 32 }
   0xd   :  { %2608 = vsyncadd [#allocation3], 4294967264 }
   0xe   :  { %17 = sfence }
   0xf   :  { %s2726_s29 = smov 0   ;;  %s2728_s30 = smov 0  }
  0x10   :  { %s2730_s8 = smov 0   ;;  %s2732_s0 = smov 0  }
  0x11   :  { %s2734_s9 = smov 0  }
  0x12 LB: > { %s35_s10 = sadd.s32 1, %s2623_s0  ;;  %p51_p6 = scmp.ne.s32.totalorder %s2615_s30, %s2611_s29  ;;  %s2627_s9 = sphi %s2734_s9, %s23_s9   ;;  %s2623_s0 = sphi %s2732_s0, %s3761_s0   ;;  %s2619_s8 = sphi %s2730_s8, %s3760_s8   ;;  %s2615_s30 = sphi %s2728_s30, %s3759_s30   ;;  %s2611_s29 = sphi %s2726_s29, %s3758_s29  }
  0x13   : > { %p37_p5 = scmp.ge.s32.totalorder %s35_s10, 2  ;;  %p52_p7 = scmp.eq.s32.totalorder %s2627_s9, 0 }
  0x14   : > { %s44_s12 = sadd.s32 1, %s2615_s30  ;;  %p2132_p10 = scmp.ge.s32.totalorder %s2627_s9, 2 }
  0x15   : > { %s3763_s10 = smov (%p37_p5, %s35_s10), 0  ;;  %p53_p8 = por %p52_p7, %p51_p6 }
  0x16   : > { %s40_s11 = ssub.s32 %s2623_s0, %s3763_s10  ;;  %236 = sbr.rel (%p2132_p10) target bundleno = 54 (0x36), region = 32 }
  0x17   : > { %p42_p9 = scmp.eq.s32.totalorder %s40_s11, 0 }
  0x19   : > { %s2761_s13 = scalar_select %p42_p9, %s2615_s30, %s44_s12  }
  0x1d   : > { %239 = sbr.rel (!%p53_p8) target bundleno = 54 (0x36), region = 36  ;;  %s241_s14 = sand.u32 (%p53_p8), 1, %s2615_s30  }
  0x1e   : > { %s2134_s15 = sshll.u32 (%p53_p8), %s2623_s0, 2  ;;  %s2133_s16 = sshll.u32 (%p53_p8), %s241_s14, 7 }
  0x1f   : > { %s2769_s19 = scalar_lea.vmem (%p53_p8), %s3697_s1, %s2134_s15  ;;  %s2773_s20 = scalar_lea.vmem (%p53_p8), [#allocation5], %s2133_s16 }
  0x20   : > { %v264_v0 = vld [vmem:[%s2769_s19] sm:$0xf] (%p53_p8)  ;;  %v266_v1 = vld [vmem:[%s2769_s19 + $0x8] sm:$0xf] (%p53_p8)  ;;  %v268_v2 = vld [vmem:[%s2769_s19 + $0x10] sm:$0xf] (%p53_p8) }
  0x21   : > { %265 = vst [vmem:[%s2773_s20] sm:$0xf] (%p53_p8), %v264_v0  ;;  %267 = vst [vmem:[%s2773_s20 + $0x4] sm:$0xf] (%p53_p8), %v266_v1  ;;  %v270_v3 = vld [vmem:[%s2769_s19 + $0x18] sm:$0xf] (%p53_p8) }
  0x22   : > { %v272_v4 = vld [vmem:[%s2769_s19 + $0x20] sm:$0xf] (%p53_p8)  ;;  %269 = vst [vmem:[%s2773_s20 + $0x8] sm:$0xf] (%p53_p8), %v268_v2  ;;  %271 = vst [vmem:[%s2773_s20 + $0xc] sm:$0xf] (%p53_p8), %v270_v3 }
  0x23   : > { %273 = vst [vmem:[%s2773_s20 + $0x10] sm:$0xf] (%p53_p8), %v272_v4  ;;  %v274_v5 = vld [vmem:[%s2769_s19 + $0x28] sm:$0xf] (%p53_p8)  ;;  %v276_v6 = vld [vmem:[%s2769_s19 + $0x30] sm:$0xf] (%p53_p8) }
  0x24   : > { %v278_v7 = vld [vmem:[%s2769_s19 + $0x38] sm:$0xf]  ;;  %275 = vst [vmem:[%s2773_s20 + $0x14] sm:$0xf] %v274_v5  ;;  %277 = vst [vmem:[%s2773_s20 + $0x18] sm:$0xf] %v276_v6 }
  0x25   : > { %279 = vst [vmem:[%s2773_s20 + $0x1c] sm:$0xf] %v278_v7  ;;  %v280_v8 = vld [vmem:[%s2769_s19 + $0x40] sm:$0xf]  ;;  %v282_v9 = vld [vmem:[%s2769_s19 + $0x48] sm:$0xf] }
  0x26   : > { %v284_v10 = vld [vmem:[%s2769_s19 + $0x50] sm:$0xf]  ;;  %281 = vst [vmem:[%s2773_s20 + $0x20] sm:$0xf] %v280_v8  ;;  %283 = vst [vmem:[%s2773_s20 + $0x24] sm:$0xf] %v282_v9 }
  0x27   : > { %285 = vst [vmem:[%s2773_s20 + $0x28] sm:$0xf] %v284_v10  ;;  %v286_v11 = vld [vmem:[%s2769_s19 + $0x58] sm:$0xf]  ;;  %v288_v12 = vld [vmem:[%s2769_s19 + $0x60] sm:$0xf] }
  0x28   : > { %v290_v13 = vld [vmem:[%s2769_s19 + $0x68] sm:$0xf]  ;;  %287 = vst [vmem:[%s2773_s20 + $0x2c] sm:$0xf] %v286_v11  ;;  %289 = vst [vmem:[%s2773_s20 + $0x30] sm:$0xf] %v288_v12 }
  0x29   : > { %291 = vst [vmem:[%s2773_s20 + $0x34] sm:$0xf] %v290_v13  ;;  %v292_v14 = vld [vmem:[%s2769_s19 + $0x70] sm:$0xf]  ;;  %v294_v15 = vld [vmem:[%s2769_s19 + $0x78] sm:$0xf] }
  0x2a   : > { %v296_v16 = vld [vmem:[%s2769_s19 + $0x80] sm:$0xf]  ;;  %293 = vst [vmem:[%s2773_s20 + $0x38] sm:$0xf] %v292_v14  ;;  %295 = vst [vmem:[%s2773_s20 + $0x3c] sm:$0xf] %v294_v15 }
  0x2b   : > { %297 = vst [vmem:[%s2773_s20 + $0x40] sm:$0xf] %v296_v16  ;;  %v298_v17 = vld [vmem:[%s2769_s19 + $0x88] sm:$0xf]  ;;  %v300_v18 = vld [vmem:[%s2769_s19 + $0x90] sm:$0xf] }
  0x2c   : > { %v302_v19 = vld [vmem:[%s2769_s19 + $0x98] sm:$0xf]  ;;  %299 = vst [vmem:[%s2773_s20 + $0x44] sm:$0xf] %v298_v17  ;;  %301 = vst [vmem:[%s2773_s20 + $0x48] sm:$0xf] %v300_v18 }
  0x2d   : > { %303 = vst [vmem:[%s2773_s20 + $0x4c] sm:$0xf] %v302_v19  ;;  %v304_v20 = vld [vmem:[%s2769_s19 + $0xa0] sm:$0xf]  ;;  %v306_v21 = vld [vmem:[%s2769_s19 + $0xa8] sm:$0xf] }
  0x2e   : > { %v308_v22 = vld [vmem:[%s2769_s19 + $0xb0] sm:$0xf]  ;;  %305 = vst [vmem:[%s2773_s20 + $0x50] sm:$0xf] %v304_v20  ;;  %307 = vst [vmem:[%s2773_s20 + $0x54] sm:$0xf] %v306_v21 }
  0x2f   : > { %309 = vst [vmem:[%s2773_s20 + $0x58] sm:$0xf] %v308_v22  ;;  %v310_v23 = vld [vmem:[%s2769_s19 + $0xb8] sm:$0xf]  ;;  %v312_v24 = vld [vmem:[%s2769_s19 + $0xc0] sm:$0xf] }
  0x30   : > { %v314_v25 = vld [vmem:[%s2769_s19 + $0xc8] sm:$0xf]  ;;  %311 = vst [vmem:[%s2773_s20 + $0x5c] sm:$0xf] %v310_v23  ;;  %313 = vst [vmem:[%s2773_s20 + $0x60] sm:$0xf] %v312_v24 }
  0x31   : > { %315 = vst [vmem:[%s2773_s20 + $0x64] sm:$0xf] %v314_v25  ;;  %v316_v26 = vld [vmem:[%s2769_s19 + $0xd0] sm:$0xf]  ;;  %v318_v27 = vld [vmem:[%s2769_s19 + $0xd8] sm:$0xf] }
  0x32   : > { %v320_v28 = vld [vmem:[%s2769_s19 + $0xe0] sm:$0xf]  ;;  %317 = vst [vmem:[%s2773_s20 + $0x68] sm:$0xf] %v316_v26  ;;  %319 = vst [vmem:[%s2773_s20 + $0x6c] sm:$0xf] %v318_v27 }
  0x33   : > { %321 = vst [vmem:[%s2773_s20 + $0x70] sm:$0xf] %v320_v28  ;;  %v322_v29 = vld [vmem:[%s2769_s19 + $0xe8] sm:$0xf]  ;;  %v324_v30 = vld [vmem:[%s2769_s19 + $0xf0] sm:$0xf] }
  0x34   : > { %v326_v31 = vld [vmem:[%s2769_s19 + $0xf8] sm:$0xf]  ;;  %323 = vst [vmem:[%s2773_s20 + $0x74] sm:$0xf] %v322_v29  ;;  %325 = vst [vmem:[%s2773_s20 + $0x78] sm:$0xf] %v324_v30 }
  0x35   : > { %327 = vst [vmem:[%s2773_s20 + $0x7c] sm:$0xf] %v326_v31 }
  0x36 PF: > { %p2135_p11 = scmp.ge.s32.totalorder %s2627_s9, 1  ;;  %p422_p12 = scmp.lt.s32.totalorder %s2627_s9, 3 }
  0x38   : > { %p423_p13 = pnand %p2135_p11, %p422_p12 }
  0x39   : > { %s429_s21 = sand.u32 (!%p423_p13), 1, %s2611_s29   ;;  %s2137_s22 = sshll.u32 (!%p423_p13), %s2619_s8, 4  ;;  %v2666_v32 = vmov (!%p423_p13), 0  }
  0x3a   : > { %426 = sbr.rel (%p423_p13) target bundleno = 1170 (0x492), region = 81  ;;  %s2841_s23 = sshll.u32 (!%p423_p13), %s429_s21, 7  ;;  %492 = vst [vmem:[#allocation2] sm:$0xff] (!%p423_p13), %v2666_v32  ;;  %493 = vst [vmem:[#allocation2 + $0x8] sm:$0xff] (!%p423_p13), %v2666_v32 }
  0x3b   : > { %p476_p0 = scmp.lt.s32.totalorder (!%p423_p13), %s2137_s22, 31  ;;  %494 = vst [vmem:[#allocation2 + $0x10] sm:$0xff] (!%p423_p13), %v2666_v32  ;;  %495 = vst [vmem:[#allocation2 + $0x18] sm:$0xff] (!%p423_p13), %v2666_v32  ;;  %s2141_s24 = sshll.u32 (!%p423_p13), %s2619_s8, 7 }
  0x3c   : > { %496 = vst [vmem:[#allocation2 + $0x20] sm:$0xff] (!%p423_p13), %v2666_v32  ;;  %497 = vst [vmem:[#allocation2 + $0x28] sm:$0xff] (!%p423_p13), %v2666_v32  ;;  %s507_s25 = sld [smem:[#allocation4 + %s2141_s24]] (!%p423_p13)  ;;  %s431_s16 = scalar_lea.vmem (!%p423_p13), [#allocation5], %s2841_s23 }
  0x3d   : > { %498 = vst [vmem:[#allocation2 + $0x30] sm:$0xff] (!%p423_p13), %v2666_v32  ;;  %499 = vst [vmem:[#allocation2 + $0x38] sm:$0xff] (!%p423_p13), %v2666_v32 }
  0x41   : > { %s3765_s22 = smov (!%p476_p0, %s2137_s22), 31 }
  0x42   : > { %s2138_s26 = sshll.u32 %s3765_s22, 2  ;;  %s2140_s27 = sshll.u32 %s3765_s22, 3 }
  0x43   : > { %s2847_s11 = scalar_lea.vmem %s3699_s3, %s2138_s26  ;;  %s2852_s15 = scalar_lea.vmem %s3703_s7, %s2140_s27 }
  0x44   : > { %p2142_p1 = scmp.le.s32.totalorder %s507_s25, 0 }
  0x45   : > { %v512_v33 = vld [vmem:[#allocation2] sm:$0xff] (!%p2142_p1)   ;;  %v513_v34 = vld [vmem:[#allocation2 + $0x8] sm:$0xff] (!%p2142_p1)   ;;  %v514_v35 = vld [vmem:[#allocation2 + $0x10] sm:$0xff] (!%p2142_p1)   ;;  %s2871_s8 = smov (!%p2142_p1), 0  }
  0x46   : > { %511 = sbr.rel (%p2142_p1) target bundleno = 727 (0x2d7), region = 93  ;;  %v515_v36 = vld [vmem:[#allocation2 + $0x18] sm:$0xff] (!%p2142_p1)   ;;  %v516_v37 = vld [vmem:[#allocation2 + $0x20] sm:$0xff] (!%p2142_p1)   ;;  %v517_v38 = vld [vmem:[#allocation2 + $0x28] sm:$0xff] (!%p2142_p1)  }
  0x47   : > { %v518_v39 = vld [vmem:[#allocation2 + $0x30] sm:$0xff] (!%p2142_p1)   ;;  %v519_v40 = vld [vmem:[#allocation2 + $0x38] sm:$0xff] (!%p2142_p1)  }
  0x4d LB: >> { %s2143_s17 = sshll.u32 %s2663_s8, 4  ;;  %v2667_v44 = vmov 0   ;;  %v2668_v49 = vmov 1   ;;  %v2669_v51 = vmov 2   ;;  %v2670_v55 = vmov 3   ;;  %s525_s8 = sadd.s32 1, %s2663_s8   ;;  %s2663_s8 = sphi %s2871_s8, %s525_s8   ;;  %v2659_v33 = vphi %v512_v33, %v3757_v33   ;;  %v2655_v34 = vphi %v513_v34, %v3756_v34   ;;  %v2651_v35 = vphi %v514_v35, %v3755_v35   ;;  %v2647_v36 = vphi %v515_v36, %v3754_v36   ;;  %v2643_v37 = vphi %v516_v37, %v3753_v37   ;;  %v2639_v38 = vphi %v517_v38, %v3752_v38   ;;  %v2635_v39 = vphi %v518_v39, %v3751_v39   ;;  %v2631_v40 = vphi %v519_v40, %v3750_v40  }
  0x4e   : >> { %s2901_s18 = sshra.s32 %s2143_s17, 3  ;;  %2420 = vset.pattern.permute.xlu1 %v2667_v44  ;;  %v2671_v57 = vmov 4   ;;  %v2672_v58 = vmov 5   ;;  %v2673_v10 = vmov 6   ;;  %v2674_v11 = vmov 7   ;;  %p522_p2 = scmp.ge.s32.totalorder %s525_s8, 16  }
  0x4f   : >> { %s2144_s19 = sshll.u32 %s2901_s18, 2  ;;  %v2675_v12 = vmov 8   ;;  %v3710_v13 = vmov 9   ;;  %v3709_v15 = vmov 10   ;;  %v3708_v19 = vmov 11  }
  0x50   : >> { %s538_s20 = scalar_lea.vmem %s431_s16, %s2144_s19 [#allocation5]  ;;  %v3707_v26 = vmov 12   ;;  %v630_v29 = vlaneseq  ;;  %s3060_s24 = scalar_lea.vmem %s3698_s2, %s2144_s19 }
  0x51   : >> { %v2174_v41 = vld [vmem:[%s538_s20] sm:$0xff]  }
  0x52   : >> { %v2175_v42 = vunpack.c.l.bf16 %v2174_v41  ;;  %v2176_v43 = vunpack.c.h.bf16 %v2174_v41  ;;  %v631_v32 = vshrl.u32 %v630_v29, 7  ;;  %v585_v41 = vld [vmem:[%s3060_s24] sm:$0xf]  ;;  %v3705_v29 = vmov 14  }
  0x54   : >> { %543 = vxpose.xlu0.b32.start [1/2] (short) %v2175_v42, 128 }
  0x58   : >> { %544 = vxpose.xlu0.b32.end [2/2] (short) %v2176_v43, 128  ;;  %v682_v43 = vshrl.u32 %v585_v41, 16 }
  0x81   : >> { %2429 = vset.pattern.permute.xlu0 %v2667_v44 }
  0xd4   : >> { %v559_v45 = vpop.trf.xlu0 }
  0xd8   : >> { %v560_v46 = vpop.trf.xlu0 }
  0xd9   : >> { %v2910_v47 = vpack.c.bf16 %v560_v46, %v559_v45  ;;  %v628_v45 = vpack.i.b16 %v585_v41, %v585_v41  ;;  %v3071_v46 = vsub.s32 0, %v631_v32  ;;  %v3127_v41 = vsub.s32 3, %v631_v32 }
  0xdb   : >> { %589 = vperm.xlu1 %2420, %v2910_v47   ;;  %3727 = vst [vmem:[#allocation11_spill] sm:$0xff] %v3071_v46 }
  0xdc   : >> { %v561_v48 = vpop.trf.xlu0 }
  0xdf   : >> { %2421 = vset.pattern.permute.xlu1 %v2668_v49 }
  0xe0   : >> { %651 = vperm.xlu1 %2421, %v2910_v47   ;;  %v562_v50 = vpop.trf.xlu0 }
  0xe1   : >> { %v2928_v61 = vpack.c.bf16 %v562_v50, %v561_v48 }
  0xe3   : >> { %3723 = vst [vmem:[#allocation7_spill] sm:$0xff] %v2928_v61 }
  0xe4   : >> { %2422 = vset.pattern.permute.xlu1 %v2669_v51  ;;  %v563_v52 = vpop.trf.xlu0 }
  0xe5   : >> { %706 = vperm.xlu1 %2422, %v2910_v47  }
  0xe8   : >> { %v564_v53 = vpop.trf.xlu0 }
  0xe9   : >> { %v2917_v54 = vpack.c.bf16 %v564_v53, %v563_v52  ;;  %2423 = vset.pattern.permute.xlu1 %v2670_v55  ;;  %v3082_v52 = vrot.slane %v628_v45, %v3071_v46  ;;  %v3084_v53 = vsub.s32 1, %v631_v32 }
  0xea   : >> { %758 = vperm.xlu1 %2423, %v2910_v47  }
  0xeb   : >> { %599 = vperm.xlu0 %2429, %v2917_v54   ;;  %3728 = vst [vmem:[#allocation12_spill] sm:$0xff] %v3084_v53 }
  0xec   : >> { %v565_v56 = vpop.trf.xlu0 }
  0xee   : >> { %2424 = vset.pattern.permute.xlu1 %v2671_v57 }
  0xef   : >> { %810 = vperm.xlu1 %2424, %v2910_v47   ;;  %2430 = vset.pattern.permute.xlu0 %v2672_v58 }
  0xf0   : >> { %862 = vperm.xlu0 %2430, %v2910_v47   ;;  %v566_v59 = vpop.trf.xlu0 }
  0xf1   : >> { %v2926_v60 = vpack.c.bf16 %v566_v59, %v565_v56 }
  0xf3   : >> { %2425 = vset.pattern.permute.xlu1 %v2667_v44 }
  0xf4   : >> { %594 = vperm.xlu1 %2425, %v2928_v61   ;;  %874 = vperm.xlu0 %2430, %v2926_v60   ;;  %v567_v62 = vpop.trf.xlu0 }
  0xf8   : >> { %2426 = vset.pattern.permute.xlu1 %v2668_v49  ;;  %2442 = vset.pattern.permute.xlu0 %v2671_v57  ;;  %v568_v63 = vpop.trf.xlu0 }
  0xf9   : >> { %v2935_v0 = vpack.c.bf16 %v568_v63, %v567_v62  ;;  %655 = vperm.xlu1 %2426, %v2928_v61   ;;  %814 = vperm.xlu0 %2442, %v2928_v61   ;;  %v3099_v62 = vrot.slane %v628_v45, %v3084_v53 }
  0xfb   : >> { %3724 = vst [vmem:[#allocation8_spill] sm:$0xff] %v2935_v0 }
  0xfc   : >> { %v569_v1 = vpop.trf.xlu0 }
  0xfd   : >> { %2427 = vset.pattern.permute.xlu1 %v2669_v51  ;;  %826 = vperm.xlu0 %2442, %v2935_v0  }
  0xfe   : >> { %710 = vperm.xlu1 %2427, %v2928_v61  }
 0x100   : >> { %v570_v2 = vpop.trf.xlu0 }
 0x101   : >> { %v2958_v9 = vpack.c.bf16 %v570_v2, %v569_v1 }
 0x102   : >> { %2428 = vset.pattern.permute.xlu1 %v2670_v55 }
 0x103   : >> { %762 = vperm.xlu1 %2428, %v2928_v61  }
 0x104   : >> { %v571_v3 = vpop.trf.xlu0 }
 0x107   : >> { %2431 = vset.pattern.permute.xlu1 %v2672_v58 }
 0x108   : >> { %866 = vperm.xlu1 %2431, %v2928_v61   ;;  %v572_v4 = vpop.trf.xlu0 }
 0x109   : >> { %v2946_v5 = vpack.c.bf16 %v572_v4, %v571_v3  ;;  %v3113_v4 = vsub.s32 2, %v631_v32  ;;  %v3143_v32 = vrot.slane %v628_v45, %v3127_v41 }
 0x10b   : >> { %3725 = vst [vmem:[#allocation9_spill] sm:$0xff] %v2946_v5  ;;  %834 = vperm.xlu0 %2442, %v2946_v5   ;;  %3729 = vst [vmem:[#allocation13_spill] sm:$0xff] %v3113_v4 }
 0x10c   : >> { %2432 = vset.pattern.permute.xlu1 %v2668_v49  ;;  %v573_v6 = vpop.trf.xlu0 }
 0x10d   : >> { %659 = vperm.xlu1 %2432, %v2917_v54  }
 0x10f   : >> { %2455 = vset.pattern.permute.xlu0 %v2670_v55 }
 0x110   : >> { %774 = vperm.xlu0 %2455, %v2935_v0   ;;  %v574_v7 = vpop.trf.xlu0 }
 0x111   : >> { %2433 = vset.pattern.permute.xlu1 %v2669_v51  ;;  %v2954_v8 = vpack.c.bf16 %v574_v7, %v573_v6 }
 0x112   : >> { %714 = vperm.xlu1 %2433, %v2917_v54  }
 0x114   : >> { %786 = vperm.xlu0 %2455, %v2954_v8  }
 0x116   : >> { %2434 = vset.pattern.permute.xlu1 %v2670_v55 }
 0x117   : >> { %766 = vperm.xlu1 %2434, %v2917_v54  }
 0x118   : >> { %2460 = vset.pattern.permute.xlu0 %v2672_v58 }
 0x119   : >> { %882 = vperm.xlu0 %2460, %v2958_v9  }
 0x11b   : >> { %2435 = vset.pattern.permute.xlu1 %v2671_v57 }
 0x11c   : >> { %818 = vperm.xlu1 %2435, %v2917_v54  }
 0x11d   : >> { %890 = vperm.xlu0 %2460, %v2954_v8  }
 0x120   : >> { %2436 = vset.pattern.permute.xlu1 %v2672_v58 }
 0x121   : >> { %870 = vperm.xlu1 %2436, %v2917_v54   ;;  %2464 = vset.pattern.permute.xlu0 %v2673_v10 }
 0x122   : >> { %918 = vperm.xlu0 %2464, %v2928_v61  }
 0x125   : >> { %2437 = vset.pattern.permute.xlu1 %v2667_v44 }
 0x126   : >> { %604 = vperm.xlu1 %2437, %v2926_v60   ;;  %930 = vperm.xlu0 %2464, %v2935_v0  }
 0x12a   : >> { %2438 = vset.pattern.permute.xlu1 %v2668_v49  ;;  %938 = vperm.xlu0 %2464, %v2946_v5  }
 0x12b   : >> { %663 = vperm.xlu1 %2438, %v2926_v60  }
 0x12e   : >> { %2465 = vset.pattern.permute.xlu0 %v2674_v11 }
 0x12f   : >> { %2439 = vset.pattern.permute.xlu1 %v2669_v51  ;;  %966 = vperm.xlu0 %2465, %v2910_v47  }
 0x130   : >> { %718 = vperm.xlu1 %2439, %v2926_v60  }
 0x133   : >> { %978 = vperm.xlu0 %2465, %v2926_v60  }
 0x134   : >> { %2440 = vset.pattern.permute.xlu1 %v2670_v55 }
 0x135   : >> { %770 = vperm.xlu1 %2440, %v2926_v60  }
 0x137   : >> { %986 = vperm.xlu0 %2465, %v2958_v9  }
 0x139   : >> { %2441 = vset.pattern.permute.xlu1 %v2671_v57 }
 0x13a   : >> { %822 = vperm.xlu1 %2441, %v2926_v60  }
 0x13b   : >> { %994 = vperm.xlu0 %2465, %v2954_v8  }
 0x13e   : >> { %2443 = vset.pattern.permute.xlu1 %v2667_v44 }
 0x13f   : >> { %609 = vperm.xlu1 %2443, %v2935_v0   ;;  %2468 = vset.pattern.permute.xlu0 %v2675_v12 }
 0x140   : >> { %1022 = vperm.xlu0 %2468, %v2928_v61  }
 0x143   : >> { %2444 = vset.pattern.permute.xlu1 %v2668_v49 }
 0x144   : >> { %667 = vperm.xlu1 %2444, %v2935_v0   ;;  %1034 = vperm.xlu0 %2468, %v2935_v0  }
 0x148   : >> { %2445 = vset.pattern.permute.xlu1 %v2669_v51  ;;  %1042 = vperm.xlu0 %2468, %v2946_v5  }
 0x149   : >> { %722 = vperm.xlu1 %2445, %v2935_v0  }
 0x14c   : >> { %2469 = vset.pattern.permute.xlu0 %v3710_v13 }
 0x14d   : >> { %2446 = vset.pattern.permute.xlu1 %v2667_v44  ;;  %1073 = vperm.xlu0 %2469, %v2910_v47  }
 0x14e   : >> { %614 = vperm.xlu1 %2446, %v2958_v9  }
 0x151   : >> { %1085 = vperm.xlu0 %2469, %v2926_v60  }
 0x152   : >> { %2447 = vset.pattern.permute.xlu1 %v2668_v49 }
 0x153   : >> { %671 = vperm.xlu1 %2447, %v2958_v9  }
 0x155   : >> { %1093 = vperm.xlu0 %2469, %v2958_v9  }
 0x157   : >> { %2448 = vset.pattern.permute.xlu1 %v2669_v51 }
 0x158   : >> { %726 = vperm.xlu1 %2448, %v2958_v9  }
 0x159   : >> { %1101 = vperm.xlu0 %2469, %v2954_v8  }
 0x15a   : >> { %v3009_v14 = vpop.permute.xlu1 %589 }
 0x15c   : >> { %2449 = vset.pattern.permute.xlu1 %v2670_v55 }
 0x15d   : >> { %778 = vperm.xlu1 %2449, %v2958_v9   ;;  %2472 = vset.pattern.permute.xlu0 %v3709_v15 }
 0x15e   : >> { %1132 = vperm.xlu0 %2472, %v2928_v61  }
 0x15f   : >> { %v3015_v16 = vpop.permute.xlu1 %651 }
 0x161   : >> { %2450 = vset.pattern.permute.xlu1 %v2671_v57 }
 0x162   : >> { %830 = vperm.xlu1 %2450, %v2958_v9   ;;  %1144 = vperm.xlu0 %2472, %v2935_v0  }
 0x164   : >> { %v3020_v17 = vpop.permute.xlu1 %706 }
 0x166   : >> { %2451 = vset.pattern.permute.xlu1 %v2667_v44  ;;  %1152 = vperm.xlu0 %2472, %v2946_v5  }
 0x167   : >> { %619 = vperm.xlu1 %2451, %v2946_v5  }
 0x169   : >> { %v3025_v18 = vpop.permute.xlu1 %758 }
 0x16a   : >> { %2473 = vset.pattern.permute.xlu0 %v3708_v19  ;;  %v3031_v20 = vpop.permute.xlu0 %599 }
 0x16b   : >> { %2452 = vset.pattern.permute.xlu1 %v2668_v49  ;;  %1180 = vperm.xlu0 %2473, %v2910_v47  }
 0x16c   : >> { %675 = vperm.xlu1 %2452, %v2946_v5  }
 0x16e   : >> { %v3033_v21 = vpop.permute.xlu1 %810 }
 0x16f   : >> { %1192 = vperm.xlu0 %2473, %v2926_v60   ;;  %v3039_v23 = vpop.permute.xlu0 %862 }
 0x170   : >> { %2453 = vset.pattern.permute.xlu1 %v2669_v51 }
 0x171   : >> { %730 = vperm.xlu1 %2453, %v2946_v5  }
 0x173   : >> { %v595_v22 = vpop.permute.xlu1 %594  ;;  %1200 = vperm.xlu0 %2473, %v2958_v9   ;;  %v3044_v25 = vpop.permute.xlu0 %874 }
 0x174   : >> { %3726 = vst [vmem:[#allocation10_spill] sm:$0xff] %v3044_v25  ;;  %v635_v56 = vmul.bf16 %v3082_v52, %v595_v22 }
 0x175   : >> { %2454 = vset.pattern.permute.xlu1 %v2670_v55 }
 0x176   : >> { %782 = vperm.xlu1 %2454, %v2946_v5   ;;  %v643_v2 = vmax.bf16 %v2655_v34, %v635_v56  ;;  %v3124_v34 = vrot.slane %v628_v45, %v3113_v4 }
 0x177   : >> { %1208 = vperm.xlu0 %2473, %v2954_v8  }
 0x178   : >> { %v656_v24 = vpop.permute.xlu1 %655  ;;  %v3051_v28 = vpop.permute.xlu0 %814 }
 0x17a   : >> { %2456 = vset.pattern.permute.xlu1 %v2672_v58 }
 0x17b   : >> { %878 = vperm.xlu1 %2456, %v2935_v0   ;;  %2476 = vset.pattern.permute.xlu0 %v3707_v26 }
 0x17c   : >> { %1236 = vperm.xlu0 %2476, %v2928_v61   ;;  %v3064_v31 = vpop.permute.xlu0 %826 }
 0x17d   : >> { %v711_v27 = vpop.permute.xlu1 %710 }
 0x17e   : >> { %v742_v3 = vmul.bf16 %v3099_v62, %v711_v27 }
 0x17f   : >> { %2457 = vset.pattern.permute.xlu1 %v2667_v44  ;;  %v3706_v44 = vmov 13  }
 0x180   : >> { %1248 = vperm.xlu0 %2476, %v2935_v0   ;;  %624 = vperm.xlu1 %2457, %v2954_v8  }
 0x182   : >> { %v763_v30 = vpop.permute.xlu1 %762 }
 0x184   : >> { %1256 = vperm.xlu0 %2476, %v2946_v5   ;;  %2458 = vset.pattern.permute.xlu1 %v2668_v49  ;;  %v3076_v49 = vpack.i.b16 %v682_v43, %v682_v43  ;;  %v846_v43 = vmul.bf16 %v3124_v34, %v3051_v28 }
 0x185   : >> { %679 = vperm.xlu1 %2458, %v2954_v8  }
 0x186   : >> { %v3092_v55 = vrot.slane %v3076_v49, %v3071_v46  ;;  %v3107_v1 = vrot.slane %v3076_v49, %v3084_v53 }
 0x187   : >> { %v867_v42 = vpop.permute.xlu1 %866 }
 0x188   : >> { %2477 = vset.pattern.permute.xlu0 %v3706_v44  ;;  %v690_v63 = vmul.bf16 %v3092_v55, %v656_v24  ;;  %v794_v7 = vmul.bf16 %v3107_v1, %v763_v30 }
 0x189   : >> { %1284 = vperm.xlu0 %2477, %v2910_v47   ;;  %2459 = vset.pattern.permute.xlu1 %v2669_v51 }
 0x18a   : >> { %734 = vperm.xlu1 %2459, %v2954_v8   ;;  %v3074_v48 = vpop.permute.xlu0 %834  ;;  %v698_v6 = vmax.bf16 %v690_v63, %v643_v2 }
 0x18c   : >> { %v3078_v50 = vpop.permute.xlu1 %659  ;;  %v750_v22 = vmax.bf16 %v742_v3, %v698_v6 }
 0x18d   : >> { %1296 = vperm.xlu0 %2477, %v2926_v60  }
 0x18e   : >> { %2461 = vset.pattern.permute.xlu1 %v2671_v57  ;;  %v802_v27 = vmax.bf16 %v794_v7, %v750_v22 }
 0x18f   : >> { %838 = vperm.xlu1 %2461, %v2954_v8   ;;  %v3088_v51 = vpop.permute.xlu0 %774 }
 0x190   : >> { %v854_v63 = vmax.bf16 %v846_v43, %v802_v27 }
 0x191   : >> { %v3095_v59 = vpop.permute.xlu1 %714  ;;  %1304 = vperm.xlu0 %2477, %v2958_v9  }
 0x193   : >> { %2462 = vset.pattern.permute.xlu1 %v2672_v58  ;;  %v3103_v57 = vpop.permute.xlu0 %786 }
 0x194   : >> { %886 = vperm.xlu1 %2462, %v2946_v5  }
 0x195   : >> { %1312 = vperm.xlu0 %2477, %v2954_v8  }
 0x196   : >> { %v3116_v58 = vpop.permute.xlu1 %766 }
 0x198   : >> { %2463 = vset.pattern.permute.xlu1 %v2673_v10  ;;  %v3119_v24 = vpop.permute.xlu0 %882  ;;  %v3133_v10 = vrot.slane %v3076_v49, %v3113_v4 }
 0x199   : >> { %3730 = vst [vmem:[#allocation14_spill] sm:$0xff] %v3119_v24  ;;  %2480 = vset.pattern.permute.xlu0 %v3705_v29  ;;  %914 = vperm.xlu1 %2463, %v2910_v47  }
 0x19a   : >> { %1340 = vperm.xlu0 %2480, %v2928_v61   ;;  %v898_v2 = vmul.bf16 %v3133_v10, %v867_v42  ;;  %v3704_v42 = vmov 15  }
 0x19b   : >> { %v3129_v30 = vpop.permute.xlu1 %818 }
 0x19c   : >> { %v3137_v56 = vpop.permute.xlu0 %890  ;;  %v906_v7 = vmax.bf16 %v898_v2, %v854_v63 }
 0x19d   : >> { %922 = vperm.xlu1 %2463, %v2917_v54  }
 0x19e   : >> { %1352 = vperm.xlu0 %2480, %v2935_v0  }
 0x1a0   : >> { %v3145_v3 = vpop.permute.xlu1 %870 }
 0x1a1   : >> { %926 = vperm.xlu1 %2463, %v2926_v60   ;;  %v919_v6 = vpop.permute.xlu0 %918 }
 0x1a2   : >> { %v950_v28 = vmul.bf16 %v3143_v32, %v919_v6  ;;  %1360 = vperm.xlu0 %2480, %v2946_v5  }
 0x1a4   : >> { %v3150_v22 = vmax.bf16 %v950_v28, %v906_v7 }
 0x1a5   : >> { %v3152_v27 = vpop.permute.xlu1 %604  ;;  %934 = vperm.xlu1 %2463, %v2958_v9  }
 0x1a6   : >> { %3731 = vst [vmem:[#allocation15_spill] sm:$0xff] %v3150_v22  ;;  %2481 = vset.pattern.permute.xlu0 %v3704_v42 }
 0x1a7   : >> { %1388 = vperm.xlu0 %2481, %v2910_v47  }
 0x1a9   : >> { %942 = vperm.xlu1 %2463, %v2954_v8  }
 0x1aa   : >> { %v3158_v45 = vpop.permute.xlu1 %663 }
 0x1ab   : >> { %1400 = vperm.xlu0 %2481, %v2926_v60  }
 0x1ad   : >> { %2466 = vset.pattern.permute.xlu1 %v2674_v11 }
 0x1ae   : >> { %970 = vperm.xlu1 %2466, %v2928_v61  }
 0x1af   : >> { %v3163_v43 = vpop.permute.xlu1 %718  ;;  %1408 = vperm.xlu0 %2481, %v2958_v9  }
 0x1b2   : >> { %974 = vperm.xlu1 %2466, %v2917_v54  }
 0x1b3   : >> { %1416 = vperm.xlu0 %2481, %v2954_v8  }
 0x1b4   : >> { %v3168_v63 = vpop.permute.xlu1 %770 }
 0x1b6   : >> { %982 = vperm.xlu1 %2466, %v2935_v0  }
 0x1b9   : >> { %v3171_v2 = vpop.permute.xlu1 %822 }
 0x1ba   : >> { %990 = vperm.xlu1 %2466, %v2946_v5  }
 0x1be   : >> { %v610_v6 = vpop.permute.xlu1 %609  ;;  %2467 = vset.pattern.permute.xlu1 %v2675_v12  ;;  %v797_v12 = vmul.bf16 %v3107_v1, %v3088_v51 }
 0x1bf   : >> { %1018 = vperm.xlu1 %2467, %v2910_v47   ;;  %v638_v11 = vmul.bf16 %v3082_v52, %v610_v6  ;;  %v849_v6 = vmul.bf16 %v3124_v34, %v3064_v31  ;;  %v3733_v31 = vmov 10  }
 0x1c1   : >> { %v646_v42 = vmax.bf16 %v2643_v37, %v638_v11 }
 0x1c3   : >> { %v668_v7 = vpop.permute.xlu1 %667  ;;  %1026 = vperm.xlu1 %2467, %v2917_v54  }
 0x1c4   : >> { %v693_v28 = vmul.bf16 %v3092_v55, %v668_v7 }
 0x1c6   : >> { %v701_v44 = vmax.bf16 %v693_v28, %v646_v42  ;;  %v3732_v42 = vmov 9   ;;  %v3734_v28 = vmov 11  }
 0x1c7   : >> { %1030 = vperm.xlu1 %2467, %v2926_v60  }
 0x1c8   : >> { %v723_v29 = vpop.permute.xlu1 %722 }
 0x1c9   : >> { %v745_v26 = vmul.bf16 %v3099_v62, %v723_v29 }
 0x1cb   : >> { %v753_v19 = vmax.bf16 %v745_v26, %v701_v44  ;;  %1038 = vperm.xlu1 %2467, %v2958_v9  }
 0x1cd   : >> { %v805_v15 = vmax.bf16 %v797_v12, %v753_v19  ;;  %v3187_v13 = vpop.permute.xlu1 %614  ;;  %v931_v12 = vpop.permute.xlu0 %930 }
 0x1cf   : >> { %1046 = vperm.xlu1 %2467, %v2954_v8   ;;  %v857_v37 = vmax.bf16 %v849_v6, %v805_v15 }
 0x1d1   : >> { %v3216_v46 = vpop.permute.xlu0 %938 }
 0x1d2   : >> { %v3190_v11 = vpop.permute.xlu1 %671 }
 0x1d3   : >> { %2470 = vset.pattern.permute.xlu1 %v3732_v42 }
 0x1d4   : >> { %1077 = vperm.xlu1 %2470, %v2928_v61  }
 0x1d5   : >> { %v3220_v25 = vpop.permute.xlu0 %966 }
 0x1d7   : >> { %v3194_v29 = vpop.permute.xlu1 %726 }
 0x1d8   : >> { %1081 = vperm.xlu1 %2470, %v2917_v54  }
 0x1dc   : >> { %v3197_v26 = vpop.permute.xlu1 %778  ;;  %1089 = vperm.xlu1 %2470, %v2935_v0  }
 0x1e0   : >> { %1097 = vperm.xlu1 %2470, %v2946_v5  }
 0x1e1   : >> { %v3201_v19 = vpop.permute.xlu1 %830 }
 0x1e4   : >> { %2471 = vset.pattern.permute.xlu1 %v3733_v31  ;;  %v953_v31 = vmul.bf16 %v3143_v32, %v931_v12 }
 0x1e5   : >> { %1128 = vperm.xlu1 %2471, %v2910_v47  }
 0x1e6   : >> { %v620_v15 = vpop.permute.xlu1 %619 }
 0x1e9   : >> { %1136 = vperm.xlu1 %2471, %v2917_v54  }
 0x1eb   : >> { %v676_v44 = vpop.permute.xlu1 %675 }
 0x1ed   : >> { %1140 = vperm.xlu1 %2471, %v2926_v60  }
 0x1f0   : >> { %v731_v51 = vpop.permute.xlu1 %730 }
 0x1f1   : >> { %1148 = vperm.xlu1 %2471, %v2958_v9  }
 0x1f5   : >> { %v783_v7 = vpop.permute.xlu1 %782  ;;  %1156 = vperm.xlu1 %2471, %v2954_v8  }
 0x1f9   : >> { %2474 = vset.pattern.permute.xlu1 %v3734_v28 }
 0x1fa   : >> { %v879_v6 = vpop.permute.xlu1 %878  ;;  %1184 = vperm.xlu1 %2474, %v2928_v61   ;;  %v640_v61 = vmul.bf16 %v3082_v52, %v620_v15 }
 0x1fb   : >> { %v901_v42 = vmul.bf16 %v3133_v10, %v879_v6 }
 0x1fd   : >> { %v909_v4 = vmax.bf16 %v901_v42, %v857_v37  ;;  %v634_v37 = vmul.bf16 %v3082_v52, %v3009_v14  ;;  %v689_v42 = vmul.bf16 %v3092_v55, %v3015_v16  ;;  %v741_v14 = vmul.bf16 %v3099_v62, %v3020_v17 }
 0x1fe   : >> { %1188 = vperm.xlu1 %2474, %v2917_v54  }
 0x1ff   : >> { %v625_v53 = vpop.permute.xlu1 %624  ;;  %v3214_v22 = vmax.bf16 %v953_v31, %v909_v4  ;;  %v695_v4 = vmul.bf16 %v3092_v55, %v676_v44  ;;  %v648_v31 = vmax.bf16 %v2635_v39, %v640_v61  ;;  %v800_v39 = vmul.bf16 %v3107_v1, %v3103_v57  ;;  %v3243_v61 = vpop.permute.xlu0 %978 }
 0x200   : >> { %v641_v28 = vmul.bf16 %v3082_v52, %v625_v53  ;;  %v799_v44 = vmul.bf16 %v3107_v1, %v783_v7  ;;  %v637_v7 = vmul.bf16 %v3082_v52, %v3152_v27  ;;  %v897_v27 = vmul.bf16 %v3133_v10, %v3039_v23 }
 0x201   : >> { %3735 = vst [vmem:[#allocation16_spill] sm:$0xff] %v3214_v22  ;;  %v747_v22 = vmul.bf16 %v3099_v62, %v731_v51  ;;  %v703_v16 = vmax.bf16 %v695_v4, %v648_v31  ;;  %v847_v23 = vmul.bf16 %v3124_v34, %v3129_v30 }
 0x202   : >> { %1196 = vperm.xlu1 %2474, %v2935_v0   ;;  %v649_v12 = vmax.bf16 %v2631_v40, %v641_v28  ;;  %v3736_v0 = vmov 12   ;;  %v636_v40 = vmul.bf16 %v3082_v52, %v3031_v20  ;;  %v691_v20 = vmul.bf16 %v3092_v55, %v3078_v50 }
 0x203   : >> { %v755_v28 = vmax.bf16 %v747_v22, %v703_v16  ;;  %v743_v22 = vmul.bf16 %v3099_v62, %v3095_v59  ;;  %v904_v50 = vmul.bf16 %v3133_v10, %v3137_v56  ;;  %v3265_v31 = vpop.permute.xlu0 %986  ;;  %v795_v59 = vmul.bf16 %v3107_v1, %v3116_v58 }
 0x204   : >> { %v680_v24 = vpop.permute.xlu1 %679  ;;  %v644_v4 = vmax.bf16 %v2651_v35, %v636_v40  ;;  %v692_v35 = vmul.bf16 %v3092_v55, %v3158_v45  ;;  %v639_v58 = vmul.bf16 %v3082_v52, %v3187_v13  ;;  %v899_v13 = vmul.bf16 %v3133_v10, %v3145_v3 }
 0x205   : >> { %v696_v6 = vmul.bf16 %v3092_v55, %v680_v24 }
 0x206   : >> { %1204 = vperm.xlu1 %2474, %v2946_v5   ;;  %v642_v5 = vmax.bf16 %v2659_v33, %v634_v37  ;;  %v793_v33 = vmul.bf16 %v3107_v1, %v3025_v18  ;;  %v845_v18 = vmul.bf16 %v3124_v34, %v3033_v21  ;;  %v699_v21 = vmax.bf16 %v691_v20, %v644_v4 }
 0x207   : >> { %v704_v15 = vmax.bf16 %v696_v6, %v649_v12  ;;  %v995_v30 = vpop.permute.xlu0 %994 }
 0x209   : >> { %v735_v53 = vpop.permute.xlu1 %734 }
 0x20a   : >> { %v748_v24 = vmul.bf16 %v3099_v62, %v735_v53  ;;  %2475 = vset.pattern.permute.xlu1 %v3736_v0  ;;  %v697_v0 = vmax.bf16 %v689_v42, %v642_v5  ;;  %v807_v5 = vmax.bf16 %v799_v44, %v755_v28  ;;  %v851_v53 = vmul.bf16 %v3124_v34, %v3074_v48 }
 0x20b   : >> { %1232 = vperm.xlu1 %2475, %v2910_v47   ;;  %v744_v48 = vmul.bf16 %v3099_v62, %v3163_v43  ;;  %v955_v44 = vmul.bf16 %v3143_v32, %v3216_v46  ;;  %v848_v46 = vmul.bf16 %v3124_v34, %v3171_v2  ;;  %v798_v2 = vmul.bf16 %v3107_v1, %v3197_v26 }
 0x20c   : >> { %v756_v51 = vmax.bf16 %v748_v24, %v704_v15  ;;  %v749_v57 = vmax.bf16 %v741_v14, %v697_v0  ;;  %v645_v24 = vmax.bf16 %v2647_v36, %v637_v7  ;;  %v859_v45 = vmax.bf16 %v851_v53, %v807_v5 }
 0x20d   : >> { %v796_v36 = vmul.bf16 %v3107_v1, %v3168_v63  ;;  %v3288_v0 = vrot.slane %v3076_v49, %v3127_v41  ;;  %v647_v49 = vmax.bf16 %v2639_v38, %v639_v58 }
 0x20e   : >> { %v839_v17 = vpop.permute.xlu1 %838  ;;  %v808_v6 = vmax.bf16 %v800_v39, %v756_v51  ;;  %v801_v42 = vmax.bf16 %v793_v33, %v749_v57  ;;  %v751_v39 = vmax.bf16 %v743_v22, %v699_v21  ;;  %v700_v16 = vmax.bf16 %v692_v35, %v645_v24  ;;  %v1023_v22 = vpop.permute.xlu0 %1022 }
 0x20f   : >> { %v852_v37 = vmul.bf16 %v3124_v34, %v839_v17  ;;  %1240 = vperm.xlu1 %2475, %v2917_v54   ;;  %v694_v33 = vmul.bf16 %v3092_v55, %v3190_v11  ;;  %v1001_v3 = vmul.bf16 %v3288_v0, %v3220_v25  ;;  %v3737_v25 = vld [vmem:[#allocation10_spill] sm:$0xff] }
 0x210   : >> { %v853_v40 = vmax.bf16 %v845_v18, %v801_v42  ;;  %v803_v43 = vmax.bf16 %v795_v59, %v751_v39  ;;  %v752_v52 = vmax.bf16 %v744_v48, %v700_v16  ;;  %v3739_v42 = vld [vmem:[#allocation7_spill] sm:$0xff]  ;;  %v1004_v59 = vmul.bf16 %v3288_v0, %v3243_v61 }
 0x211   : >> { %v860_v12 = vmax.bf16 %v852_v37, %v808_v6  ;;  %v746_v6 = vmul.bf16 %v3099_v62, %v3194_v29  ;;  %v702_v37 = vmax.bf16 %v694_v33, %v647_v49  ;;  %v850_v62 = vmul.bf16 %v3124_v34, %v3201_v19  ;;  %v3740_v19 = vld [vmem:[#allocation14_spill] sm:$0xff] }
 0x212   : >> { %v905_v17 = vmax.bf16 %v897_v27, %v853_v40  ;;  %v855_v11 = vmax.bf16 %v847_v23, %v803_v43  ;;  %v804_v20 = vmax.bf16 %v796_v36, %v752_v52  ;;  %v902_v21 = vmul.bf16 %v3133_v10, %v3740_v19  ;;  %v1035_v24 = vpop.permute.xlu0 %1034 }
 0x213   : >> { %1244 = vperm.xlu1 %2475, %v2926_v60   ;;  %v887_v56 = vpop.permute.xlu1 %886  ;;  %v3272_v15 = vmax.bf16 %v904_v50, %v860_v12  ;;  %v754_v5 = vmax.bf16 %v746_v6, %v702_v37  ;;  %v900_v50 = vmul.bf16 %v3133_v10, %v3737_v25  ;;  %v3738_v12 = vmov 13  }
 0x214   : >> { %v903_v14 = vmul.bf16 %v3133_v10, %v887_v56  ;;  %v907_v4 = vmax.bf16 %v899_v13, %v855_v11  ;;  %v856_v7 = vmax.bf16 %v848_v46, %v804_v20  ;;  %v1006_v23 = vmul.bf16 %v3288_v0, %v3265_v31  ;;  %v3741_v10 = vld [vmem:[#allocation8_spill] sm:$0xff]  ;;  %v3742_v13 = vld [vmem:[#allocation11_spill] sm:$0xff]  ;;  %v3743_v46 = vld [vmem:[#allocation9_spill] sm:$0xff] }
 0x215   : >> { %v806_v1 = vmax.bf16 %v798_v2, %v754_v5  ;;  %v1008_v43 = vmul.bf16 %v3288_v0, %v995_v30 }
 0x216   : >> { %v911_v51 = vmax.bf16 %v903_v14, %v859_v45  ;;  %v908_v27 = vmax.bf16 %v900_v50, %v856_v7  ;;  %v586_v45 = vld [vmem:[%s3060_s24 + $0x4] sm:$0xf] }
 0x217   : >> { %1252 = vperm.xlu1 %2475, %v2958_v9   ;;  %v858_v35 = vmax.bf16 %v850_v62, %v806_v1  ;;  %v3327_v16 = vpack.i.b16 %v586_v45, %v586_v45  ;;  %v1104_v37 = vshrl.u32 %v586_v45, 16 }
 0x218   : >> { %v915_v63 = vpop.permute.xlu1 %914  ;;  %v3297_v28 = vmax.bf16 %v955_v44, %v911_v51  ;;  %v1043_v51 = vpop.permute.xlu0 %1042 }
 0x219   : >> { %v949_v55 = vmul.bf16 %v3143_v32, %v915_v63  ;;  %v910_v14 = vmax.bf16 %v902_v21, %v858_v35  ;;  %v1055_v52 = vrot.slane %v3327_v16, %v3742_v13  ;;  %v3344_v62 = vpack.i.b16 %v1104_v37, %v1104_v37 }
 0x21b   : >> { %v957_v57 = vmax.bf16 %v949_v55, %v905_v17  ;;  %1260 = vperm.xlu1 %2475, %v2954_v8   ;;  %v1057_v49 = vmul.bf16 %v1055_v52, %v1023_v22  ;;  %v3744_v55 = vld [vmem:[#allocation15_spill] sm:$0xff]  ;;  %v1060_v7 = vmul.bf16 %v1055_v52, %v1035_v24  ;;  %v1062_v25 = vmul.bf16 %v1055_v52, %v1043_v51 }
 0x21c   : >> { %v923_v38 = vpop.permute.xlu1 %922  ;;  %v1074_v6 = vpop.permute.xlu0 %1073 }
 0x21d   : >> { %v951_v29 = vmul.bf16 %v3143_v32, %v923_v38  ;;  %v3311_v18 = vmax.bf16 %v1001_v3, %v957_v57  ;;  %v3746_v38 = vld [vmem:[#allocation16_spill] sm:$0xff] }
 0x21f   : >> { %v959_v26 = vmax.bf16 %v951_v29, %v907_v4  ;;  %2478 = vset.pattern.permute.xlu1 %v3738_v12 }
 0x220   : >> { %1288 = vperm.xlu1 %2478, %v3739_v42   ;;  %v927_v53 = vpop.permute.xlu1 %926  ;;  %v1086_v57 = vpop.permute.xlu0 %1085 }
 0x221   : >> { %v952_v34 = vmul.bf16 %v3143_v32, %v927_v53 }
 0x223   : >> { %v960_v56 = vmax.bf16 %v952_v34, %v908_v27 }
 0x224   : >> { %1292 = vperm.xlu1 %2478, %v2917_v54   ;;  %v935_v48 = vpop.permute.xlu1 %934  ;;  %v1094_v50 = vpop.permute.xlu0 %1093 }
 0x225   : >> { %v954_v40 = vmul.bf16 %v3143_v32, %v935_v48  ;;  %v1012_v39 = vmax.bf16 %v1004_v59, %v960_v56  ;;  %v3747_v56 = vmov 15  }
 0x227   : >> { %v962_v58 = vmax.bf16 %v954_v40, %v910_v14 }
 0x228   : >> { %1300 = vperm.xlu1 %2478, %v3741_v10   ;;  %v943_v44 = vpop.permute.xlu1 %942 }
 0x229   : >> { %v956_v61 = vmul.bf16 %v3143_v32, %v943_v44  ;;  %v1014_v36 = vmax.bf16 %v1006_v23, %v962_v58  ;;  %v3745_v32 = vmov 14  }
 0x22b   : >> { %v964_v33 = vmax.bf16 %v956_v61, %v3272_v15 }
 0x22c   : >> { %1308 = vperm.xlu1 %2478, %v3743_v46  }
 0x22d   : >> { %v971_v31 = vpop.permute.xlu1 %970  ;;  %v1016_v63 = vmax.bf16 %v1008_v43, %v964_v33  ;;  %v3748_v33 = vld [vmem:[#allocation12_spill] sm:$0xff] }
 0x22e   : >> { %v1002_v17 = vmul.bf16 %v3288_v0, %v971_v31 }
 0x230   : >> { %v1010_v11 = vmax.bf16 %v1002_v17, %v3744_v55  ;;  %2479 = vset.pattern.permute.xlu1 %v3745_v32 }
 0x231   : >> { %1336 = vperm.xlu1 %2479, %v2910_v47   ;;  %v975_v30 = vpop.permute.xlu1 %974 }
 0x232   : >> { %v1003_v15 = vmul.bf16 %v3288_v0, %v975_v30  ;;  %v1065_v20 = vmax.bf16 %v1057_v49, %v1010_v11 }
 0x234   : >> { %v1011_v3 = vmax.bf16 %v1003_v15, %v959_v26  ;;  %v1110_v26 = vrot.slane %v3344_v62, %v3742_v13  ;;  %v1162_v13 = vrot.slane %v3327_v16, %v3748_v33 }
 0x235   : >> { %1344 = vperm.xlu1 %2479, %v2917_v54   ;;  %v983_v2 = vpop.permute.xlu1 %982 }
 0x236   : >> { %v1005_v4 = vmul.bf16 %v3288_v0, %v983_v2  ;;  %v1111_v27 = vmul.bf16 %v1110_v26, %v1074_v6  ;;  %v1114_v48 = vmul.bf16 %v1110_v26, %v1086_v57 }
 0x238   : >> { %v1013_v5 = vmax.bf16 %v1005_v4, %v3746_v38 }
 0x239   : >> { %1348 = vperm.xlu1 %2479, %v2926_v60   ;;  %v991_v47 = vpop.permute.xlu1 %990  ;;  %v1102_v60 = vpop.permute.xlu0 %1101 }
 0x23a   : >> { %v1007_v29 = vmul.bf16 %v3288_v0, %v991_v47  ;;  %v1068_v22 = vmax.bf16 %v1060_v7, %v1013_v5  ;;  %v1118_v43 = vmul.bf16 %v1110_v26, %v1102_v60 }
 0x23c   : >> { %v1015_v1 = vmax.bf16 %v1007_v29, %v3297_v28 }
 0x23d   : >> { %1356 = vperm.xlu1 %2479, %v2958_v9   ;;  %v1133_v9 = vpop.permute.xlu0 %1132 }
 0x23e   : >> { %v1019_v12 = vpop.permute.xlu1 %1018  ;;  %v1070_v53 = vmax.bf16 %v1062_v25, %v1015_v1  ;;  %v1164_v49 = vmul.bf16 %v1162_v13, %v1133_v9 }
 0x23f   : >> { %v1056_v35 = vmul.bf16 %v1055_v52, %v1019_v12 }
 0x241   : >> { %v1064_v34 = vmax.bf16 %v1056_v35, %v3311_v18  ;;  %1364 = vperm.xlu1 %2479, %v2954_v8   ;;  %v1116_v8 = vmul.bf16 %v1110_v26, %v1094_v50  ;;  %v1145_v58 = vpop.permute.xlu0 %1144 }
 0x242   : >> { %v1027_v0 = vpop.permute.xlu1 %1026 }
 0x243   : >> { %v1058_v19 = vmul.bf16 %v1055_v52, %v1027_v0  ;;  %v1119_v21 = vmax.bf16 %v1111_v27, %v1064_v34  ;;  %v3375_v0 = vrot.slane %v3344_v62, %v3748_v33 }
 0x245   : >> { %v1066_v59 = vmax.bf16 %v1058_v19, %v1011_v3  ;;  %2482 = vset.pattern.permute.xlu1 %v3747_v56  ;;  %v1153_v31 = vpop.permute.xlu0 %1152 }
 0x246   : >> { %1392 = vperm.xlu1 %2482, %v3739_v42   ;;  %v1031_v28 = vpop.permute.xlu1 %1030 }
 0x247   : >> { %v1059_v24 = vmul.bf16 %v1055_v52, %v1031_v28 }
 0x249   : >> { %v1067_v45 = vmax.bf16 %v1059_v24, %v1012_v39 }
 0x24a   : >> { %1396 = vperm.xlu1 %2482, %v2917_v54   ;;  %v1039_v14 = vpop.permute.xlu1 %1038 }
 0x24b   : >> { %v1061_v18 = vmul.bf16 %v1055_v52, %v1039_v14  ;;  %v1122_v40 = vmax.bf16 %v1114_v48, %v1067_v45 }
 0x24d   : >> { %v1069_v23 = vmax.bf16 %v1061_v18, %v1014_v36  ;;  %v1169_v18 = vmul.bf16 %v1162_v13, %v1153_v31 }
 0x24e   : >> { %1404 = vperm.xlu1 %2482, %v3741_v10   ;;  %v1047_v44 = vpop.permute.xlu1 %1046  ;;  %v3361_v10 = vpop.permute.xlu0 %1180 }
 0x24f   : >> { %v1063_v61 = vmul.bf16 %v1055_v52, %v1047_v44  ;;  %v1124_v51 = vmax.bf16 %v1116_v8, %v1069_v23 }
 0x251   : >> { %v1071_v42 = vmax.bf16 %v1063_v61, %v1016_v63  ;;  %v1167_v63 = vmul.bf16 %v1162_v13, %v1145_v58 }
 0x252   : >> { %1412 = vperm.xlu1 %2482, %v3743_v46   ;;  %v3363_v37 = vpop.permute.xlu0 %1192 }
 0x253   : >> { %v1078_v39 = vpop.permute.xlu1 %1077  ;;  %v1126_v54 = vmax.bf16 %v1118_v43, %v1071_v42 }
 0x254   : >> { %v1112_v17 = vmul.bf16 %v1110_v26, %v1078_v39 }
 0x256   : >> { %v1120_v6 = vmax.bf16 %v1112_v17, %v1065_v20  ;;  %v3365_v38 = vpop.permute.xlu0 %1200 }
 0x257   : >> { %v1082_v36 = vpop.permute.xlu1 %1081 }
 0x258   : >> { %v1113_v55 = vmul.bf16 %v1110_v26, %v1082_v36  ;;  %v1172_v11 = vmax.bf16 %v1164_v49, %v1120_v6 }
 0x25a   : >> { %v1121_v52 = vmax.bf16 %v1113_v55, %v1066_v59  ;;  %v3367_v25 = vpop.permute.xlu0 %1208  ;;  %v3749_v55 = vld [vmem:[#allocation13_spill] sm:$0xff] }
 0x25b   : >> { %v1090_v32 = vpop.permute.xlu1 %1089 }
 0x25c   : >> { %v1115_v30 = vmul.bf16 %v1110_v26, %v1090_v32 }
 0x25e   : >> { %v1123_v15 = vmax.bf16 %v1115_v30, %v1068_v22  ;;  %v3369_v27 = vpop.permute.xlu0 %1236  ;;  %v1215_v30 = vmul.bf16 %v3375_v0, %v3361_v10  ;;  %v3427_v10 = vrot.slane %v3344_v62, %v3127_v41 }
 0x25f   : >> { %v1098_v3 = vpop.permute.xlu1 %1097 }
 0x260   : >> { %v1117_v46 = vmul.bf16 %v1110_v26, %v1098_v3  ;;  %v1175_v2 = vmax.bf16 %v1167_v63, %v1123_v15  ;;  %v3416_v15 = vrot.slane %v3344_v62, %v3749_v55 }
 0x262   : >> { %v1125_v57 = vmax.bf16 %v1117_v46, %v1070_v53  ;;  %v3377_v19 = vpop.permute.xlu0 %1248 }
 0x264   : >> { %v1129_v4 = vpop.permute.xlu1 %1128  ;;  %v1177_v58 = vmax.bf16 %v1169_v18, %v1125_v57 }
 0x265   : >> { %v1163_v7 = vmul.bf16 %v1162_v13, %v1129_v4 }
 0x266   : >> { %v3382_v24 = vpop.permute.xlu0 %1256 }
 0x267   : >> { %v1171_v20 = vmax.bf16 %v1163_v7, %v1119_v21  ;;  %v3423_v7 = vrot.slane %v3327_v16, %v3127_v41 }
 0x268   : >> { %v1137_v5 = vpop.permute.xlu1 %1136 }
 0x269   : >> { %v1165_v47 = vmul.bf16 %v1162_v13, %v1137_v5  ;;  %v1223_v3 = vmax.bf16 %v1215_v30, %v1171_v20 }
 0x26b   : >> { %v1173_v29 = vmax.bf16 %v1165_v47, %v1121_v52  ;;  %v1218_v47 = vmul.bf16 %v3375_v0, %v3363_v37 }
 0x26c   : >> { %v1141_v50 = vpop.permute.xlu1 %1140 }
 0x26d   : >> { %v1166_v1 = vmul.bf16 %v1162_v13, %v1141_v50 }
 0x26f   : >> { %v1174_v12 = vmax.bf16 %v1166_v1, %v1122_v40  ;;  %v1285_v40 = vpop.permute.xlu0 %1284 }
 0x270   : >> { %v1149_v22 = vpop.permute.xlu1 %1148  ;;  %v1319_v4 = vmul.bf16 %v3416_v15, %v1285_v40 }
 0x271   : >> { %v1168_v35 = vmul.bf16 %v1162_v13, %v1149_v22  ;;  %v1226_v22 = vmax.bf16 %v1218_v47, %v1174_v12 }
 0x273   : >> { %v1176_v26 = vmax.bf16 %v1168_v35, %v1124_v51  ;;  %v1297_v51 = vpop.permute.xlu0 %1296 }
 0x274   : >> { %v1157_v34 = vpop.permute.xlu1 %1156  ;;  %v1322_v37 = vmul.bf16 %v3416_v15, %v1297_v51 }
 0x275   : >> { %v1170_v53 = vmul.bf16 %v1162_v13, %v1157_v34 }
 0x277   : >> { %v3371_v60 = vmax.bf16 %v1170_v53, %v1126_v54  ;;  %v1305_v33 = vpop.permute.xlu0 %1304  ;;  %v1220_v53 = vmul.bf16 %v3375_v0, %v3365_v38 }
 0x278   : >> { %v1324_v38 = vmul.bf16 %v3416_v15, %v1305_v33 }
 0x279   : >> { %v1185_v21 = vpop.permute.xlu1 %1184 }
 0x27a   : >> { %v1216_v59 = vmul.bf16 %v3375_v0, %v1185_v21 }
 0x27b   : >> { %v3395_v54 = vpop.permute.xlu0 %1312 }
 0x27c   : >> { %v3380_v56 = vmax.bf16 %v1216_v59, %v1172_v11  ;;  %v3405_v11 = vrot.slane %v3327_v16, %v3749_v55  ;;  %v1228_v59 = vmax.bf16 %v1220_v53, %v1176_v26  ;;  %v1326_v33 = vmul.bf16 %v3416_v15, %v3395_v54 }
 0x27d   : >> { %v1189_v28 = vpop.permute.xlu1 %1188 }
 0x27e   : >> { %v1217_v9 = vmul.bf16 %v3375_v0, %v1189_v28  ;;  %v1222_v28 = vmul.bf16 %v3375_v0, %v3367_v25 }
 0x27f   : >> { %v3397_v13 = vpop.permute.xlu0 %1340 }
 0x280   : >> { %v3385_v48 = vmax.bf16 %v1217_v9, %v1173_v29  ;;  %v1372_v54 = vmul.bf16 %v3423_v7, %v3397_v13 }
 0x281   : >> { %v1197_v45 = vpop.permute.xlu1 %1196 }
 0x282   : >> { %v1219_v14 = vmul.bf16 %v3375_v0, %v1197_v45 }
 0x283   : >> { %v3399_v6 = vpop.permute.xlu0 %1352 }
 0x284   : >> { %v3388_v8 = vmax.bf16 %v1219_v14, %v1175_v2 }
 0x285   : >> { %v1205_v23 = vpop.permute.xlu1 %1204 }
 0x286   : >> { %v1221_v44 = vmul.bf16 %v3375_v0, %v1205_v23 }
 0x287   : >> { %v3409_v32 = vpop.permute.xlu0 %1360 }
 0x288   : >> { %v3391_v61 = vmax.bf16 %v1221_v44, %v1177_v58  ;;  %v1230_v58 = vmax.bf16 %v1222_v28, %v3371_v60 }
 0x28a   : >> { %v1233_v43 = vpop.permute.xlu1 %1232 }
 0x28b   : >> { %v1267_v63 = vmul.bf16 %v3405_v11, %v1233_v43  ;;  %v1389_v57 = vpop.permute.xlu0 %1388 }
 0x28c   : >> { %v1423_v1 = vmul.bf16 %v3427_v10, %v1389_v57 }
 0x28d   : >> { %v1275_v2 = vmax.bf16 %v1267_v63, %v1223_v3 }
 0x28e   : >> { %v3393_v42 = vpop.permute.xlu1 %1240 }
 0x28f   : >> { %v1327_v29 = vmax.bf16 %v1319_v4, %v1275_v2  ;;  %v1401_v34 = vpop.permute.xlu0 %1400  ;;  %v1269_v3 = vmul.bf16 %v3405_v11, %v3393_v42 }
 0x290   : >> { %v1426_v23 = vmul.bf16 %v3427_v10, %v1401_v34 }
 0x292   : >> { %v1245_v39 = vpop.permute.xlu1 %1244 }
 0x293   : >> { %v1270_v20 = vmul.bf16 %v3405_v11, %v1245_v39  ;;  %v1409_v40 = vpop.permute.xlu0 %1408  ;;  %v1268_v39 = vmul.bf16 %v3405_v11, %v3369_v27 }
 0x295   : >> { %v1278_v41 = vmax.bf16 %v1270_v20, %v1226_v22  ;;  %v1276_v30 = vmax.bf16 %v1268_v39, %v3380_v56  ;;  %v1271_v56 = vmul.bf16 %v3405_v11, %v3377_v19  ;;  %v1277_v20 = vmax.bf16 %v1269_v3, %v3385_v48 }
 0x296   : >> { %v1253_v17 = vpop.permute.xlu1 %1252 }
 0x297   : >> { %v1272_v62 = vmul.bf16 %v3405_v11, %v1253_v17  ;;  %v1330_v14 = vmax.bf16 %v1322_v37, %v1278_v41  ;;  %v1417_v60 = vpop.permute.xlu0 %1416  ;;  %v1279_v13 = vmax.bf16 %v1271_v56, %v3388_v8 }
 0x299   : >> { %v1280_v45 = vmax.bf16 %v1272_v62, %v1228_v59 }
 0x29a   : >> { %v1261_v49 = vpop.permute.xlu1 %1260 }
 0x29b   : >> { %v1274_v12 = vmul.bf16 %v3405_v11, %v1261_v49  ;;  %v1332_v25 = vmax.bf16 %v1324_v38, %v1280_v45  ;;  %v1428_v49 = vmul.bf16 %v3427_v10, %v1409_v40 }
 0x29d   : >> { %v1282_v26 = vmax.bf16 %v1274_v12, %v1230_v58 }
 0x29f   : >> { %v1289_v31 = vpop.permute.xlu1 %1288  ;;  %v1334_v57 = vmax.bf16 %v1326_v33, %v1282_v26 }
 0x2a0   : >> { %v1320_v17 = vmul.bf16 %v3416_v15, %v1289_v31  ;;  %v1430_v31 = vmul.bf16 %v3427_v10, %v1417_v60 }
 0x2a2   : >> { %v1328_v27 = vmax.bf16 %v1320_v17, %v1276_v30 }
 0x2a3   : >> { %v3401_v36 = vpop.permute.xlu1 %1292 }
 0x2a4   : >> { %v1321_v47 = vmul.bf16 %v3416_v15, %v3401_v36  ;;  %v1380_v22 = vmax.bf16 %v1372_v54, %v1328_v27  ;;  %v1273_v36 = vmul.bf16 %v3405_v11, %v3382_v24  ;;  %v1377_v24 = vmul.bf16 %v3423_v7, %v3409_v32 }
 0x2a6   : >> { %v1329_v34 = vmax.bf16 %v1321_v47, %v1277_v20  ;;  %v1281_v37 = vmax.bf16 %v1273_v36, %v3391_v61 }
 0x2a7   : >> { %v3407_v52 = vpop.permute.xlu1 %1300 }
 0x2ab   : >> { %v3418_v46 = vpop.permute.xlu1 %1308 }
 0x2ac   : >> { %v1325_v48 = vmul.bf16 %v3416_v15, %v3418_v46 }
 0x2ae   : >> { %v1333_v8 = vmax.bf16 %v1325_v48, %v1281_v37 }
 0x2b0   : >> { %v1337_v5 = vpop.permute.xlu1 %1336 }
 0x2b1   : >> { %v1371_v50 = vmul.bf16 %v3423_v7, %v1337_v5 }
 0x2b3   : >> { %v1379_v35 = vmax.bf16 %v1371_v50, %v1327_v29  ;;  %v1323_v50 = vmul.bf16 %v3416_v15, %v3407_v52  ;;  %v1385_v15 = vmax.bf16 %v1377_v24, %v1333_v8 }
 0x2b4   : >> { %v1345_v16 = vpop.permute.xlu1 %1344 }
 0x2b5   : >> { %v3437_v21 = vmax.bf16 %v1423_v1, %v1379_v35   ;;  %v1373_v1 = vmul.bf16 %v3423_v7, %v1345_v16  ;;  %v1331_v41 = vmax.bf16 %v1323_v50, %v1279_v13  ;;  %v1375_v16 = vmul.bf16 %v3423_v7, %v3399_v6 }
 0x2b7   : >> { %v1381_v62 = vmax.bf16 %v1373_v1, %v1329_v34  ;;  %v3757_v33 = vmov %v3437_v21  ;;  %1439 = vst [vmem:[#allocation2] sm:$0xff] (%p522_p2), %v3437_v21 }
 0x2b8   : >> { %v1349_v9 = vpop.permute.xlu1 %1348 }
 0x2b9   : >> { %v1374_v18 = vmul.bf16 %v3423_v7, %v1349_v9  ;;  %v1383_v9 = vmax.bf16 %v1375_v16, %v1331_v41 }
 0x2bb   : >> { %v1382_v44 = vmax.bf16 %v1374_v18, %v1330_v14 }
 0x2bc   : >> { %v1357_v51 = vpop.permute.xlu1 %1356 }
 0x2bd   : >> { %v3447_v43 = vmax.bf16 %v1426_v23, %v1382_v44   ;;  %v1376_v0 = vmul.bf16 %v3423_v7, %v1357_v51 }
 0x2bf   : >> { %v1384_v55 = vmax.bf16 %v1376_v0, %v1332_v25  ;;  %v3754_v36 = vmov %v3447_v43  ;;  %1442 = vst [vmem:[#allocation2 + $0x18] sm:$0xff] (%p522_p2), %v3447_v43 }
 0x2c0   : >> { %v1365_v63 = vpop.permute.xlu1 %1364 }
 0x2c1   : >> { %v1436_v2 = vmax.bf16 %v1428_v49, %v1384_v55   ;;  %v1378_v4 = vmul.bf16 %v3423_v7, %v1365_v63 }
 0x2c3   : >> { %v1386_v5 = vmax.bf16 %v1378_v4, %v1334_v57  ;;  %v3752_v38 = vmov %v1436_v2  ;;  %1444 = vst [vmem:[#allocation2 + $0x28] sm:$0xff] (%p522_p2), %v1436_v2 }
 0x2c5   : >> { %v1438_v42 = vmax.bf16 %v1430_v31, %v1386_v5   ;;  %v1393_v29 = vpop.permute.xlu1 %1392 }
 0x2c6   : >> { %v1424_v35 = vmul.bf16 %v3427_v10, %v1393_v29 }
 0x2c7   : >> { %v3750_v40 = vmov %v1438_v42  ;;  %1446 = vst [vmem:[#allocation2 + $0x38] sm:$0xff] (%p522_p2), %v1438_v42 }
 0x2c8   : >> { %v1432_v53 = vmax.bf16 %v1424_v35, %v1380_v22  }
 0x2c9   : >> { %v1397_v19 = vpop.permute.xlu1 %1396 }
 0x2ca   : >> { %v1425_v52 = vmul.bf16 %v3427_v10, %v1397_v19  ;;  %v3756_v34 = vmov %v1432_v53  ;;  %1440 = vst [vmem:[#allocation2 + $0x8] sm:$0xff] (%p522_p2), %v1432_v53 }
 0x2cc   : >> { %v1433_v59 = vmax.bf16 %v1425_v52, %v1381_v62  }
 0x2cd   : >> { %v1405_v28 = vpop.permute.xlu1 %1404 }
 0x2ce   : >> { %v1427_v45 = vmul.bf16 %v3427_v10, %v1405_v28  ;;  %v3755_v35 = vmov %v1433_v59  ;;  %1441 = vst [vmem:[#allocation2 + $0x10] sm:$0xff] (%p522_p2), %v1433_v59 }
 0x2d0   : >> { %v1435_v11 = vmax.bf16 %v1427_v45, %v1383_v9   ;;  %524 = sbr.rel (!%p522_p2) target bundleno = 77 (0x4d), region = 147 }
 0x2d1   : >> { %v1413_v12 = vpop.permute.xlu1 %1412 }
 0x2d2   : >> { %v1429_v46 = vmul.bf16 %v3427_v10, %v1413_v12  ;;  %v3753_v37 = vmov %v1435_v11  ;;  %1443 = vst [vmem:[#allocation2 + $0x20] sm:$0xff] (%p522_p2), %v1435_v11 }
 0x2d4   : >> { %v1437_v14 = vmax.bf16 %v1429_v46, %v1385_v15  }
 0x2d6   : >> { %v3751_v39 = vmov %v1437_v14  ;;  %1445 = vst [vmem:[#allocation2 + $0x30] sm:$0xff] (%p522_p2), %v1437_v14 }
 0x2d7 PF: > { %v2483_v61 = vld [vmem:[%s3701_s5] sm:$0xff]   ;;  %v2485_v32 = vld [vmem:[%s3701_s5 + $0x8] sm:$0xff]   ;;  %v2487_v10 = vld [vmem:[%s3701_s5 + $0x10] sm:$0xff]  }
 0x2d8   : > { %v2484_v6 = vld [vmem:[%s3700_s4] sm:$0xff]   ;;  %2209 = vmatprep.subr.bf16.mxu1 %v2483_v61  ;;  %v2486_v7 = vld [vmem:[%s3700_s4 + $0x8] sm:$0xff]   ;;  %v2488_v21 = vld [vmem:[%s3700_s4 + $0x10] sm:$0xff]  }
 0x2d9   : > { %2241 = vmatprep.subr.bf16.mxu0 %v2484_v6  ;;  %2210 = vmatpush3.bf16.msra.mxu1 %v2483_v61  ;;  %v2489_v18 = vld [vmem:[%s3701_s5 + $0x18] sm:$0xff]   ;;  %v2491_v38 = vld [vmem:[%s3701_s5 + $0x20] sm:$0xff]   ;;  %v2493_v58 = vld [vmem:[%s3701_s5 + $0x28] sm:$0xff]  }
 0x2da   : > { %2242 = vmatpush3.bf16.msra.mxu0 %v2484_v6  ;;  %2211 = vmatprep.subr.bf16.mxu1 %v2485_v32  ;;  %v2490_v40 = vld [vmem:[%s3700_s4 + $0x18] sm:$0xff]   ;;  %v2492_v23 = vld [vmem:[%s3700_s4 + $0x20] sm:$0xff]   ;;  %v2494_v51 = vld [vmem:[%s3700_s4 + $0x28] sm:$0xff]  }
 0x2db   : > { %2243 = vmatprep.subr.bf16.mxu0 %v2486_v7  ;;  %v1482_v44 = vld [vmem:[#allocation2] sm:$0xff]  ;;  %v2495_v43 = vld [vmem:[%s3701_s5 + $0x30] sm:$0xff]   ;;  %v2497_v0 = vld [vmem:[%s3701_s5 + $0x38] sm:$0xff]  }
 0x2dc   : > { %2225 = vmatprep.mubr.bf16.mxu1 %v1482_v44  ;;  %v2499_v26 = vld [vmem:[%s2847_s11] sm:$0xff]   ;;  %v2496_v25 = vld [vmem:[%s3700_s4 + $0x30] sm:$0xff]   ;;  %v2498_v39 = vld [vmem:[%s3700_s4 + $0x38] sm:$0xff]  }
 0x2dd   : > { %2212 = vmatpush3.bf16.msra.mxu1 %v2485_v32  ;;  %2257 = vmatprep.mubr.bf16.mxu0 %v2499_v26  ;;  %v1483_v17 = vld [vmem:[#allocation2 + $0x8] sm:$0xff]  ;;  %v1484_v49 = vld [vmem:[#allocation2 + $0x10] sm:$0xff]  ;;  %v1485_v60 = vld [vmem:[#allocation2 + $0x18] sm:$0xff] }
 0x2de   : > { %2244 = vmatpush3.bf16.msra.mxu0 %v2486_v7  ;;  %2213 = vmatprep.subr.bf16.mxu1 %v2487_v10  ;;  %v2500_v33 = vld [vmem:[%s2847_s11 + $0x8] sm:$0xff]   ;;  %v2501_v55 = vld [vmem:[%s2847_s11 + $0x10] sm:$0xff]   ;;  %v2502_v30 = vld [vmem:[%s2847_s11 + $0x18] sm:$0xff]  }
 0x2df   : > { %2245 = vmatprep.subr.bf16.mxu0 %v2488_v21  ;;  %v1486_v63 = vld [vmem:[#allocation2 + $0x20] sm:$0xff]  ;;  %v1487_v2 = vld [vmem:[#allocation2 + $0x28] sm:$0xff]  ;;  %v1488_v4 = vld [vmem:[#allocation2 + $0x30] sm:$0xff] }
 0x2e0   : > { %v2503_v3 = vld [vmem:[%s2847_s11 + $0x20] sm:$0xff]   ;;  %v2504_v57 = vld [vmem:[%s2847_s11 + $0x28] sm:$0xff]   ;;  %v2505_v27 = vld [vmem:[%s2847_s11 + $0x30] sm:$0xff]  }
 0x2e1   : > { %2214 = vmatpush3.bf16.msra.mxu1 %v2487_v10  ;;  %v1489_v31 = vld [vmem:[#allocation2 + $0x38] sm:$0xff]  ;;  %v3567_v20 = vld [vmem:[%s3702_s6] ss:$0 sm:$0xff] }
 0x2e2   : > { %2246 = vmatpush3.bf16.msra.mxu0 %v2488_v21  ;;  %2215 = vmatprep.subr.bf16.mxu1 %v2489_v18  ;;  %v2506_v5 = vld [vmem:[%s2847_s11 + $0x38] sm:$0xff]  }
 0x2e3   : > { %2247 = vmatprep.subr.bf16.mxu0 %v2490_v40 }
 0x2e5   : > { %2216 = vmatpush3.bf16.msra.mxu1 %v2489_v18 }
 0x2e6   : > { %2248 = vmatpush3.bf16.msra.mxu0 %v2490_v40  ;;  %2217 = vmatprep.subr.bf16.mxu1 %v2491_v38 }
 0x2e7   : > { %2249 = vmatprep.subr.bf16.mxu0 %v2492_v23 }
 0x2e9   : > { %2218 = vmatpush3.bf16.msra.mxu1 %v2491_v38 }
 0x2ea   : > { %2250 = vmatpush3.bf16.msra.mxu0 %v2492_v23  ;;  %2219 = vmatprep.subr.bf16.mxu1 %v2493_v58 }
 0x2eb   : > { %2251 = vmatprep.subr.bf16.mxu0 %v2494_v51 }
 0x2ed   : > { %2220 = vmatpush3.bf16.msra.mxu1 %v2493_v58 }
 0x2ee   : > { %2252 = vmatpush3.bf16.msra.mxu0 %v2494_v51  ;;  %2221 = vmatprep.subr.bf16.mxu1 %v2495_v43 }
 0x2ef   : > { %2253 = vmatprep.subr.bf16.mxu0 %v2496_v25 }
 0x2f1   : > { %2222 = vmatpush3.bf16.msra.mxu1 %v2495_v43 }
 0x2f2   : > { %2254 = vmatpush3.bf16.msra.mxu0 %v2496_v25  ;;  %2223 = vmatprep.subr.bf16.mxu1 %v2497_v0 }
 0x2f3   : > { %2255 = vmatprep.subr.bf16.mxu0 %v2498_v39 }
 0x2f5   : > { %2224 = vmatpush3.bf16.msra.mxu1 %v2497_v0 }
 0x2f6   : > { %2256 = vmatpush3.bf16.msra.mxu0 %v2498_v39 }
 0x2f8   : > { %2226 = vmatmul.mubr.bf16.vlgmr.msra.gmra.mrb[0].mxu1 %v1483_v17 }
 0x2f9   : > { %2258 = vmatmul.mubr.bf16.vlgmr.msra.gmra.mrb[0].mxu0 %v2500_v33  ;;  %2229 = vmatprep.mubr.bf16.mxu1 %v1484_v49 }
 0x2fa   : > { %2261 = vmatprep.mubr.bf16.mxu0 %v2501_v55 }
 0x300   : > { %2230 = vmatmul.mubr.bf16.gmra.mrb[4].mxu1 %v1485_v60 }
 0x301   : > { %2262 = vmatmul.mubr.bf16.gmra.mrb[4].mxu0 %v2502_v30  ;;  %2233 = vmatprep.mubr.bf16.mxu1 %v1486_v63 }
 0x302   : > { %2265 = vmatprep.mubr.bf16.mxu0 %v2503_v3 }
 0x308   : > { %2234 = vmatmul.mubr.bf16.gmra.mrb[8].mxu1 %v1487_v2 }
 0x309   : > { %2266 = vmatmul.mubr.bf16.gmra.mrb[8].mxu0 %v2504_v57  ;;  %2237 = vmatprep.mubr.bf16.mxu1 %v1488_v4 }
 0x30a   : > { %2269 = vmatprep.mubr.bf16.mxu0 %v2505_v27 }
 0x310   : > { %2238 = vmatmul.mubr.bf16.gmra.mrb[12].mxu1 %v1489_v31 }
 0x311   : > { %2270 = vmatmul.mubr.bf16.gmra.mrb[12].mxu0 %v2506_v5 }
 0x3cb   : > { %v2227_v54 = vpop.f32.mrb[0].mxu1 }
 0x3cc   : > { %v2259_v47 = vpop.f32.mrb[0].mxu0  ;;  %v1588_v56 = vpop.f32.mrb[1].mxu1 }
 0x3cd   : > { %v1790_v42 = vadd.f32 %v2259_v47, %v2227_v54  ;;  %v1781_v29 = vpop.f32.mrb[1].mxu0  ;;  %v2228_v50 = vpop.f32.mrb[2].mxu1 }
 0x3ce   : > { %v1782_v1 = vadd.f32 %v1781_v29, %v1588_v56  ;;  %v2260_v22 = vpop.f32.mrb[2].mxu0  ;;  %v1591_v35 = vpop.f32.mrb[3].mxu1 }
 0x3cf   : > { %v1793_v34 = vadd.f32 %v2260_v22, %v2228_v50  ;;  %v1784_v13 = vpop.f32.mrb[3].mxu0  ;;  %v3570_v53 = vadd.f32 %v3567_v20, %v1790_v42 }
 0x3d0   : > { %v1785_v36 = vadd.f32 %v1784_v13, %v1591_v35  ;;  %v3573_v19 = vadd.f32 %v3567_v20, %v1782_v1 }
 0x3d1   : > { %v3576_v41 = vadd.f32 %v3567_v20, %v1793_v34  ;;  %v1869_v48 = vmul.f32 %v3570_v53, %v3570_v53 }
 0x3d2   : > { %v3581_v62 = vadd.f32 %v3567_v20, %v1785_v36  ;;  %v1867_v52 = vmul.f32 %v3573_v19, %v3573_v19 }
 0x3d3   : > { %1887 = vadd.xlane.f32.xlu1 %v1869_v48  ;;  %v2231_v16 = vpop.f32.mrb[4].mxu1  ;;  %v1870_v45 = vmul.f32 %v3576_v41, %v3576_v41 }
 0x3d4   : > { %v2263_v37 = vpop.f32.mrb[4].mxu0  ;;  %1883 = vadd.xlane.f32.xlu0 %v1867_v52  ;;  %v1604_v59 = vpop.f32.mrb[5].mxu1  ;;  %v1868_v15 = vmul.f32 %v3581_v62, %v3581_v62 }
 0x3d5   : > { %v1806_v28 = vadd.f32 %v2263_v37, %v2231_v16  ;;  %v1797_v8 = vpop.f32.mrb[5].mxu0  ;;  %v2232_v9 = vpop.f32.mrb[6].mxu1 }
 0x3d6   : > { %v1798_v24 = vadd.f32 %v1797_v8, %v1604_v59  ;;  %v2264_v11 = vpop.f32.mrb[6].mxu0  ;;  %v1607_v12 = vpop.f32.mrb[7].mxu1 }
 0x3d7   : > { %v3590_v46 = vadd.f32 %v3567_v20, %v1806_v28  ;;  %v1809_v14 = vadd.f32 %v2264_v11, %v2232_v9  ;;  %1889 = vadd.xlane.f32.xlu1 %v1870_v45  ;;  %v1800_v61 = vpop.f32.mrb[7].mxu0 }
 0x3d8   : > { %v1801_v6 = vadd.f32 %v1800_v61, %v1607_v12  ;;  %1885 = vadd.xlane.f32.xlu0 %v1868_v15  ;;  %v3598_v10 = vadd.f32 %v3567_v20, %v1798_v24 }
 0x3d9   : > { %v3593_v32 = vadd.f32 %v3567_v20, %v1809_v14  ;;  %v1873_v7 = vmul.f32 %v3590_v46, %v3590_v46 }
 0x3da   : > { %v3601_v21 = vadd.f32 %v3567_v20, %v1801_v6  ;;  %v1871_v0 = vmul.f32 %v3598_v10, %v3598_v10 }
 0x3db   : > { %v2235_v18 = vpop.f32.mrb[8].mxu1  ;;  %v1874_v40 = vmul.f32 %v3593_v32, %v3593_v32 }
 0x3dc   : > { %v2267_v38 = vpop.f32.mrb[8].mxu0  ;;  %1895 = vadd.xlane.f32.xlu0 %v1873_v7  ;;  %v1620_v23 = vpop.f32.mrb[9].mxu1  ;;  %v1872_v49 = vmul.f32 %v3601_v21, %v3601_v21 }
 0x3dd   : > { %v1822_v58 = vadd.f32 %v2267_v38, %v2235_v18  ;;  %1897 = vadd.xlane.f32.xlu1 %v1874_v40  ;;  %v1813_v44 = vpop.f32.mrb[9].mxu0  ;;  %v2236_v51 = vpop.f32.mrb[10].mxu1 }
 0x3de   : > { %v1814_v26 = vadd.f32 %v1813_v44, %v1620_v23  ;;  %v2268_v43 = vpop.f32.mrb[10].mxu0  ;;  %v1623_v25 = vpop.f32.mrb[11].mxu1 }
 0x3df   : > { %v3608_v39 = vadd.f32 %v3567_v20, %v1822_v58  ;;  %v1825_v17 = vadd.f32 %v2268_v43, %v2236_v51  ;;  %v1816_v33 = vpop.f32.mrb[11].mxu0 }
 0x3e0   : > { %v1817_v55 = vadd.f32 %v1816_v33, %v1623_v25  ;;  %1891 = vadd.xlane.f32.xlu0 %v1871_v0  ;;  %v3618_v63 = vadd.f32 %v3567_v20, %v1814_v26 }
 0x3e1   : > { %v3613_v60 = vadd.f32 %v3567_v20, %v1825_v17  ;;  %1893 = vadd.xlane.f32.xlu1 %v1872_v49  ;;  %v1877_v30 = vmul.f32 %v3608_v39, %v3608_v39 }
 0x3e2   : > { %v3621_v3 = vadd.f32 %v3567_v20, %v1817_v55  ;;  %v1875_v29 = vmul.f32 %v3618_v63, %v3618_v63 }
 0x3e3   : > { %v2239_v2 = vpop.f32.mrb[12].mxu1  ;;  %v1878_v57 = vmul.f32 %v3613_v60, %v3613_v60 }
 0x3e4   : > { %v2271_v4 = vpop.f32.mrb[12].mxu0  ;;  %1903 = vadd.xlane.f32.xlu0 %v1877_v30  ;;  %v1636_v27 = vpop.f32.mrb[13].mxu1  ;;  %v1876_v22 = vmul.f32 %v3621_v3, %v3621_v3 }
 0x3e5   : > { %v1838_v31 = vadd.f32 %v2271_v4, %v2239_v2  ;;  %v1829_v5 = vpop.f32.mrb[13].mxu0  ;;  %1905 = vadd.xlane.f32.xlu1 %v1878_v57  ;;  %v2240_v54 = vpop.f32.mrb[14].mxu1 }
 0x3e6   : > { %v1830_v47 = vadd.f32 %v1829_v5, %v1636_v27  ;;  %v2272_v56 = vpop.f32.mrb[14].mxu0  ;;  %v1639_v42 = vpop.f32.mrb[15].mxu1 }
 0x3e7   : > { %v1841_v50 = vadd.f32 %v2272_v56, %v2240_v54  ;;  %v1832_v1 = vpop.f32.mrb[15].mxu0  ;;  %v3633_v13 = vadd.f32 %v3567_v20, %v1838_v31 }
 0x3e8   : > { %v3630_v35 = vadd.f32 %v3567_v20, %v1830_v47  ;;  %v1833_v34 = vadd.f32 %v1832_v1, %v1639_v42  ;;  %1899 = vadd.xlane.f32.xlu0 %v1875_v29 }
 0x3e9   : > { %1901 = vadd.xlane.f32.xlu1 %v1876_v22  ;;  %v3641_v52 = vadd.f32 %v3567_v20, %v1841_v50  ;;  %v1881_v37 = vmul.f32 %v3633_v13, %v3633_v13 }
 0x3ea   : > { %v3636_v36 = vadd.f32 %v3567_v20, %v1833_v34  ;;  %v1879_v48 = vmul.f32 %v3630_v35, %v3630_v35 }
 0x3eb   : > { %v1882_v59 = vmul.f32 %v3641_v52, %v3641_v52 }
 0x3ec   : > { %1907 = vadd.xlane.f32.xlu0 %v1879_v48  ;;  %v1880_v16 = vmul.f32 %v3636_v36, %v3636_v36 }
 0x3ee   : > { %1909 = vadd.xlane.f32.xlu1 %v1880_v16 }
 0x3f0   : > { %1911 = vadd.xlane.f32.xlu0 %v1881_v37 }
 0x3f2   : > { %1913 = vadd.xlane.f32.xlu1 %v1882_v59 }
 0x460   : > { %v1888_v28 = vpop.xlane.xlu1 %1887 }
 0x461   : > { %v1917_v8 = vmax.f32 %v1888_v28, 1e-24  ;;  %v1884_v9 = vpop.xlane.xlu0 %1883 }
 0x462   : > { %v1915_v45 = vmax.f32 %v1884_v9, 1e-24 }
 0x463   : > { %2507 = vrsqrt.f32 %v1917_v8 }
 0x464   : > { %2509 = vrsqrt.f32 %v1915_v45  ;;  %v1890_v20 = vpop.xlane.xlu1 %1889 }
 0x465   : > { %v1918_v24 = vmax.f32 %v1890_v20, 1e-24  ;;  %v1886_v11 = vpop.xlane.xlu0 %1885 }
 0x466   : > { %v1916_v12 = vmax.f32 %v1886_v11, 1e-24 }
 0x467   : > { %2511 = vrsqrt.f32 %v1918_v24 }
 0x468   : > { %2513 = vrsqrt.f32 %v1916_v12 }
 0x469   : > { %v1896_v15 = vpop.xlane.xlu0 %1895 }
 0x46a   : > { %v1921_v14 = vmax.f32 %v1896_v15, 1e-24  ;;  %v1898_v61 = vpop.xlane.xlu1 %1897 }
 0x46b   : > { %v1922_v6 = vmax.f32 %v1898_v61, 1e-24 }
 0x46c   : > { %2515 = vrsqrt.f32 %v1921_v14 }
 0x46d   : > { %v2508_v7 = vpop.eup %2507  ;;  %2517 = vrsqrt.f32 %v1922_v6  ;;  %v1892_v18 = vpop.xlane.xlu0 %1891 }
 0x46e   : > { %v2510_v40 = vpop.eup %2509  ;;  %v1949_v38 = vmul.f32 %v2508_v7, %v3570_v53  ;;  %v1919_v23 = vmax.f32 %v1892_v18, 1e-24  ;;  %v1894_v58 = vpop.xlane.xlu1 %1893 }
 0x46f   : > { %v1947_v44 = vmul.f32 %v2510_v40, %v3573_v19  ;;  %v1920_v51 = vmax.f32 %v1894_v58, 1e-24 }
 0x470   : > { %v1965_v26 = vmax.f32 %v1949_v38, 0.0  ;;  %2519 = vrsqrt.f32 %v1919_v23 }
 0x471   : > { %v2512_v43 = vpop.eup %2511  ;;  %v1963_v25 = vmax.f32 %v1947_v44, 0.0  ;;  %2521 = vrsqrt.f32 %v1920_v51  ;;  %v1904_v0 = vpop.xlane.xlu0 %1903 }
 0x472   : > { %v2514_v17 = vpop.eup %2513  ;;  %1981 = vst [vmem:[%s2852_s15 + $0x10] sm:$0xff] %v1965_v26  ;;  %v1950_v33 = vmul.f32 %v2512_v43, %v3576_v41  ;;  %v1925_v49 = vmax.f32 %v1904_v0, 1e-24  ;;  %v1906_v53 = vpop.xlane.xlu1 %1905 }
 0x473   : > { %1979 = vst [vmem:[%s2852_s15] sm:$0xff] %v1963_v25  ;;  %v1948_v55 = vmul.f32 %v2514_v17, %v3581_v62  ;;  %v1926_v30 = vmax.f32 %v1906_v53, 1e-24 }
 0x474   : > { %v1966_v19 = vmax.f32 %v1950_v33, 0.0  ;;  %2523 = vrsqrt.f32 %v1925_v49 }
 0x475   : > { %v1964_v2 = vmax.f32 %v1948_v55, 0.0  ;;  %2525 = vrsqrt.f32 %v1926_v30  ;;  %v1900_v57 = vpop.xlane.xlu0 %1899 }
 0x476   : > { %v2516_v4 = vpop.eup %2515  ;;  %1982 = vst [vmem:[%s2852_s15 + $0x18] sm:$0xff] %v1966_v19  ;;  %v1923_v27 = vmax.f32 %v1900_v57, 1e-24  ;;  %v1902_v31 = vpop.xlane.xlu1 %1901 }
 0x477   : > { %v2518_v5 = vpop.eup %2517  ;;  %1980 = vst [vmem:[%s2852_s15 + $0x8] sm:$0xff] %v1964_v2  ;;  %v1953_v41 = vmul.f32 %v2516_v4, %v3590_v46  ;;  %v1924_v54 = vmax.f32 %v1902_v31, 1e-24 }
 0x478   : > { %v1954_v47 = vmul.f32 %v2518_v5, %v3593_v32  ;;  %2527 = vrsqrt.f32 %v1923_v27 }
 0x479   : > { %v1969_v62 = vmax.f32 %v1953_v41, 0.0  ;;  %2529 = vrsqrt.f32 %v1924_v54  ;;  %v1908_v56 = vpop.xlane.xlu0 %1907 }
 0x47a   : > { %v2520_v42 = vpop.eup %2519  ;;  %v1970_v29 = vmax.f32 %v1954_v47, 0.0  ;;  %v1927_v50 = vmax.f32 %v1908_v56, 1e-24 }
 0x47b   : > { %v2522_v1 = vpop.eup %2521  ;;  %1985 = vst [vmem:[%s2852_s15 + $0x30] sm:$0xff] %v1969_v62  ;;  %v1951_v22 = vmul.f32 %v2520_v42, %v3598_v10  ;;  %v1910_v34 = vpop.xlane.xlu1 %1909 }
 0x47c   : > { %1986 = vst [vmem:[%s2852_s15 + $0x38] sm:$0xff] %v1970_v29  ;;  %v1952_v46 = vmul.f32 %v2522_v1, %v3601_v21  ;;  %2531 = vrsqrt.f32 %v1927_v50  ;;  %v1928_v48 = vmax.f32 %v1910_v34, 1e-24 }
 0x47d   : > { %v1967_v32 = vmax.f32 %v1951_v22, 0.0  ;;  %v1912_v16 = vpop.xlane.xlu0 %1911 }
 0x47e   : > { %v2524_v37 = vpop.eup %2523  ;;  %v1968_v59 = vmax.f32 %v1952_v46, 0.0  ;;  %2533 = vrsqrt.f32 %v1928_v48  ;;  %v1929_v28 = vmax.f32 %v1912_v16, 1e-24 }
 0x47f   : > { %v2526_v8 = vpop.eup %2525  ;;  %1983 = vst [vmem:[%s2852_s15 + $0x20] sm:$0xff] %v1967_v32  ;;  %v1957_v9 = vmul.f32 %v2524_v37, %v3608_v39  ;;  %v1914_v10 = vpop.xlane.xlu1 %1913 }
 0x480   : > { %1984 = vst [vmem:[%s2852_s15 + $0x28] sm:$0xff] %v1968_v59  ;;  %v1958_v45 = vmul.f32 %v2526_v8, %v3613_v60  ;;  %2535 = vrsqrt.f32 %v1929_v28  ;;  %v1930_v21 = vmax.f32 %v1914_v10, 1e-24 }
 0x481   : > { %v1973_v20 = vmax.f32 %v1957_v9, 0.0 }
 0x482   : > { %v2528_v24 = vpop.eup %2527  ;;  %v1974_v11 = vmax.f32 %v1958_v45, 0.0  ;;  %2537 = vrsqrt.f32 %v1930_v21 }
 0x483   : > { %v2530_v12 = vpop.eup %2529  ;;  %1989 = vst [vmem:[%s2852_s15 + $0x50] sm:$0xff] %v1973_v20  ;;  %v1955_v15 = vmul.f32 %v2528_v24, %v3618_v63 }
 0x484   : > { %1990 = vst [vmem:[%s2852_s15 + $0x58] sm:$0xff] %v1974_v11  ;;  %v1956_v39 = vmul.f32 %v2530_v12, %v3621_v3 }
 0x485   : > { %v1971_v14 = vmax.f32 %v1955_v15, 0.0 }
 0x486   : > { %v2532_v61 = vpop.eup %2531  ;;  %v1972_v60 = vmax.f32 %v1956_v39, 0.0 }
 0x487   : > { %1987 = vst [vmem:[%s2852_s15 + $0x40] sm:$0xff] %v1971_v14  ;;  %v1959_v6 = vmul.f32 %v2532_v61, %v3630_v35 }
 0x488   : > { %v2534_v7 = vpop.eup %2533  ;;  %1988 = vst [vmem:[%s2852_s15 + $0x48] sm:$0xff] %v1972_v60 }
 0x489   : > { %v1975_v18 = vmax.f32 %v1959_v6, 0.0  ;;  %v1960_v40 = vmul.f32 %v2534_v7, %v3636_v36 }
 0x48a   : > { %v2536_v38 = vpop.eup %2535 }
 0x48b   : > { %1991 = vst [vmem:[%s2852_s15 + $0x60] sm:$0xff] %v1975_v18  ;;  %v1976_v63 = vmax.f32 %v1960_v40, 0.0  ;;  %v1961_v23 = vmul.f32 %v2536_v38, %v3633_v13 }
 0x48c   : > { %v2538_v58 = vpop.eup %2537 }
 0x48d   : > { %1992 = vst [vmem:[%s2852_s15 + $0x68] sm:$0xff] %v1976_v63  ;;  %v1977_v3 = vmax.f32 %v1961_v23, 0.0  ;;  %v1962_v44 = vmul.f32 %v2538_v58, %v3641_v52 }
 0x48f   : > { %1993 = vst [vmem:[%s2852_s15 + $0x70] sm:$0xff] %v1977_v3  ;;  %v1978_v51 = vmax.f32 %v1962_v44, 0.0 }
 0x491   : > { %1994 = vst [vmem:[%s2852_s15 + $0x78] sm:$0xff] %v1978_v51 }
 0x492 PF: > { %s23_s9 = sadd.s32 1, %s2627_s9   ;;  %s3758_s29 = smov %s2615_s30 }
 0x493   : > { %p20_p3 = scmp.ge.s32.totalorder %s23_s9, 4   ;;  %s3759_s30 = smov %s2761_s13 }
 0x494   : > { %s3760_s8 = smov %s2623_s0  ;;  %s3761_s0 = smov %s3763_s10 }
 0x495   :  { %22 = sbr.rel (!%p20_p3) target bundleno = 18 (0x12), region = 158 }

// kernel: sage_forward.5
= control target key start
LH: loop header
LB: loop body
LE: loop exit
PB: predicated region body
PF: predicated region fallthrough
CT: control target
= control target key end

     0   :  { %s3831_s0 = inlined_call_operand.vmem [shape: s32[2,1], index: 0, kind: input, shape index: {}]   ;;  %s3832_s1 = inlined_call_operand.vmem [shape: bf16[256,256], index: 1, kind: input, shape index: {}]   ;;  %s3833_s2 = inlined_call_operand.vmem [shape: bf16[256,128], index: 2, kind: input, shape index: {}]   ;;  %s3834_s3 = inlined_call_operand.vmem [shape: bf16[256,128], index: 3, kind: input, shape index: {}]   ;;  %s3835_s4 = inlined_call_operand.vmem [shape: bf16[128,128], index: 4, kind: input, shape index: {}]   ;;  %s3836_s5 = inlined_call_operand.vmem [shape: bf16[128,128], index: 5, kind: input, shape index: {}]   ;;  %s3837_s6 = inlined_call_operand.vmem [shape: f32[1,128], index: 6, kind: input, shape index: {}]   ;;  %s3838_s7 = inlined_call_operand.vmem [shape: bf16[256,128], index: 7, kind: output, shape index: {}]  }
   0x1   :  { %s12_s26 = sshll.u32 %s3831_s0, 4  ;;  %s13_s26 = int_to_ptr.vmem [resolvable:$true] %s12_s26 }
   0x2   :  { %s2682_s27 = scalar_lea.vmem %s13_s26, 32  ;;  %p2687_p1 = scmp.lt.s32.totalorder %s13_s26, %s13_s26 }
   0x3   :  { %p2683_p0 = scmp.ne.s32.totalorder %s13_s26, %s2682_s27  ;;  %p2688_p2 = scmp.lt.s32.totalorder %s2682_s27, %s2682_s27 }
   0x5   :  { %p2689_p3 = por %p2688_p2, %p2687_p1 }
   0x7   :  { %p2690_p4 = pnand %p2689_p3, %p2683_p0 }
   0x9   :  { %2693 = shalt.err (!%p2690_p4)  }
   0xa   :  { %s2808_s28 = smov [#allocation4]  }
   0xb   :  { %15 = dma.vmem_to_smem %s13_s26, 32, %s2808_s28, [#allocation3] }
   0xc   :  { %2750 = dma.done.wait [#allocation3], 32 }
   0xd   :  { %2751 = vsyncadd [#allocation3], 4294967264 }
   0xe   :  { %17 = sfence }
   0xf   :  { %s2869_s29 = smov 0   ;;  %s2871_s30 = smov 0  }
  0x10   :  { %s2873_s8 = smov 0   ;;  %s2875_s0 = smov 0  }
  0x11   :  { %s2877_s9 = smov 0  }
  0x12 LB: > { %s35_s10 = sadd.s32 1, %s2766_s0  ;;  %p51_p6 = scmp.ne.s32.totalorder %s2758_s30, %s2754_s29  ;;  %s2770_s9 = sphi %s2877_s9, %s23_s9   ;;  %s2766_s0 = sphi %s2875_s0, %s3896_s0   ;;  %s2762_s8 = sphi %s2873_s8, %s3895_s8   ;;  %s2758_s30 = sphi %s2871_s30, %s3894_s30   ;;  %s2754_s29 = sphi %s2869_s29, %s3893_s29  }
  0x13   : > { %p37_p5 = scmp.ge.s32.totalorder %s35_s10, 2  ;;  %p52_p7 = scmp.eq.s32.totalorder %s2770_s9, 0 }
  0x14   : > { %s44_s12 = sadd.s32 1, %s2758_s30  ;;  %p2196_p10 = scmp.ge.s32.totalorder %s2770_s9, 2 }
  0x15   : > { %s3898_s10 = smov (%p37_p5, %s35_s10), 0  ;;  %p53_p8 = por %p52_p7, %p51_p6 }
  0x16   : > { %s40_s11 = ssub.s32 %s2766_s0, %s3898_s10  ;;  %236 = sbr.rel (%p2196_p10) target bundleno = 54 (0x36), region = 32 }
  0x17   : > { %p42_p9 = scmp.eq.s32.totalorder %s40_s11, 0 }
  0x19   : > { %s2904_s13 = scalar_select %p42_p9, %s2758_s30, %s44_s12  }
  0x1d   : > { %239 = sbr.rel (!%p53_p8) target bundleno = 54 (0x36), region = 36  ;;  %s241_s14 = sand.u32 (%p53_p8), 1, %s2758_s30  }
  0x1e   : > { %s2198_s15 = sshll.u32 (%p53_p8), %s2766_s0, 2  ;;  %s2197_s16 = sshll.u32 (%p53_p8), %s241_s14, 7 }
  0x1f   : > { %s2912_s19 = scalar_lea.vmem (%p53_p8), %s3832_s1, %s2198_s15  ;;  %s2916_s20 = scalar_lea.vmem (%p53_p8), [#allocation5], %s2197_s16 }
  0x20   : > { %v264_v0 = vld [vmem:[%s2912_s19] sm:$0xf] (%p53_p8)  ;;  %v266_v1 = vld [vmem:[%s2912_s19 + $0x8] sm:$0xf] (%p53_p8)  ;;  %v268_v2 = vld [vmem:[%s2912_s19 + $0x10] sm:$0xf] (%p53_p8) }
  0x21   : > { %265 = vst [vmem:[%s2916_s20] sm:$0xf] (%p53_p8), %v264_v0  ;;  %267 = vst [vmem:[%s2916_s20 + $0x4] sm:$0xf] (%p53_p8), %v266_v1  ;;  %v270_v3 = vld [vmem:[%s2912_s19 + $0x18] sm:$0xf] (%p53_p8) }
  0x22   : > { %v272_v4 = vld [vmem:[%s2912_s19 + $0x20] sm:$0xf] (%p53_p8)  ;;  %269 = vst [vmem:[%s2916_s20 + $0x8] sm:$0xf] (%p53_p8), %v268_v2  ;;  %271 = vst [vmem:[%s2916_s20 + $0xc] sm:$0xf] (%p53_p8), %v270_v3 }
  0x23   : > { %273 = vst [vmem:[%s2916_s20 + $0x10] sm:$0xf] (%p53_p8), %v272_v4  ;;  %v274_v5 = vld [vmem:[%s2912_s19 + $0x28] sm:$0xf] (%p53_p8)  ;;  %v276_v6 = vld [vmem:[%s2912_s19 + $0x30] sm:$0xf] (%p53_p8) }
  0x24   : > { %v278_v7 = vld [vmem:[%s2912_s19 + $0x38] sm:$0xf]  ;;  %275 = vst [vmem:[%s2916_s20 + $0x14] sm:$0xf] %v274_v5  ;;  %277 = vst [vmem:[%s2916_s20 + $0x18] sm:$0xf] %v276_v6 }
  0x25   : > { %279 = vst [vmem:[%s2916_s20 + $0x1c] sm:$0xf] %v278_v7  ;;  %v280_v8 = vld [vmem:[%s2912_s19 + $0x40] sm:$0xf]  ;;  %v282_v9 = vld [vmem:[%s2912_s19 + $0x48] sm:$0xf] }
  0x26   : > { %v284_v10 = vld [vmem:[%s2912_s19 + $0x50] sm:$0xf]  ;;  %281 = vst [vmem:[%s2916_s20 + $0x20] sm:$0xf] %v280_v8  ;;  %283 = vst [vmem:[%s2916_s20 + $0x24] sm:$0xf] %v282_v9 }
  0x27   : > { %285 = vst [vmem:[%s2916_s20 + $0x28] sm:$0xf] %v284_v10  ;;  %v286_v11 = vld [vmem:[%s2912_s19 + $0x58] sm:$0xf]  ;;  %v288_v12 = vld [vmem:[%s2912_s19 + $0x60] sm:$0xf] }
  0x28   : > { %v290_v13 = vld [vmem:[%s2912_s19 + $0x68] sm:$0xf]  ;;  %287 = vst [vmem:[%s2916_s20 + $0x2c] sm:$0xf] %v286_v11  ;;  %289 = vst [vmem:[%s2916_s20 + $0x30] sm:$0xf] %v288_v12 }
  0x29   : > { %291 = vst [vmem:[%s2916_s20 + $0x34] sm:$0xf] %v290_v13  ;;  %v292_v14 = vld [vmem:[%s2912_s19 + $0x70] sm:$0xf]  ;;  %v294_v15 = vld [vmem:[%s2912_s19 + $0x78] sm:$0xf] }
  0x2a   : > { %v296_v16 = vld [vmem:[%s2912_s19 + $0x80] sm:$0xf]  ;;  %293 = vst [vmem:[%s2916_s20 + $0x38] sm:$0xf] %v292_v14  ;;  %295 = vst [vmem:[%s2916_s20 + $0x3c] sm:$0xf] %v294_v15 }
  0x2b   : > { %297 = vst [vmem:[%s2916_s20 + $0x40] sm:$0xf] %v296_v16  ;;  %v298_v17 = vld [vmem:[%s2912_s19 + $0x88] sm:$0xf]  ;;  %v300_v18 = vld [vmem:[%s2912_s19 + $0x90] sm:$0xf] }
  0x2c   : > { %v302_v19 = vld [vmem:[%s2912_s19 + $0x98] sm:$0xf]  ;;  %299 = vst [vmem:[%s2916_s20 + $0x44] sm:$0xf] %v298_v17  ;;  %301 = vst [vmem:[%s2916_s20 + $0x48] sm:$0xf] %v300_v18 }
  0x2d   : > { %303 = vst [vmem:[%s2916_s20 + $0x4c] sm:$0xf] %v302_v19  ;;  %v304_v20 = vld [vmem:[%s2912_s19 + $0xa0] sm:$0xf]  ;;  %v306_v21 = vld [vmem:[%s2912_s19 + $0xa8] sm:$0xf] }
  0x2e   : > { %v308_v22 = vld [vmem:[%s2912_s19 + $0xb0] sm:$0xf]  ;;  %305 = vst [vmem:[%s2916_s20 + $0x50] sm:$0xf] %v304_v20  ;;  %307 = vst [vmem:[%s2916_s20 + $0x54] sm:$0xf] %v306_v21 }
  0x2f   : > { %309 = vst [vmem:[%s2916_s20 + $0x58] sm:$0xf] %v308_v22  ;;  %v310_v23 = vld [vmem:[%s2912_s19 + $0xb8] sm:$0xf]  ;;  %v312_v24 = vld [vmem:[%s2912_s19 + $0xc0] sm:$0xf] }
  0x30   : > { %v314_v25 = vld [vmem:[%s2912_s19 + $0xc8] sm:$0xf]  ;;  %311 = vst [vmem:[%s2916_s20 + $0x5c] sm:$0xf] %v310_v23  ;;  %313 = vst [vmem:[%s2916_s20 + $0x60] sm:$0xf] %v312_v24 }
  0x31   : > { %315 = vst [vmem:[%s2916_s20 + $0x64] sm:$0xf] %v314_v25  ;;  %v316_v26 = vld [vmem:[%s2912_s19 + $0xd0] sm:$0xf]  ;;  %v318_v27 = vld [vmem:[%s2912_s19 + $0xd8] sm:$0xf] }
  0x32   : > { %v320_v28 = vld [vmem:[%s2912_s19 + $0xe0] sm:$0xf]  ;;  %317 = vst [vmem:[%s2916_s20 + $0x68] sm:$0xf] %v316_v26  ;;  %319 = vst [vmem:[%s2916_s20 + $0x6c] sm:$0xf] %v318_v27 }
  0x33   : > { %321 = vst [vmem:[%s2916_s20 + $0x70] sm:$0xf] %v320_v28  ;;  %v322_v29 = vld [vmem:[%s2912_s19 + $0xe8] sm:$0xf]  ;;  %v324_v30 = vld [vmem:[%s2912_s19 + $0xf0] sm:$0xf] }
  0x34   : > { %v326_v31 = vld [vmem:[%s2912_s19 + $0xf8] sm:$0xf]  ;;  %323 = vst [vmem:[%s2916_s20 + $0x74] sm:$0xf] %v322_v29  ;;  %325 = vst [vmem:[%s2916_s20 + $0x78] sm:$0xf] %v324_v30 }
  0x35   : > { %327 = vst [vmem:[%s2916_s20 + $0x7c] sm:$0xf] %v326_v31 }
  0x36 PF: > { %p2199_p11 = scmp.ge.s32.totalorder %s2770_s9, 1  ;;  %p422_p12 = scmp.lt.s32.totalorder %s2770_s9, 3 }
  0x38   : > { %p423_p13 = pnand %p2199_p11, %p422_p12 }
  0x39   : > { %s429_s21 = sand.u32 (!%p423_p13), 1, %s2754_s29   ;;  %s2201_s22 = sshll.u32 (!%p423_p13), %s2762_s8, 4  ;;  %v2809_v32 = vmov (!%p423_p13), 0  }
  0x3a   : > { %426 = sbr.rel (%p423_p13) target bundleno = 1170 (0x492), region = 81  ;;  %s2984_s23 = sshll.u32 (!%p423_p13), %s429_s21, 7  ;;  %492 = vst [vmem:[#allocation2] sm:$0xff] (!%p423_p13), %v2809_v32  ;;  %493 = vst [vmem:[#allocation2 + $0x8] sm:$0xff] (!%p423_p13), %v2809_v32 }
  0x3b   : > { %p476_p0 = scmp.lt.s32.totalorder (!%p423_p13), %s2201_s22, 31  ;;  %494 = vst [vmem:[#allocation2 + $0x10] sm:$0xff] (!%p423_p13), %v2809_v32  ;;  %495 = vst [vmem:[#allocation2 + $0x18] sm:$0xff] (!%p423_p13), %v2809_v32  ;;  %s2205_s24 = sshll.u32 (!%p423_p13), %s2762_s8, 7 }
  0x3c   : > { %496 = vst [vmem:[#allocation2 + $0x20] sm:$0xff] (!%p423_p13), %v2809_v32  ;;  %497 = vst [vmem:[#allocation2 + $0x28] sm:$0xff] (!%p423_p13), %v2809_v32  ;;  %s507_s25 = sld [smem:[#allocation4 + %s2205_s24]] (!%p423_p13)  ;;  %s431_s15 = scalar_lea.vmem (!%p423_p13), [#allocation5], %s2984_s23 }
  0x3d   : > { %498 = vst [vmem:[#allocation2 + $0x30] sm:$0xff] (!%p423_p13), %v2809_v32  ;;  %499 = vst [vmem:[#allocation2 + $0x38] sm:$0xff] (!%p423_p13), %v2809_v32 }
  0x41   : > { %s3900_s22 = smov (!%p476_p0, %s2201_s22), 31 }
  0x42   : > { %s2202_s26 = sshll.u32 %s3900_s22, 2  ;;  %p2206_p1 = scmp.le.s32.totalorder %s507_s25, 0 }
  0x43   : > { %s2990_s29 = scalar_lea.vmem %s3834_s3, %s2202_s26  ;;  %s2995_s14 = scalar_lea.vmem %s3838_s7, %s2202_s26  ;;  %v512_v33 = vld [vmem:[#allocation2] sm:$0xff] (!%p2206_p1)   ;;  %v513_v34 = vld [vmem:[#allocation2 + $0x8] sm:$0xff] (!%p2206_p1)   ;;  %v514_v35 = vld [vmem:[#allocation2 + $0x10] sm:$0xff] (!%p2206_p1)  }
  0x44   : > { %511 = sbr.rel (%p2206_p1) target bundleno = 725 (0x2d5), region = 93  ;;  %v515_v36 = vld [vmem:[#allocation2 + $0x18] sm:$0xff] (!%p2206_p1)   ;;  %v516_v37 = vld [vmem:[#allocation2 + $0x20] sm:$0xff] (!%p2206_p1)   ;;  %v517_v38 = vld [vmem:[#allocation2 + $0x28] sm:$0xff] (!%p2206_p1)   ;;  %s3014_s8 = smov (!%p2206_p1), 0  }
  0x45   : > { %v518_v39 = vld [vmem:[#allocation2 + $0x30] sm:$0xff] (!%p2206_p1)   ;;  %v519_v40 = vld [vmem:[#allocation2 + $0x38] sm:$0xff] (!%p2206_p1)  }
  0x4b LB: >> { %s2207_s16 = sshll.u32 %s2806_s8, 4  ;;  %v2810_v44 = vmov 0   ;;  %v2811_v49 = vmov 1   ;;  %v2812_v51 = vmov 2   ;;  %v2813_v55 = vmov 3   ;;  %s525_s8 = sadd.s32 1, %s2806_s8   ;;  %s2806_s8 = sphi %s3014_s8, %s525_s8   ;;  %v2802_v33 = vphi %v512_v33, %v3892_v33   ;;  %v2798_v34 = vphi %v513_v34, %v3891_v34   ;;  %v2794_v35 = vphi %v514_v35, %v3890_v35   ;;  %v2790_v36 = vphi %v515_v36, %v3889_v36   ;;  %v2786_v37 = vphi %v516_v37, %v3888_v37   ;;  %v2782_v38 = vphi %v517_v38, %v3887_v38   ;;  %v2778_v39 = vphi %v518_v39, %v3886_v39   ;;  %v2774_v40 = vphi %v519_v40, %v3885_v40  }
  0x4c   : >> { %s3044_s17 = sshra.s32 %s2207_s16, 3  ;;  %2563 = vset.pattern.permute.xlu1 %v2810_v44  ;;  %v2814_v57 = vmov 4   ;;  %v2815_v58 = vmov 5   ;;  %v2816_v10 = vmov 6   ;;  %v2817_v11 = vmov 7   ;;  %p522_p2 = scmp.ge.s32.totalorder %s525_s8, 16  }
  0x4d   : >> { %s2208_s18 = sshll.u32 %s3044_s17, 2  ;;  %v2818_v12 = vmov 8   ;;  %v3845_v13 = vmov 9   ;;  %v3844_v15 = vmov 10   ;;  %v3843_v19 = vmov 11  }
  0x4e   : >> { %s538_s19 = scalar_lea.vmem %s431_s15, %s2208_s18 [#allocation5]  ;;  %v3842_v26 = vmov 12   ;;  %v630_v29 = vlaneseq  ;;  %s3203_s22 = scalar_lea.vmem %s3833_s2, %s2208_s18 }
  0x4f   : >> { %v2270_v41 = vld [vmem:[%s538_s19] sm:$0xff]  }
  0x50   : >> { %v2271_v42 = vunpack.c.l.bf16 %v2270_v41  ;;  %v2272_v43 = vunpack.c.h.bf16 %v2270_v41  ;;  %v631_v32 = vshrl.u32 %v630_v29, 7  ;;  %v585_v41 = vld [vmem:[%s3203_s22] sm:$0xf]  ;;  %v3840_v29 = vmov 14  }
  0x52   : >> { %543 = vxpose.xlu0.b32.start [1/2] (short) %v2271_v42, 128 }
  0x56   : >> { %544 = vxpose.xlu0.b32.end [2/2] (short) %v2272_v43, 128  ;;  %v682_v43 = vshrl.u32 %v585_v41, 16 }
  0x7f   : >> { %2572 = vset.pattern.permute.xlu0 %v2810_v44 }
  0xd2   : >> { %v559_v45 = vpop.trf.xlu0 }
  0xd6   : >> { %v560_v46 = vpop.trf.xlu0 }
  0xd7   : >> { %v3053_v47 = vpack.c.bf16 %v560_v46, %v559_v45  ;;  %v628_v45 = vpack.i.b16 %v585_v41, %v585_v41  ;;  %v3214_v46 = vsub.s32 0, %v631_v32  ;;  %v3270_v41 = vsub.s32 3, %v631_v32 }
  0xd9   : >> { %589 = vperm.xlu1 %2563, %v3053_v47   ;;  %3862 = vst [vmem:[#allocation11_spill] sm:$0xff] %v3214_v46 }
  0xda   : >> { %v561_v48 = vpop.trf.xlu0 }
  0xdd   : >> { %2564 = vset.pattern.permute.xlu1 %v2811_v49 }
  0xde   : >> { %651 = vperm.xlu1 %2564, %v3053_v47   ;;  %v562_v50 = vpop.trf.xlu0 }
  0xdf   : >> { %v3071_v61 = vpack.c.bf16 %v562_v50, %v561_v48 }
  0xe1   : >> { %3858 = vst [vmem:[#allocation7_spill] sm:$0xff] %v3071_v61 }
  0xe2   : >> { %2565 = vset.pattern.permute.xlu1 %v2812_v51  ;;  %v563_v52 = vpop.trf.xlu0 }
  0xe3   : >> { %706 = vperm.xlu1 %2565, %v3053_v47  }
  0xe6   : >> { %v564_v53 = vpop.trf.xlu0 }
  0xe7   : >> { %v3060_v54 = vpack.c.bf16 %v564_v53, %v563_v52  ;;  %2566 = vset.pattern.permute.xlu1 %v2813_v55  ;;  %v3225_v52 = vrot.slane %v628_v45, %v3214_v46  ;;  %v3227_v53 = vsub.s32 1, %v631_v32 }
  0xe8   : >> { %758 = vperm.xlu1 %2566, %v3053_v47  }
  0xe9   : >> { %599 = vperm.xlu0 %2572, %v3060_v54   ;;  %3863 = vst [vmem:[#allocation12_spill] sm:$0xff] %v3227_v53 }
  0xea   : >> { %v565_v56 = vpop.trf.xlu0 }
  0xec   : >> { %2567 = vset.pattern.permute.xlu1 %v2814_v57 }
  0xed   : >> { %810 = vperm.xlu1 %2567, %v3053_v47   ;;  %2573 = vset.pattern.permute.xlu0 %v2815_v58 }
  0xee   : >> { %862 = vperm.xlu0 %2573, %v3053_v47   ;;  %v566_v59 = vpop.trf.xlu0 }
  0xef   : >> { %v3069_v60 = vpack.c.bf16 %v566_v59, %v565_v56 }
  0xf1   : >> { %2568 = vset.pattern.permute.xlu1 %v2810_v44 }
  0xf2   : >> { %594 = vperm.xlu1 %2568, %v3071_v61   ;;  %874 = vperm.xlu0 %2573, %v3069_v60   ;;  %v567_v62 = vpop.trf.xlu0 }
  0xf6   : >> { %2569 = vset.pattern.permute.xlu1 %v2811_v49  ;;  %2585 = vset.pattern.permute.xlu0 %v2814_v57  ;;  %v568_v63 = vpop.trf.xlu0 }
  0xf7   : >> { %v3078_v0 = vpack.c.bf16 %v568_v63, %v567_v62  ;;  %655 = vperm.xlu1 %2569, %v3071_v61   ;;  %814 = vperm.xlu0 %2585, %v3071_v61   ;;  %v3242_v62 = vrot.slane %v628_v45, %v3227_v53 }
  0xf9   : >> { %3859 = vst [vmem:[#allocation8_spill] sm:$0xff] %v3078_v0 }
  0xfa   : >> { %v569_v1 = vpop.trf.xlu0 }
  0xfb   : >> { %2570 = vset.pattern.permute.xlu1 %v2812_v51  ;;  %826 = vperm.xlu0 %2585, %v3078_v0  }
  0xfc   : >> { %710 = vperm.xlu1 %2570, %v3071_v61  }
  0xfe   : >> { %v570_v2 = vpop.trf.xlu0 }
  0xff   : >> { %v3101_v9 = vpack.c.bf16 %v570_v2, %v569_v1 }
 0x100   : >> { %2571 = vset.pattern.permute.xlu1 %v2813_v55 }
 0x101   : >> { %762 = vperm.xlu1 %2571, %v3071_v61  }
 0x102   : >> { %v571_v3 = vpop.trf.xlu0 }
 0x105   : >> { %2574 = vset.pattern.permute.xlu1 %v2815_v58 }
 0x106   : >> { %866 = vperm.xlu1 %2574, %v3071_v61   ;;  %v572_v4 = vpop.trf.xlu0 }
 0x107   : >> { %v3089_v5 = vpack.c.bf16 %v572_v4, %v571_v3  ;;  %v3256_v4 = vsub.s32 2, %v631_v32  ;;  %v3286_v32 = vrot.slane %v628_v45, %v3270_v41 }
 0x109   : >> { %3860 = vst [vmem:[#allocation9_spill] sm:$0xff] %v3089_v5  ;;  %834 = vperm.xlu0 %2585, %v3089_v5   ;;  %3864 = vst [vmem:[#allocation13_spill] sm:$0xff] %v3256_v4 }
 0x10a   : >> { %2575 = vset.pattern.permute.xlu1 %v2811_v49  ;;  %v573_v6 = vpop.trf.xlu0 }
 0x10b   : >> { %659 = vperm.xlu1 %2575, %v3060_v54  }
 0x10d   : >> { %2598 = vset.pattern.permute.xlu0 %v2813_v55 }
 0x10e   : >> { %774 = vperm.xlu0 %2598, %v3078_v0   ;;  %v574_v7 = vpop.trf.xlu0 }
 0x10f   : >> { %2576 = vset.pattern.permute.xlu1 %v2812_v51  ;;  %v3097_v8 = vpack.c.bf16 %v574_v7, %v573_v6 }
 0x110   : >> { %714 = vperm.xlu1 %2576, %v3060_v54  }
 0x112   : >> { %786 = vperm.xlu0 %2598, %v3097_v8  }
 0x114   : >> { %2577 = vset.pattern.permute.xlu1 %v2813_v55 }
 0x115   : >> { %766 = vperm.xlu1 %2577, %v3060_v54  }
 0x116   : >> { %2603 = vset.pattern.permute.xlu0 %v2815_v58 }
 0x117   : >> { %882 = vperm.xlu0 %2603, %v3101_v9  }
 0x119   : >> { %2578 = vset.pattern.permute.xlu1 %v2814_v57 }
 0x11a   : >> { %818 = vperm.xlu1 %2578, %v3060_v54  }
 0x11b   : >> { %890 = vperm.xlu0 %2603, %v3097_v8  }
 0x11e   : >> { %2579 = vset.pattern.permute.xlu1 %v2815_v58 }
 0x11f   : >> { %870 = vperm.xlu1 %2579, %v3060_v54   ;;  %2607 = vset.pattern.permute.xlu0 %v2816_v10 }
 0x120   : >> { %918 = vperm.xlu0 %2607, %v3071_v61  }
 0x123   : >> { %2580 = vset.pattern.permute.xlu1 %v2810_v44 }
 0x124   : >> { %604 = vperm.xlu1 %2580, %v3069_v60   ;;  %930 = vperm.xlu0 %2607, %v3078_v0  }
 0x128   : >> { %2581 = vset.pattern.permute.xlu1 %v2811_v49  ;;  %938 = vperm.xlu0 %2607, %v3089_v5  }
 0x129   : >> { %663 = vperm.xlu1 %2581, %v3069_v60  }
 0x12c   : >> { %2608 = vset.pattern.permute.xlu0 %v2817_v11 }
 0x12d   : >> { %2582 = vset.pattern.permute.xlu1 %v2812_v51  ;;  %966 = vperm.xlu0 %2608, %v3053_v47  }
 0x12e   : >> { %718 = vperm.xlu1 %2582, %v3069_v60  }
 0x131   : >> { %978 = vperm.xlu0 %2608, %v3069_v60  }
 0x132   : >> { %2583 = vset.pattern.permute.xlu1 %v2813_v55 }
 0x133   : >> { %770 = vperm.xlu1 %2583, %v3069_v60  }
 0x135   : >> { %986 = vperm.xlu0 %2608, %v3101_v9  }
 0x137   : >> { %2584 = vset.pattern.permute.xlu1 %v2814_v57 }
 0x138   : >> { %822 = vperm.xlu1 %2584, %v3069_v60  }
 0x139   : >> { %994 = vperm.xlu0 %2608, %v3097_v8  }
 0x13c   : >> { %2586 = vset.pattern.permute.xlu1 %v2810_v44 }
 0x13d   : >> { %609 = vperm.xlu1 %2586, %v3078_v0   ;;  %2611 = vset.pattern.permute.xlu0 %v2818_v12 }
 0x13e   : >> { %1022 = vperm.xlu0 %2611, %v3071_v61  }
 0x141   : >> { %2587 = vset.pattern.permute.xlu1 %v2811_v49 }
 0x142   : >> { %667 = vperm.xlu1 %2587, %v3078_v0   ;;  %1034 = vperm.xlu0 %2611, %v3078_v0  }
 0x146   : >> { %2588 = vset.pattern.permute.xlu1 %v2812_v51  ;;  %1042 = vperm.xlu0 %2611, %v3089_v5  }
 0x147   : >> { %722 = vperm.xlu1 %2588, %v3078_v0  }
 0x14a   : >> { %2612 = vset.pattern.permute.xlu0 %v3845_v13 }
 0x14b   : >> { %2589 = vset.pattern.permute.xlu1 %v2810_v44  ;;  %1073 = vperm.xlu0 %2612, %v3053_v47  }
 0x14c   : >> { %614 = vperm.xlu1 %2589, %v3101_v9  }
 0x14f   : >> { %1085 = vperm.xlu0 %2612, %v3069_v60  }
 0x150   : >> { %2590 = vset.pattern.permute.xlu1 %v2811_v49 }
 0x151   : >> { %671 = vperm.xlu1 %2590, %v3101_v9  }
 0x153   : >> { %1093 = vperm.xlu0 %2612, %v3101_v9  }
 0x155   : >> { %2591 = vset.pattern.permute.xlu1 %v2812_v51 }
 0x156   : >> { %726 = vperm.xlu1 %2591, %v3101_v9  }
 0x157   : >> { %1101 = vperm.xlu0 %2612, %v3097_v8  }
 0x158   : >> { %v3152_v14 = vpop.permute.xlu1 %589 }
 0x15a   : >> { %2592 = vset.pattern.permute.xlu1 %v2813_v55 }
 0x15b   : >> { %778 = vperm.xlu1 %2592, %v3101_v9   ;;  %2615 = vset.pattern.permute.xlu0 %v3844_v15 }
 0x15c   : >> { %1132 = vperm.xlu0 %2615, %v3071_v61  }
 0x15d   : >> { %v3158_v16 = vpop.permute.xlu1 %651 }
 0x15f   : >> { %2593 = vset.pattern.permute.xlu1 %v2814_v57 }
 0x160   : >> { %830 = vperm.xlu1 %2593, %v3101_v9   ;;  %1144 = vperm.xlu0 %2615, %v3078_v0  }
 0x162   : >> { %v3163_v17 = vpop.permute.xlu1 %706 }
 0x164   : >> { %2594 = vset.pattern.permute.xlu1 %v2810_v44  ;;  %1152 = vperm.xlu0 %2615, %v3089_v5  }
 0x165   : >> { %619 = vperm.xlu1 %2594, %v3089_v5  }
 0x167   : >> { %v3168_v18 = vpop.permute.xlu1 %758 }
 0x168   : >> { %2616 = vset.pattern.permute.xlu0 %v3843_v19  ;;  %v3174_v20 = vpop.permute.xlu0 %599 }
 0x169   : >> { %2595 = vset.pattern.permute.xlu1 %v2811_v49  ;;  %1180 = vperm.xlu0 %2616, %v3053_v47  }
 0x16a   : >> { %675 = vperm.xlu1 %2595, %v3089_v5  }
 0x16c   : >> { %v3176_v21 = vpop.permute.xlu1 %810 }
 0x16d   : >> { %1192 = vperm.xlu0 %2616, %v3069_v60   ;;  %v3182_v23 = vpop.permute.xlu0 %862 }
 0x16e   : >> { %2596 = vset.pattern.permute.xlu1 %v2812_v51 }
 0x16f   : >> { %730 = vperm.xlu1 %2596, %v3089_v5  }
 0x171   : >> { %v595_v22 = vpop.permute.xlu1 %594  ;;  %1200 = vperm.xlu0 %2616, %v3101_v9   ;;  %v3187_v25 = vpop.permute.xlu0 %874 }
 0x172   : >> { %3861 = vst [vmem:[#allocation10_spill] sm:$0xff] %v3187_v25  ;;  %v635_v56 = vmul.bf16 %v3225_v52, %v595_v22 }
 0x173   : >> { %2597 = vset.pattern.permute.xlu1 %v2813_v55 }
 0x174   : >> { %782 = vperm.xlu1 %2597, %v3089_v5   ;;  %v643_v2 = vmax.bf16 %v2798_v34, %v635_v56  ;;  %v3267_v34 = vrot.slane %v628_v45, %v3256_v4 }
 0x175   : >> { %1208 = vperm.xlu0 %2616, %v3097_v8  }
 0x176   : >> { %v656_v24 = vpop.permute.xlu1 %655  ;;  %v3194_v28 = vpop.permute.xlu0 %814 }
 0x178   : >> { %2599 = vset.pattern.permute.xlu1 %v2815_v58 }
 0x179   : >> { %878 = vperm.xlu1 %2599, %v3078_v0   ;;  %2619 = vset.pattern.permute.xlu0 %v3842_v26 }
 0x17a   : >> { %1236 = vperm.xlu0 %2619, %v3071_v61   ;;  %v3207_v31 = vpop.permute.xlu0 %826 }
 0x17b   : >> { %v711_v27 = vpop.permute.xlu1 %710 }
 0x17c   : >> { %v742_v3 = vmul.bf16 %v3242_v62, %v711_v27 }
 0x17d   : >> { %2600 = vset.pattern.permute.xlu1 %v2810_v44  ;;  %v3841_v44 = vmov 13  }
 0x17e   : >> { %1248 = vperm.xlu0 %2619, %v3078_v0   ;;  %624 = vperm.xlu1 %2600, %v3097_v8  }
 0x180   : >> { %v763_v30 = vpop.permute.xlu1 %762 }
 0x182   : >> { %1256 = vperm.xlu0 %2619, %v3089_v5   ;;  %2601 = vset.pattern.permute.xlu1 %v2811_v49  ;;  %v3219_v49 = vpack.i.b16 %v682_v43, %v682_v43  ;;  %v846_v43 = vmul.bf16 %v3267_v34, %v3194_v28 }
 0x183   : >> { %679 = vperm.xlu1 %2601, %v3097_v8  }
 0x184   : >> { %v3235_v55 = vrot.slane %v3219_v49, %v3214_v46  ;;  %v3250_v1 = vrot.slane %v3219_v49, %v3227_v53 }
 0x185   : >> { %v867_v42 = vpop.permute.xlu1 %866 }
 0x186   : >> { %2620 = vset.pattern.permute.xlu0 %v3841_v44  ;;  %v690_v63 = vmul.bf16 %v3235_v55, %v656_v24  ;;  %v794_v7 = vmul.bf16 %v3250_v1, %v763_v30 }
 0x187   : >> { %1284 = vperm.xlu0 %2620, %v3053_v47   ;;  %2602 = vset.pattern.permute.xlu1 %v2812_v51 }
 0x188   : >> { %734 = vperm.xlu1 %2602, %v3097_v8   ;;  %v3217_v48 = vpop.permute.xlu0 %834  ;;  %v698_v6 = vmax.bf16 %v690_v63, %v643_v2 }
 0x18a   : >> { %v3221_v50 = vpop.permute.xlu1 %659  ;;  %v750_v22 = vmax.bf16 %v742_v3, %v698_v6 }
 0x18b   : >> { %1296 = vperm.xlu0 %2620, %v3069_v60  }
 0x18c   : >> { %2604 = vset.pattern.permute.xlu1 %v2814_v57  ;;  %v802_v27 = vmax.bf16 %v794_v7, %v750_v22 }
 0x18d   : >> { %838 = vperm.xlu1 %2604, %v3097_v8   ;;  %v3231_v51 = vpop.permute.xlu0 %774 }
 0x18e   : >> { %v854_v63 = vmax.bf16 %v846_v43, %v802_v27 }
 0x18f   : >> { %v3238_v59 = vpop.permute.xlu1 %714  ;;  %1304 = vperm.xlu0 %2620, %v3101_v9  }
 0x191   : >> { %2605 = vset.pattern.permute.xlu1 %v2815_v58  ;;  %v3246_v57 = vpop.permute.xlu0 %786 }
 0x192   : >> { %886 = vperm.xlu1 %2605, %v3089_v5  }
 0x193   : >> { %1312 = vperm.xlu0 %2620, %v3097_v8  }
 0x194   : >> { %v3259_v58 = vpop.permute.xlu1 %766 }
 0x196   : >> { %2606 = vset.pattern.permute.xlu1 %v2816_v10  ;;  %v3262_v24 = vpop.permute.xlu0 %882  ;;  %v3276_v10 = vrot.slane %v3219_v49, %v3256_v4 }
 0x197   : >> { %3865 = vst [vmem:[#allocation14_spill] sm:$0xff] %v3262_v24  ;;  %2623 = vset.pattern.permute.xlu0 %v3840_v29  ;;  %914 = vperm.xlu1 %2606, %v3053_v47  }
 0x198   : >> { %1340 = vperm.xlu0 %2623, %v3071_v61   ;;  %v898_v2 = vmul.bf16 %v3276_v10, %v867_v42  ;;  %v3839_v42 = vmov 15  }
 0x199   : >> { %v3272_v30 = vpop.permute.xlu1 %818 }
 0x19a   : >> { %v3280_v56 = vpop.permute.xlu0 %890  ;;  %v906_v7 = vmax.bf16 %v898_v2, %v854_v63 }
 0x19b   : >> { %922 = vperm.xlu1 %2606, %v3060_v54  }
 0x19c   : >> { %1352 = vperm.xlu0 %2623, %v3078_v0  }
 0x19e   : >> { %v3288_v3 = vpop.permute.xlu1 %870 }
 0x19f   : >> { %926 = vperm.xlu1 %2606, %v3069_v60   ;;  %v919_v6 = vpop.permute.xlu0 %918 }
 0x1a0   : >> { %v950_v28 = vmul.bf16 %v3286_v32, %v919_v6  ;;  %1360 = vperm.xlu0 %2623, %v3089_v5  }
 0x1a2   : >> { %v3293_v22 = vmax.bf16 %v950_v28, %v906_v7 }
 0x1a3   : >> { %v3295_v27 = vpop.permute.xlu1 %604  ;;  %934 = vperm.xlu1 %2606, %v3101_v9  }
 0x1a4   : >> { %3866 = vst [vmem:[#allocation15_spill] sm:$0xff] %v3293_v22  ;;  %2624 = vset.pattern.permute.xlu0 %v3839_v42 }
 0x1a5   : >> { %1388 = vperm.xlu0 %2624, %v3053_v47  }
 0x1a7   : >> { %942 = vperm.xlu1 %2606, %v3097_v8  }
 0x1a8   : >> { %v3301_v45 = vpop.permute.xlu1 %663 }
 0x1a9   : >> { %1400 = vperm.xlu0 %2624, %v3069_v60  }
 0x1ab   : >> { %2609 = vset.pattern.permute.xlu1 %v2817_v11 }
 0x1ac   : >> { %970 = vperm.xlu1 %2609, %v3071_v61  }
 0x1ad   : >> { %v3306_v43 = vpop.permute.xlu1 %718  ;;  %1408 = vperm.xlu0 %2624, %v3101_v9  }
 0x1b0   : >> { %974 = vperm.xlu1 %2609, %v3060_v54  }
 0x1b1   : >> { %1416 = vperm.xlu0 %2624, %v3097_v8  }
 0x1b2   : >> { %v3311_v63 = vpop.permute.xlu1 %770 }
 0x1b4   : >> { %982 = vperm.xlu1 %2609, %v3078_v0  }
 0x1b7   : >> { %v3314_v2 = vpop.permute.xlu1 %822 }
 0x1b8   : >> { %990 = vperm.xlu1 %2609, %v3089_v5  }
 0x1bc   : >> { %v610_v6 = vpop.permute.xlu1 %609  ;;  %2610 = vset.pattern.permute.xlu1 %v2818_v12  ;;  %v797_v12 = vmul.bf16 %v3250_v1, %v3231_v51 }
 0x1bd   : >> { %1018 = vperm.xlu1 %2610, %v3053_v47   ;;  %v638_v11 = vmul.bf16 %v3225_v52, %v610_v6  ;;  %v849_v6 = vmul.bf16 %v3267_v34, %v3207_v31  ;;  %v3868_v31 = vmov 10  }
 0x1bf   : >> { %v646_v42 = vmax.bf16 %v2786_v37, %v638_v11 }
 0x1c1   : >> { %v668_v7 = vpop.permute.xlu1 %667  ;;  %1026 = vperm.xlu1 %2610, %v3060_v54  }
 0x1c2   : >> { %v693_v28 = vmul.bf16 %v3235_v55, %v668_v7 }
 0x1c4   : >> { %v701_v44 = vmax.bf16 %v693_v28, %v646_v42  ;;  %v3867_v42 = vmov 9   ;;  %v3869_v28 = vmov 11  }
 0x1c5   : >> { %1030 = vperm.xlu1 %2610, %v3069_v60  }
 0x1c6   : >> { %v723_v29 = vpop.permute.xlu1 %722 }
 0x1c7   : >> { %v745_v26 = vmul.bf16 %v3242_v62, %v723_v29 }
 0x1c9   : >> { %v753_v19 = vmax.bf16 %v745_v26, %v701_v44  ;;  %1038 = vperm.xlu1 %2610, %v3101_v9  }
 0x1cb   : >> { %v805_v15 = vmax.bf16 %v797_v12, %v753_v19  ;;  %v3330_v13 = vpop.permute.xlu1 %614  ;;  %v931_v12 = vpop.permute.xlu0 %930 }
 0x1cd   : >> { %1046 = vperm.xlu1 %2610, %v3097_v8   ;;  %v857_v37 = vmax.bf16 %v849_v6, %v805_v15 }
 0x1cf   : >> { %v3359_v46 = vpop.permute.xlu0 %938 }
 0x1d0   : >> { %v3333_v11 = vpop.permute.xlu1 %671 }
 0x1d1   : >> { %2613 = vset.pattern.permute.xlu1 %v3867_v42 }
 0x1d2   : >> { %1077 = vperm.xlu1 %2613, %v3071_v61  }
 0x1d3   : >> { %v3363_v25 = vpop.permute.xlu0 %966 }
 0x1d5   : >> { %v3337_v29 = vpop.permute.xlu1 %726 }
 0x1d6   : >> { %1081 = vperm.xlu1 %2613, %v3060_v54  }
 0x1da   : >> { %v3340_v26 = vpop.permute.xlu1 %778  ;;  %1089 = vperm.xlu1 %2613, %v3078_v0  }
 0x1de   : >> { %1097 = vperm.xlu1 %2613, %v3089_v5  }
 0x1df   : >> { %v3344_v19 = vpop.permute.xlu1 %830 }
 0x1e2   : >> { %2614 = vset.pattern.permute.xlu1 %v3868_v31  ;;  %v953_v31 = vmul.bf16 %v3286_v32, %v931_v12 }
 0x1e3   : >> { %1128 = vperm.xlu1 %2614, %v3053_v47  }
 0x1e4   : >> { %v620_v15 = vpop.permute.xlu1 %619 }
 0x1e7   : >> { %1136 = vperm.xlu1 %2614, %v3060_v54  }
 0x1e9   : >> { %v676_v44 = vpop.permute.xlu1 %675 }
 0x1eb   : >> { %1140 = vperm.xlu1 %2614, %v3069_v60  }
 0x1ee   : >> { %v731_v51 = vpop.permute.xlu1 %730 }
 0x1ef   : >> { %1148 = vperm.xlu1 %2614, %v3101_v9  }
 0x1f3   : >> { %v783_v7 = vpop.permute.xlu1 %782  ;;  %1156 = vperm.xlu1 %2614, %v3097_v8  }
 0x1f7   : >> { %2617 = vset.pattern.permute.xlu1 %v3869_v28 }
 0x1f8   : >> { %v879_v6 = vpop.permute.xlu1 %878  ;;  %1184 = vperm.xlu1 %2617, %v3071_v61   ;;  %v640_v61 = vmul.bf16 %v3225_v52, %v620_v15 }
 0x1f9   : >> { %v901_v42 = vmul.bf16 %v3276_v10, %v879_v6 }
 0x1fb   : >> { %v909_v4 = vmax.bf16 %v901_v42, %v857_v37  ;;  %v634_v37 = vmul.bf16 %v3225_v52, %v3152_v14  ;;  %v689_v42 = vmul.bf16 %v3235_v55, %v3158_v16  ;;  %v741_v14 = vmul.bf16 %v3242_v62, %v3163_v17 }
 0x1fc   : >> { %1188 = vperm.xlu1 %2617, %v3060_v54  }
 0x1fd   : >> { %v625_v53 = vpop.permute.xlu1 %624  ;;  %v3357_v22 = vmax.bf16 %v953_v31, %v909_v4  ;;  %v695_v4 = vmul.bf16 %v3235_v55, %v676_v44  ;;  %v648_v31 = vmax.bf16 %v2778_v39, %v640_v61  ;;  %v800_v39 = vmul.bf16 %v3250_v1, %v3246_v57  ;;  %v3386_v61 = vpop.permute.xlu0 %978 }
 0x1fe   : >> { %v641_v28 = vmul.bf16 %v3225_v52, %v625_v53  ;;  %v799_v44 = vmul.bf16 %v3250_v1, %v783_v7  ;;  %v637_v7 = vmul.bf16 %v3225_v52, %v3295_v27  ;;  %v897_v27 = vmul.bf16 %v3276_v10, %v3182_v23 }
 0x1ff   : >> { %3870 = vst [vmem:[#allocation16_spill] sm:$0xff] %v3357_v22  ;;  %v747_v22 = vmul.bf16 %v3242_v62, %v731_v51  ;;  %v703_v16 = vmax.bf16 %v695_v4, %v648_v31  ;;  %v847_v23 = vmul.bf16 %v3267_v34, %v3272_v30 }
 0x200   : >> { %1196 = vperm.xlu1 %2617, %v3078_v0   ;;  %v649_v12 = vmax.bf16 %v2774_v40, %v641_v28  ;;  %v3871_v0 = vmov 12   ;;  %v636_v40 = vmul.bf16 %v3225_v52, %v3174_v20  ;;  %v691_v20 = vmul.bf16 %v3235_v55, %v3221_v50 }
 0x201   : >> { %v755_v28 = vmax.bf16 %v747_v22, %v703_v16  ;;  %v743_v22 = vmul.bf16 %v3242_v62, %v3238_v59  ;;  %v904_v50 = vmul.bf16 %v3276_v10, %v3280_v56  ;;  %v3408_v31 = vpop.permute.xlu0 %986  ;;  %v795_v59 = vmul.bf16 %v3250_v1, %v3259_v58 }
 0x202   : >> { %v680_v24 = vpop.permute.xlu1 %679  ;;  %v644_v4 = vmax.bf16 %v2794_v35, %v636_v40  ;;  %v692_v35 = vmul.bf16 %v3235_v55, %v3301_v45  ;;  %v639_v58 = vmul.bf16 %v3225_v52, %v3330_v13  ;;  %v899_v13 = vmul.bf16 %v3276_v10, %v3288_v3 }
 0x203   : >> { %v696_v6 = vmul.bf16 %v3235_v55, %v680_v24 }
 0x204   : >> { %1204 = vperm.xlu1 %2617, %v3089_v5   ;;  %v642_v5 = vmax.bf16 %v2802_v33, %v634_v37  ;;  %v793_v33 = vmul.bf16 %v3250_v1, %v3168_v18  ;;  %v845_v18 = vmul.bf16 %v3267_v34, %v3176_v21  ;;  %v699_v21 = vmax.bf16 %v691_v20, %v644_v4 }
 0x205   : >> { %v704_v15 = vmax.bf16 %v696_v6, %v649_v12  ;;  %v995_v30 = vpop.permute.xlu0 %994 }
 0x207   : >> { %v735_v53 = vpop.permute.xlu1 %734 }
 0x208   : >> { %v748_v24 = vmul.bf16 %v3242_v62, %v735_v53  ;;  %2618 = vset.pattern.permute.xlu1 %v3871_v0  ;;  %v697_v0 = vmax.bf16 %v689_v42, %v642_v5  ;;  %v807_v5 = vmax.bf16 %v799_v44, %v755_v28  ;;  %v851_v53 = vmul.bf16 %v3267_v34, %v3217_v48 }
 0x209   : >> { %1232 = vperm.xlu1 %2618, %v3053_v47   ;;  %v744_v48 = vmul.bf16 %v3242_v62, %v3306_v43  ;;  %v955_v44 = vmul.bf16 %v3286_v32, %v3359_v46  ;;  %v848_v46 = vmul.bf16 %v3267_v34, %v3314_v2  ;;  %v798_v2 = vmul.bf16 %v3250_v1, %v3340_v26 }
 0x20a   : >> { %v756_v51 = vmax.bf16 %v748_v24, %v704_v15  ;;  %v749_v57 = vmax.bf16 %v741_v14, %v697_v0  ;;  %v645_v24 = vmax.bf16 %v2790_v36, %v637_v7  ;;  %v859_v45 = vmax.bf16 %v851_v53, %v807_v5 }
 0x20b   : >> { %v796_v36 = vmul.bf16 %v3250_v1, %v3311_v63  ;;  %v3431_v0 = vrot.slane %v3219_v49, %v3270_v41  ;;  %v647_v49 = vmax.bf16 %v2782_v38, %v639_v58 }
 0x20c   : >> { %v839_v17 = vpop.permute.xlu1 %838  ;;  %v808_v6 = vmax.bf16 %v800_v39, %v756_v51  ;;  %v801_v42 = vmax.bf16 %v793_v33, %v749_v57  ;;  %v751_v39 = vmax.bf16 %v743_v22, %v699_v21  ;;  %v700_v16 = vmax.bf16 %v692_v35, %v645_v24  ;;  %v1023_v22 = vpop.permute.xlu0 %1022 }
 0x20d   : >> { %v852_v37 = vmul.bf16 %v3267_v34, %v839_v17  ;;  %1240 = vperm.xlu1 %2618, %v3060_v54   ;;  %v694_v33 = vmul.bf16 %v3235_v55, %v3333_v11  ;;  %v1001_v3 = vmul.bf16 %v3431_v0, %v3363_v25  ;;  %v3872_v25 = vld [vmem:[#allocation10_spill] sm:$0xff] }
 0x20e   : >> { %v853_v40 = vmax.bf16 %v845_v18, %v801_v42  ;;  %v803_v43 = vmax.bf16 %v795_v59, %v751_v39  ;;  %v752_v52 = vmax.bf16 %v744_v48, %v700_v16  ;;  %v3874_v42 = vld [vmem:[#allocation7_spill] sm:$0xff]  ;;  %v1004_v59 = vmul.bf16 %v3431_v0, %v3386_v61 }
 0x20f   : >> { %v860_v12 = vmax.bf16 %v852_v37, %v808_v6  ;;  %v746_v6 = vmul.bf16 %v3242_v62, %v3337_v29  ;;  %v702_v37 = vmax.bf16 %v694_v33, %v647_v49  ;;  %v850_v62 = vmul.bf16 %v3267_v34, %v3344_v19  ;;  %v3875_v19 = vld [vmem:[#allocation14_spill] sm:$0xff] }
 0x210   : >> { %v905_v17 = vmax.bf16 %v897_v27, %v853_v40  ;;  %v855_v11 = vmax.bf16 %v847_v23, %v803_v43  ;;  %v804_v20 = vmax.bf16 %v796_v36, %v752_v52  ;;  %v902_v21 = vmul.bf16 %v3276_v10, %v3875_v19  ;;  %v1035_v24 = vpop.permute.xlu0 %1034 }
 0x211   : >> { %1244 = vperm.xlu1 %2618, %v3069_v60   ;;  %v887_v56 = vpop.permute.xlu1 %886  ;;  %v3415_v15 = vmax.bf16 %v904_v50, %v860_v12  ;;  %v754_v5 = vmax.bf16 %v746_v6, %v702_v37  ;;  %v900_v50 = vmul.bf16 %v3276_v10, %v3872_v25  ;;  %v3873_v12 = vmov 13  }
 0x212   : >> { %v903_v14 = vmul.bf16 %v3276_v10, %v887_v56  ;;  %v907_v4 = vmax.bf16 %v899_v13, %v855_v11  ;;  %v856_v7 = vmax.bf16 %v848_v46, %v804_v20  ;;  %v1006_v23 = vmul.bf16 %v3431_v0, %v3408_v31  ;;  %v3876_v10 = vld [vmem:[#allocation8_spill] sm:$0xff]  ;;  %v3877_v13 = vld [vmem:[#allocation11_spill] sm:$0xff]  ;;  %v3878_v46 = vld [vmem:[#allocation9_spill] sm:$0xff] }
 0x213   : >> { %v806_v1 = vmax.bf16 %v798_v2, %v754_v5  ;;  %v1008_v43 = vmul.bf16 %v3431_v0, %v995_v30 }
 0x214   : >> { %v911_v51 = vmax.bf16 %v903_v14, %v859_v45  ;;  %v908_v27 = vmax.bf16 %v900_v50, %v856_v7  ;;  %v586_v45 = vld [vmem:[%s3203_s22 + $0x4] sm:$0xf] }
 0x215   : >> { %1252 = vperm.xlu1 %2618, %v3101_v9   ;;  %v858_v35 = vmax.bf16 %v850_v62, %v806_v1  ;;  %v3470_v16 = vpack.i.b16 %v586_v45, %v586_v45  ;;  %v1104_v37 = vshrl.u32 %v586_v45, 16 }
 0x216   : >> { %v915_v63 = vpop.permute.xlu1 %914  ;;  %v3440_v28 = vmax.bf16 %v955_v44, %v911_v51  ;;  %v1043_v51 = vpop.permute.xlu0 %1042 }
 0x217   : >> { %v949_v55 = vmul.bf16 %v3286_v32, %v915_v63  ;;  %v910_v14 = vmax.bf16 %v902_v21, %v858_v35  ;;  %v1055_v52 = vrot.slane %v3470_v16, %v3877_v13  ;;  %v3487_v62 = vpack.i.b16 %v1104_v37, %v1104_v37 }
 0x219   : >> { %v957_v57 = vmax.bf16 %v949_v55, %v905_v17  ;;  %1260 = vperm.xlu1 %2618, %v3097_v8   ;;  %v1057_v49 = vmul.bf16 %v1055_v52, %v1023_v22  ;;  %v3879_v55 = vld [vmem:[#allocation15_spill] sm:$0xff]  ;;  %v1060_v7 = vmul.bf16 %v1055_v52, %v1035_v24  ;;  %v1062_v25 = vmul.bf16 %v1055_v52, %v1043_v51 }
 0x21a   : >> { %v923_v38 = vpop.permute.xlu1 %922  ;;  %v1074_v6 = vpop.permute.xlu0 %1073 }
 0x21b   : >> { %v951_v29 = vmul.bf16 %v3286_v32, %v923_v38  ;;  %v3454_v18 = vmax.bf16 %v1001_v3, %v957_v57  ;;  %v3881_v38 = vld [vmem:[#allocation16_spill] sm:$0xff] }
 0x21d   : >> { %v959_v26 = vmax.bf16 %v951_v29, %v907_v4  ;;  %2621 = vset.pattern.permute.xlu1 %v3873_v12 }
 0x21e   : >> { %1288 = vperm.xlu1 %2621, %v3874_v42   ;;  %v927_v53 = vpop.permute.xlu1 %926  ;;  %v1086_v57 = vpop.permute.xlu0 %1085 }
 0x21f   : >> { %v952_v34 = vmul.bf16 %v3286_v32, %v927_v53 }
 0x221   : >> { %v960_v56 = vmax.bf16 %v952_v34, %v908_v27 }
 0x222   : >> { %1292 = vperm.xlu1 %2621, %v3060_v54   ;;  %v935_v48 = vpop.permute.xlu1 %934  ;;  %v1094_v50 = vpop.permute.xlu0 %1093 }
 0x223   : >> { %v954_v40 = vmul.bf16 %v3286_v32, %v935_v48  ;;  %v1012_v39 = vmax.bf16 %v1004_v59, %v960_v56  ;;  %v3882_v56 = vmov 15  }
 0x225   : >> { %v962_v58 = vmax.bf16 %v954_v40, %v910_v14 }
 0x226   : >> { %1300 = vperm.xlu1 %2621, %v3876_v10   ;;  %v943_v44 = vpop.permute.xlu1 %942 }
 0x227   : >> { %v956_v61 = vmul.bf16 %v3286_v32, %v943_v44  ;;  %v1014_v36 = vmax.bf16 %v1006_v23, %v962_v58  ;;  %v3880_v32 = vmov 14  }
 0x229   : >> { %v964_v33 = vmax.bf16 %v956_v61, %v3415_v15 }
 0x22a   : >> { %1308 = vperm.xlu1 %2621, %v3878_v46  }
 0x22b   : >> { %v971_v31 = vpop.permute.xlu1 %970  ;;  %v1016_v63 = vmax.bf16 %v1008_v43, %v964_v33  ;;  %v3883_v33 = vld [vmem:[#allocation12_spill] sm:$0xff] }
 0x22c   : >> { %v1002_v17 = vmul.bf16 %v3431_v0, %v971_v31 }
 0x22e   : >> { %v1010_v11 = vmax.bf16 %v1002_v17, %v3879_v55  ;;  %2622 = vset.pattern.permute.xlu1 %v3880_v32 }
 0x22f   : >> { %1336 = vperm.xlu1 %2622, %v3053_v47   ;;  %v975_v30 = vpop.permute.xlu1 %974 }
 0x230   : >> { %v1003_v15 = vmul.bf16 %v3431_v0, %v975_v30  ;;  %v1065_v20 = vmax.bf16 %v1057_v49, %v1010_v11 }
 0x232   : >> { %v1011_v3 = vmax.bf16 %v1003_v15, %v959_v26  ;;  %v1110_v26 = vrot.slane %v3487_v62, %v3877_v13  ;;  %v1162_v13 = vrot.slane %v3470_v16, %v3883_v33 }
 0x233   : >> { %1344 = vperm.xlu1 %2622, %v3060_v54   ;;  %v983_v2 = vpop.permute.xlu1 %982 }
 0x234   : >> { %v1005_v4 = vmul.bf16 %v3431_v0, %v983_v2  ;;  %v1111_v27 = vmul.bf16 %v1110_v26, %v1074_v6  ;;  %v1114_v48 = vmul.bf16 %v1110_v26, %v1086_v57 }
 0x236   : >> { %v1013_v5 = vmax.bf16 %v1005_v4, %v3881_v38 }
 0x237   : >> { %1348 = vperm.xlu1 %2622, %v3069_v60   ;;  %v991_v47 = vpop.permute.xlu1 %990  ;;  %v1102_v60 = vpop.permute.xlu0 %1101 }
 0x238   : >> { %v1007_v29 = vmul.bf16 %v3431_v0, %v991_v47  ;;  %v1068_v22 = vmax.bf16 %v1060_v7, %v1013_v5  ;;  %v1118_v43 = vmul.bf16 %v1110_v26, %v1102_v60 }
 0x23a   : >> { %v1015_v1 = vmax.bf16 %v1007_v29, %v3440_v28 }
 0x23b   : >> { %1356 = vperm.xlu1 %2622, %v3101_v9   ;;  %v1133_v9 = vpop.permute.xlu0 %1132 }
 0x23c   : >> { %v1019_v12 = vpop.permute.xlu1 %1018  ;;  %v1070_v53 = vmax.bf16 %v1062_v25, %v1015_v1  ;;  %v1164_v49 = vmul.bf16 %v1162_v13, %v1133_v9 }
 0x23d   : >> { %v1056_v35 = vmul.bf16 %v1055_v52, %v1019_v12 }
 0x23f   : >> { %v1064_v34 = vmax.bf16 %v1056_v35, %v3454_v18  ;;  %1364 = vperm.xlu1 %2622, %v3097_v8   ;;  %v1116_v8 = vmul.bf16 %v1110_v26, %v1094_v50  ;;  %v1145_v58 = vpop.permute.xlu0 %1144 }
 0x240   : >> { %v1027_v0 = vpop.permute.xlu1 %1026 }
 0x241   : >> { %v1058_v19 = vmul.bf16 %v1055_v52, %v1027_v0  ;;  %v1119_v21 = vmax.bf16 %v1111_v27, %v1064_v34  ;;  %v3518_v0 = vrot.slane %v3487_v62, %v3883_v33 }
 0x243   : >> { %v1066_v59 = vmax.bf16 %v1058_v19, %v1011_v3  ;;  %2625 = vset.pattern.permute.xlu1 %v3882_v56  ;;  %v1153_v31 = vpop.permute.xlu0 %1152 }
 0x244   : >> { %1392 = vperm.xlu1 %2625, %v3874_v42   ;;  %v1031_v28 = vpop.permute.xlu1 %1030 }
 0x245   : >> { %v1059_v24 = vmul.bf16 %v1055_v52, %v1031_v28 }
 0x247   : >> { %v1067_v45 = vmax.bf16 %v1059_v24, %v1012_v39 }
 0x248   : >> { %1396 = vperm.xlu1 %2625, %v3060_v54   ;;  %v1039_v14 = vpop.permute.xlu1 %1038 }
 0x249   : >> { %v1061_v18 = vmul.bf16 %v1055_v52, %v1039_v14  ;;  %v1122_v40 = vmax.bf16 %v1114_v48, %v1067_v45 }
 0x24b   : >> { %v1069_v23 = vmax.bf16 %v1061_v18, %v1014_v36  ;;  %v1169_v18 = vmul.bf16 %v1162_v13, %v1153_v31 }
 0x24c   : >> { %1404 = vperm.xlu1 %2625, %v3876_v10   ;;  %v1047_v44 = vpop.permute.xlu1 %1046  ;;  %v3504_v10 = vpop.permute.xlu0 %1180 }
 0x24d   : >> { %v1063_v61 = vmul.bf16 %v1055_v52, %v1047_v44  ;;  %v1124_v51 = vmax.bf16 %v1116_v8, %v1069_v23 }
 0x24f   : >> { %v1071_v42 = vmax.bf16 %v1063_v61, %v1016_v63  ;;  %v1167_v63 = vmul.bf16 %v1162_v13, %v1145_v58 }
 0x250   : >> { %1412 = vperm.xlu1 %2625, %v3878_v46   ;;  %v3506_v37 = vpop.permute.xlu0 %1192 }
 0x251   : >> { %v1078_v39 = vpop.permute.xlu1 %1077  ;;  %v1126_v54 = vmax.bf16 %v1118_v43, %v1071_v42 }
 0x252   : >> { %v1112_v17 = vmul.bf16 %v1110_v26, %v1078_v39 }
 0x254   : >> { %v1120_v6 = vmax.bf16 %v1112_v17, %v1065_v20  ;;  %v3508_v38 = vpop.permute.xlu0 %1200 }
 0x255   : >> { %v1082_v36 = vpop.permute.xlu1 %1081 }
 0x256   : >> { %v1113_v55 = vmul.bf16 %v1110_v26, %v1082_v36  ;;  %v1172_v11 = vmax.bf16 %v1164_v49, %v1120_v6 }
 0x258   : >> { %v1121_v52 = vmax.bf16 %v1113_v55, %v1066_v59  ;;  %v3510_v25 = vpop.permute.xlu0 %1208  ;;  %v3884_v55 = vld [vmem:[#allocation13_spill] sm:$0xff] }
 0x259   : >> { %v1090_v32 = vpop.permute.xlu1 %1089 }
 0x25a   : >> { %v1115_v30 = vmul.bf16 %v1110_v26, %v1090_v32 }
 0x25c   : >> { %v1123_v15 = vmax.bf16 %v1115_v30, %v1068_v22  ;;  %v3512_v27 = vpop.permute.xlu0 %1236  ;;  %v1215_v30 = vmul.bf16 %v3518_v0, %v3504_v10  ;;  %v3570_v10 = vrot.slane %v3487_v62, %v3270_v41 }
 0x25d   : >> { %v1098_v3 = vpop.permute.xlu1 %1097 }
 0x25e   : >> { %v1117_v46 = vmul.bf16 %v1110_v26, %v1098_v3  ;;  %v1175_v2 = vmax.bf16 %v1167_v63, %v1123_v15  ;;  %v3559_v15 = vrot.slane %v3487_v62, %v3884_v55 }
 0x260   : >> { %v1125_v57 = vmax.bf16 %v1117_v46, %v1070_v53  ;;  %v3520_v19 = vpop.permute.xlu0 %1248 }
 0x262   : >> { %v1129_v4 = vpop.permute.xlu1 %1128  ;;  %v1177_v58 = vmax.bf16 %v1169_v18, %v1125_v57 }
 0x263   : >> { %v1163_v7 = vmul.bf16 %v1162_v13, %v1129_v4 }
 0x264   : >> { %v3525_v24 = vpop.permute.xlu0 %1256 }
 0x265   : >> { %v1171_v20 = vmax.bf16 %v1163_v7, %v1119_v21  ;;  %v3566_v7 = vrot.slane %v3470_v16, %v3270_v41 }
 0x266   : >> { %v1137_v5 = vpop.permute.xlu1 %1136 }
 0x267   : >> { %v1165_v47 = vmul.bf16 %v1162_v13, %v1137_v5  ;;  %v1223_v3 = vmax.bf16 %v1215_v30, %v1171_v20 }
 0x269   : >> { %v1173_v29 = vmax.bf16 %v1165_v47, %v1121_v52  ;;  %v1218_v47 = vmul.bf16 %v3518_v0, %v3506_v37 }
 0x26a   : >> { %v1141_v50 = vpop.permute.xlu1 %1140 }
 0x26b   : >> { %v1166_v1 = vmul.bf16 %v1162_v13, %v1141_v50 }
 0x26d   : >> { %v1174_v12 = vmax.bf16 %v1166_v1, %v1122_v40  ;;  %v1285_v40 = vpop.permute.xlu0 %1284 }
 0x26e   : >> { %v1149_v22 = vpop.permute.xlu1 %1148  ;;  %v1319_v4 = vmul.bf16 %v3559_v15, %v1285_v40 }
 0x26f   : >> { %v1168_v35 = vmul.bf16 %v1162_v13, %v1149_v22  ;;  %v1226_v22 = vmax.bf16 %v1218_v47, %v1174_v12 }
 0x271   : >> { %v1176_v26 = vmax.bf16 %v1168_v35, %v1124_v51  ;;  %v1297_v51 = vpop.permute.xlu0 %1296 }
 0x272   : >> { %v1157_v34 = vpop.permute.xlu1 %1156  ;;  %v1322_v37 = vmul.bf16 %v3559_v15, %v1297_v51 }
 0x273   : >> { %v1170_v53 = vmul.bf16 %v1162_v13, %v1157_v34 }
 0x275   : >> { %v3514_v60 = vmax.bf16 %v1170_v53, %v1126_v54  ;;  %v1305_v33 = vpop.permute.xlu0 %1304  ;;  %v1220_v53 = vmul.bf16 %v3518_v0, %v3508_v38 }
 0x276   : >> { %v1324_v38 = vmul.bf16 %v3559_v15, %v1305_v33 }
 0x277   : >> { %v1185_v21 = vpop.permute.xlu1 %1184 }
 0x278   : >> { %v1216_v59 = vmul.bf16 %v3518_v0, %v1185_v21 }
 0x279   : >> { %v3538_v54 = vpop.permute.xlu0 %1312 }
 0x27a   : >> { %v3523_v56 = vmax.bf16 %v1216_v59, %v1172_v11  ;;  %v3548_v11 = vrot.slane %v3470_v16, %v3884_v55  ;;  %v1228_v59 = vmax.bf16 %v1220_v53, %v1176_v26  ;;  %v1326_v33 = vmul.bf16 %v3559_v15, %v3538_v54 }
 0x27b   : >> { %v1189_v28 = vpop.permute.xlu1 %1188 }
 0x27c   : >> { %v1217_v9 = vmul.bf16 %v3518_v0, %v1189_v28  ;;  %v1222_v28 = vmul.bf16 %v3518_v0, %v3510_v25 }
 0x27d   : >> { %v3540_v13 = vpop.permute.xlu0 %1340 }
 0x27e   : >> { %v3528_v48 = vmax.bf16 %v1217_v9, %v1173_v29  ;;  %v1372_v54 = vmul.bf16 %v3566_v7, %v3540_v13 }
 0x27f   : >> { %v1197_v45 = vpop.permute.xlu1 %1196 }
 0x280   : >> { %v1219_v14 = vmul.bf16 %v3518_v0, %v1197_v45 }
 0x281   : >> { %v3542_v6 = vpop.permute.xlu0 %1352 }
 0x282   : >> { %v3531_v8 = vmax.bf16 %v1219_v14, %v1175_v2 }
 0x283   : >> { %v1205_v23 = vpop.permute.xlu1 %1204 }
 0x284   : >> { %v1221_v44 = vmul.bf16 %v3518_v0, %v1205_v23 }
 0x285   : >> { %v3552_v32 = vpop.permute.xlu0 %1360 }
 0x286   : >> { %v3534_v61 = vmax.bf16 %v1221_v44, %v1177_v58  ;;  %v1230_v58 = vmax.bf16 %v1222_v28, %v3514_v60 }
 0x288   : >> { %v1233_v43 = vpop.permute.xlu1 %1232 }
 0x289   : >> { %v1267_v63 = vmul.bf16 %v3548_v11, %v1233_v43  ;;  %v1389_v57 = vpop.permute.xlu0 %1388 }
 0x28a   : >> { %v1423_v1 = vmul.bf16 %v3570_v10, %v1389_v57 }
 0x28b   : >> { %v1275_v2 = vmax.bf16 %v1267_v63, %v1223_v3 }
 0x28c   : >> { %v3536_v42 = vpop.permute.xlu1 %1240 }
 0x28d   : >> { %v1327_v29 = vmax.bf16 %v1319_v4, %v1275_v2  ;;  %v1401_v34 = vpop.permute.xlu0 %1400  ;;  %v1269_v3 = vmul.bf16 %v3548_v11, %v3536_v42 }
 0x28e   : >> { %v1426_v23 = vmul.bf16 %v3570_v10, %v1401_v34 }
 0x290   : >> { %v1245_v39 = vpop.permute.xlu1 %1244 }
 0x291   : >> { %v1270_v20 = vmul.bf16 %v3548_v11, %v1245_v39  ;;  %v1409_v40 = vpop.permute.xlu0 %1408  ;;  %v1268_v39 = vmul.bf16 %v3548_v11, %v3512_v27 }
 0x293   : >> { %v1278_v41 = vmax.bf16 %v1270_v20, %v1226_v22  ;;  %v1276_v30 = vmax.bf16 %v1268_v39, %v3523_v56  ;;  %v1271_v56 = vmul.bf16 %v3548_v11, %v3520_v19  ;;  %v1277_v20 = vmax.bf16 %v1269_v3, %v3528_v48 }
 0x294   : >> { %v1253_v17 = vpop.permute.xlu1 %1252 }
 0x295   : >> { %v1272_v62 = vmul.bf16 %v3548_v11, %v1253_v17  ;;  %v1330_v14 = vmax.bf16 %v1322_v37, %v1278_v41  ;;  %v1417_v60 = vpop.permute.xlu0 %1416  ;;  %v1279_v13 = vmax.bf16 %v1271_v56, %v3531_v8 }
 0x297   : >> { %v1280_v45 = vmax.bf16 %v1272_v62, %v1228_v59 }
 0x298   : >> { %v1261_v49 = vpop.permute.xlu1 %1260 }
 0x299   : >> { %v1274_v12 = vmul.bf16 %v3548_v11, %v1261_v49  ;;  %v1332_v25 = vmax.bf16 %v1324_v38, %v1280_v45  ;;  %v1428_v49 = vmul.bf16 %v3570_v10, %v1409_v40 }
 0x29b   : >> { %v1282_v26 = vmax.bf16 %v1274_v12, %v1230_v58 }
 0x29d   : >> { %v1289_v31 = vpop.permute.xlu1 %1288  ;;  %v1334_v57 = vmax.bf16 %v1326_v33, %v1282_v26 }
 0x29e   : >> { %v1320_v17 = vmul.bf16 %v3559_v15, %v1289_v31  ;;  %v1430_v31 = vmul.bf16 %v3570_v10, %v1417_v60 }
 0x2a0   : >> { %v1328_v27 = vmax.bf16 %v1320_v17, %v1276_v30 }
 0x2a1   : >> { %v3544_v36 = vpop.permute.xlu1 %1292 }
 0x2a2   : >> { %v1321_v47 = vmul.bf16 %v3559_v15, %v3544_v36  ;;  %v1380_v22 = vmax.bf16 %v1372_v54, %v1328_v27  ;;  %v1273_v36 = vmul.bf16 %v3548_v11, %v3525_v24  ;;  %v1377_v24 = vmul.bf16 %v3566_v7, %v3552_v32 }
 0x2a4   : >> { %v1329_v34 = vmax.bf16 %v1321_v47, %v1277_v20  ;;  %v1281_v37 = vmax.bf16 %v1273_v36, %v3534_v61 }
 0x2a5   : >> { %v3550_v52 = vpop.permute.xlu1 %1300 }
 0x2a9   : >> { %v3561_v46 = vpop.permute.xlu1 %1308 }
 0x2aa   : >> { %v1325_v48 = vmul.bf16 %v3559_v15, %v3561_v46 }
 0x2ac   : >> { %v1333_v8 = vmax.bf16 %v1325_v48, %v1281_v37 }
 0x2ae   : >> { %v1337_v5 = vpop.permute.xlu1 %1336 }
 0x2af   : >> { %v1371_v50 = vmul.bf16 %v3566_v7, %v1337_v5 }
 0x2b1   : >> { %v1379_v35 = vmax.bf16 %v1371_v50, %v1327_v29  ;;  %v1323_v50 = vmul.bf16 %v3559_v15, %v3550_v52  ;;  %v1385_v15 = vmax.bf16 %v1377_v24, %v1333_v8 }
 0x2b2   : >> { %v1345_v16 = vpop.permute.xlu1 %1344 }
 0x2b3   : >> { %v3580_v21 = vmax.bf16 %v1423_v1, %v1379_v35   ;;  %v1373_v1 = vmul.bf16 %v3566_v7, %v1345_v16  ;;  %v1331_v41 = vmax.bf16 %v1323_v50, %v1279_v13  ;;  %v1375_v16 = vmul.bf16 %v3566_v7, %v3542_v6 }
 0x2b5   : >> { %v1381_v62 = vmax.bf16 %v1373_v1, %v1329_v34  ;;  %v3892_v33 = vmov %v3580_v21  ;;  %1439 = vst [vmem:[#allocation2] sm:$0xff] (%p522_p2), %v3580_v21 }
 0x2b6   : >> { %v1349_v9 = vpop.permute.xlu1 %1348 }
 0x2b7   : >> { %v1374_v18 = vmul.bf16 %v3566_v7, %v1349_v9  ;;  %v1383_v9 = vmax.bf16 %v1375_v16, %v1331_v41 }
 0x2b9   : >> { %v1382_v44 = vmax.bf16 %v1374_v18, %v1330_v14 }
 0x2ba   : >> { %v1357_v51 = vpop.permute.xlu1 %1356 }
 0x2bb   : >> { %v3590_v43 = vmax.bf16 %v1426_v23, %v1382_v44   ;;  %v1376_v0 = vmul.bf16 %v3566_v7, %v1357_v51 }
 0x2bd   : >> { %v1384_v55 = vmax.bf16 %v1376_v0, %v1332_v25  ;;  %v3889_v36 = vmov %v3590_v43  ;;  %1442 = vst [vmem:[#allocation2 + $0x18] sm:$0xff] (%p522_p2), %v3590_v43 }
 0x2be   : >> { %v1365_v63 = vpop.permute.xlu1 %1364 }
 0x2bf   : >> { %v1436_v2 = vmax.bf16 %v1428_v49, %v1384_v55   ;;  %v1378_v4 = vmul.bf16 %v3566_v7, %v1365_v63 }
 0x2c1   : >> { %v1386_v5 = vmax.bf16 %v1378_v4, %v1334_v57  ;;  %v3887_v38 = vmov %v1436_v2  ;;  %1444 = vst [vmem:[#allocation2 + $0x28] sm:$0xff] (%p522_p2), %v1436_v2 }
 0x2c3   : >> { %v1438_v42 = vmax.bf16 %v1430_v31, %v1386_v5   ;;  %v1393_v29 = vpop.permute.xlu1 %1392 }
 0x2c4   : >> { %v1424_v35 = vmul.bf16 %v3570_v10, %v1393_v29 }
 0x2c5   : >> { %v3885_v40 = vmov %v1438_v42  ;;  %1446 = vst [vmem:[#allocation2 + $0x38] sm:$0xff] (%p522_p2), %v1438_v42 }
 0x2c6   : >> { %v1432_v53 = vmax.bf16 %v1424_v35, %v1380_v22  }
 0x2c7   : >> { %v1397_v19 = vpop.permute.xlu1 %1396 }
 0x2c8   : >> { %v1425_v52 = vmul.bf16 %v3570_v10, %v1397_v19  ;;  %v3891_v34 = vmov %v1432_v53  ;;  %1440 = vst [vmem:[#allocation2 + $0x8] sm:$0xff] (%p522_p2), %v1432_v53 }
 0x2ca   : >> { %v1433_v59 = vmax.bf16 %v1425_v52, %v1381_v62  }
 0x2cb   : >> { %v1405_v28 = vpop.permute.xlu1 %1404 }
 0x2cc   : >> { %v1427_v45 = vmul.bf16 %v3570_v10, %v1405_v28  ;;  %v3890_v35 = vmov %v1433_v59  ;;  %1441 = vst [vmem:[#allocation2 + $0x10] sm:$0xff] (%p522_p2), %v1433_v59 }
 0x2ce   : >> { %v1435_v11 = vmax.bf16 %v1427_v45, %v1383_v9   ;;  %524 = sbr.rel (!%p522_p2) target bundleno = 75 (0x4b), region = 147 }
 0x2cf   : >> { %v1413_v12 = vpop.permute.xlu1 %1412 }
 0x2d0   : >> { %v1429_v46 = vmul.bf16 %v3570_v10, %v1413_v12  ;;  %v3888_v37 = vmov %v1435_v11  ;;  %1443 = vst [vmem:[#allocation2 + $0x20] sm:$0xff] (%p522_p2), %v1435_v11 }
 0x2d2   : >> { %v1437_v14 = vmax.bf16 %v1429_v46, %v1385_v15  }
 0x2d4   : >> { %v3886_v39 = vmov %v1437_v14  ;;  %1445 = vst [vmem:[#allocation2 + $0x30] sm:$0xff] (%p522_p2), %v1437_v14 }
 0x2d5 PF: > { %v2626_v61 = vld [vmem:[%s3836_s5] sm:$0xff]   ;;  %v2628_v32 = vld [vmem:[%s3836_s5 + $0x8] sm:$0xff]   ;;  %v2630_v10 = vld [vmem:[%s3836_s5 + $0x10] sm:$0xff]  }
 0x2d6   : > { %v2627_v6 = vld [vmem:[%s3835_s4] sm:$0xff]   ;;  %2352 = vmatprep.subr.bf16.mxu1 %v2626_v61  ;;  %v2629_v7 = vld [vmem:[%s3835_s4 + $0x8] sm:$0xff]   ;;  %v2631_v21 = vld [vmem:[%s3835_s4 + $0x10] sm:$0xff]  }
 0x2d7   : > { %2384 = vmatprep.subr.bf16.mxu0 %v2627_v6  ;;  %2353 = vmatpush3.bf16.msra.mxu1 %v2626_v61  ;;  %v2632_v18 = vld [vmem:[%s3836_s5 + $0x18] sm:$0xff]   ;;  %v2634_v38 = vld [vmem:[%s3836_s5 + $0x20] sm:$0xff]   ;;  %v2636_v58 = vld [vmem:[%s3836_s5 + $0x28] sm:$0xff]  }
 0x2d8   : > { %2385 = vmatpush3.bf16.msra.mxu0 %v2627_v6  ;;  %2354 = vmatprep.subr.bf16.mxu1 %v2628_v32  ;;  %v2633_v40 = vld [vmem:[%s3835_s4 + $0x18] sm:$0xff]   ;;  %v2635_v23 = vld [vmem:[%s3835_s4 + $0x20] sm:$0xff]   ;;  %v2637_v51 = vld [vmem:[%s3835_s4 + $0x28] sm:$0xff]  }
 0x2d9   : > { %2386 = vmatprep.subr.bf16.mxu0 %v2629_v7  ;;  %v1482_v44 = vld [vmem:[#allocation2] sm:$0xff]  ;;  %v2638_v43 = vld [vmem:[%s3836_s5 + $0x30] sm:$0xff]   ;;  %v2640_v0 = vld [vmem:[%s3836_s5 + $0x38] sm:$0xff]  }
 0x2da   : > { %2368 = vmatprep.mubr.bf16.mxu1 %v1482_v44  ;;  %v2642_v26 = vld [vmem:[%s2990_s29] sm:$0xff]   ;;  %v2639_v25 = vld [vmem:[%s3835_s4 + $0x30] sm:$0xff]   ;;  %v2641_v39 = vld [vmem:[%s3835_s4 + $0x38] sm:$0xff]  }
 0x2db   : > { %2355 = vmatpush3.bf16.msra.mxu1 %v2628_v32  ;;  %2400 = vmatprep.mubr.bf16.mxu0 %v2642_v26  ;;  %v1483_v17 = vld [vmem:[#allocation2 + $0x8] sm:$0xff]  ;;  %v1484_v49 = vld [vmem:[#allocation2 + $0x10] sm:$0xff]  ;;  %v1485_v60 = vld [vmem:[#allocation2 + $0x18] sm:$0xff] }
 0x2dc   : > { %2387 = vmatpush3.bf16.msra.mxu0 %v2629_v7  ;;  %2356 = vmatprep.subr.bf16.mxu1 %v2630_v10  ;;  %v2643_v33 = vld [vmem:[%s2990_s29 + $0x8] sm:$0xff]   ;;  %v2644_v55 = vld [vmem:[%s2990_s29 + $0x10] sm:$0xff]   ;;  %v2645_v30 = vld [vmem:[%s2990_s29 + $0x18] sm:$0xff]  }
 0x2dd   : > { %2388 = vmatprep.subr.bf16.mxu0 %v2631_v21  ;;  %v1486_v63 = vld [vmem:[#allocation2 + $0x20] sm:$0xff]  ;;  %v1487_v2 = vld [vmem:[#allocation2 + $0x28] sm:$0xff]  ;;  %v1488_v4 = vld [vmem:[#allocation2 + $0x30] sm:$0xff] }
 0x2de   : > { %v2646_v3 = vld [vmem:[%s2990_s29 + $0x20] sm:$0xff]   ;;  %v2647_v57 = vld [vmem:[%s2990_s29 + $0x28] sm:$0xff]   ;;  %v2648_v27 = vld [vmem:[%s2990_s29 + $0x30] sm:$0xff]  }
 0x2df   : > { %2357 = vmatpush3.bf16.msra.mxu1 %v2630_v10  ;;  %v1489_v31 = vld [vmem:[#allocation2 + $0x38] sm:$0xff]  ;;  %v3710_v20 = vld [vmem:[%s3837_s6] ss:$0 sm:$0xff] }
 0x2e0   : > { %2389 = vmatpush3.bf16.msra.mxu0 %v2631_v21  ;;  %2358 = vmatprep.subr.bf16.mxu1 %v2632_v18  ;;  %v2649_v5 = vld [vmem:[%s2990_s29 + $0x38] sm:$0xff]  }
 0x2e1   : > { %2390 = vmatprep.subr.bf16.mxu0 %v2633_v40 }
 0x2e3   : > { %2359 = vmatpush3.bf16.msra.mxu1 %v2632_v18 }
 0x2e4   : > { %2391 = vmatpush3.bf16.msra.mxu0 %v2633_v40  ;;  %2360 = vmatprep.subr.bf16.mxu1 %v2634_v38 }
 0x2e5   : > { %2392 = vmatprep.subr.bf16.mxu0 %v2635_v23 }
 0x2e7   : > { %2361 = vmatpush3.bf16.msra.mxu1 %v2634_v38 }
 0x2e8   : > { %2393 = vmatpush3.bf16.msra.mxu0 %v2635_v23  ;;  %2362 = vmatprep.subr.bf16.mxu1 %v2636_v58 }
 0x2e9   : > { %2394 = vmatprep.subr.bf16.mxu0 %v2637_v51 }
 0x2eb   : > { %2363 = vmatpush3.bf16.msra.mxu1 %v2636_v58 }
 0x2ec   : > { %2395 = vmatpush3.bf16.msra.mxu0 %v2637_v51  ;;  %2364 = vmatprep.subr.bf16.mxu1 %v2638_v43 }
 0x2ed   : > { %2396 = vmatprep.subr.bf16.mxu0 %v2639_v25 }
 0x2ef   : > { %2365 = vmatpush3.bf16.msra.mxu1 %v2638_v43 }
 0x2f0   : > { %2397 = vmatpush3.bf16.msra.mxu0 %v2639_v25  ;;  %2366 = vmatprep.subr.bf16.mxu1 %v2640_v0 }
 0x2f1   : > { %2398 = vmatprep.subr.bf16.mxu0 %v2641_v39 }
 0x2f3   : > { %2367 = vmatpush3.bf16.msra.mxu1 %v2640_v0 }
 0x2f4   : > { %2399 = vmatpush3.bf16.msra.mxu0 %v2641_v39 }
 0x2f6   : > { %2369 = vmatmul.mubr.bf16.vlgmr.msra.gmra.mrb[0].mxu1 %v1483_v17 }
 0x2f7   : > { %2401 = vmatmul.mubr.bf16.vlgmr.msra.gmra.mrb[0].mxu0 %v2643_v33  ;;  %2372 = vmatprep.mubr.bf16.mxu1 %v1484_v49 }
 0x2f8   : > { %2404 = vmatprep.mubr.bf16.mxu0 %v2644_v55 }
 0x2fe   : > { %2373 = vmatmul.mubr.bf16.gmra.mrb[4].mxu1 %v1485_v60 }
 0x2ff   : > { %2405 = vmatmul.mubr.bf16.gmra.mrb[4].mxu0 %v2645_v30  ;;  %2376 = vmatprep.mubr.bf16.mxu1 %v1486_v63 }
 0x300   : > { %2408 = vmatprep.mubr.bf16.mxu0 %v2646_v3 }
 0x306   : > { %2377 = vmatmul.mubr.bf16.gmra.mrb[8].mxu1 %v1487_v2 }
 0x307   : > { %2409 = vmatmul.mubr.bf16.gmra.mrb[8].mxu0 %v2647_v57  ;;  %2380 = vmatprep.mubr.bf16.mxu1 %v1488_v4 }
 0x308   : > { %2412 = vmatprep.mubr.bf16.mxu0 %v2648_v27 }
 0x30e   : > { %2381 = vmatmul.mubr.bf16.gmra.mrb[12].mxu1 %v1489_v31 }
 0x30f   : > { %2413 = vmatmul.mubr.bf16.gmra.mrb[12].mxu0 %v2649_v5 }
 0x3c9   : > { %v2370_v54 = vpop.f32.mrb[0].mxu1 }
 0x3ca   : > { %v2402_v47 = vpop.f32.mrb[0].mxu0  ;;  %v1588_v56 = vpop.f32.mrb[1].mxu1 }
 0x3cb   : > { %v1790_v42 = vadd.f32 %v2402_v47, %v2370_v54  ;;  %v1781_v29 = vpop.f32.mrb[1].mxu0  ;;  %v2371_v50 = vpop.f32.mrb[2].mxu1 }
 0x3cc   : > { %v1782_v1 = vadd.f32 %v1781_v29, %v1588_v56  ;;  %v2403_v22 = vpop.f32.mrb[2].mxu0  ;;  %v1591_v35 = vpop.f32.mrb[3].mxu1 }
 0x3cd   : > { %v1793_v34 = vadd.f32 %v2403_v22, %v2371_v50  ;;  %v1784_v13 = vpop.f32.mrb[3].mxu0  ;;  %v3713_v53 = vadd.f32 %v3710_v20, %v1790_v42 }
 0x3ce   : > { %v1785_v36 = vadd.f32 %v1784_v13, %v1591_v35  ;;  %v3716_v19 = vadd.f32 %v3710_v20, %v1782_v1 }
 0x3cf   : > { %v3719_v41 = vadd.f32 %v3710_v20, %v1793_v34  ;;  %v1869_v48 = vmul.f32 %v3713_v53, %v3713_v53 }
 0x3d0   : > { %v3724_v62 = vadd.f32 %v3710_v20, %v1785_v36  ;;  %v1867_v52 = vmul.f32 %v3716_v19, %v3716_v19 }
 0x3d1   : > { %1887 = vadd.xlane.f32.xlu1 %v1869_v48  ;;  %v2374_v16 = vpop.f32.mrb[4].mxu1  ;;  %v1870_v45 = vmul.f32 %v3719_v41, %v3719_v41 }
 0x3d2   : > { %v2406_v37 = vpop.f32.mrb[4].mxu0  ;;  %1883 = vadd.xlane.f32.xlu0 %v1867_v52  ;;  %v1604_v59 = vpop.f32.mrb[5].mxu1  ;;  %v1868_v15 = vmul.f32 %v3724_v62, %v3724_v62 }
 0x3d3   : > { %v1806_v28 = vadd.f32 %v2406_v37, %v2374_v16  ;;  %v1797_v8 = vpop.f32.mrb[5].mxu0  ;;  %v2375_v9 = vpop.f32.mrb[6].mxu1 }
 0x3d4   : > { %v1798_v24 = vadd.f32 %v1797_v8, %v1604_v59  ;;  %v2407_v11 = vpop.f32.mrb[6].mxu0  ;;  %v1607_v12 = vpop.f32.mrb[7].mxu1 }
 0x3d5   : > { %v3733_v46 = vadd.f32 %v3710_v20, %v1806_v28  ;;  %v1809_v14 = vadd.f32 %v2407_v11, %v2375_v9  ;;  %1889 = vadd.xlane.f32.xlu1 %v1870_v45  ;;  %v1800_v61 = vpop.f32.mrb[7].mxu0 }
 0x3d6   : > { %v1801_v6 = vadd.f32 %v1800_v61, %v1607_v12  ;;  %1885 = vadd.xlane.f32.xlu0 %v1868_v15  ;;  %v3741_v10 = vadd.f32 %v3710_v20, %v1798_v24 }
 0x3d7   : > { %v3736_v32 = vadd.f32 %v3710_v20, %v1809_v14  ;;  %v1873_v7 = vmul.f32 %v3733_v46, %v3733_v46 }
 0x3d8   : > { %v3744_v21 = vadd.f32 %v3710_v20, %v1801_v6  ;;  %v1871_v0 = vmul.f32 %v3741_v10, %v3741_v10 }
 0x3d9   : > { %v2378_v18 = vpop.f32.mrb[8].mxu1  ;;  %v1874_v40 = vmul.f32 %v3736_v32, %v3736_v32 }
 0x3da   : > { %v2410_v38 = vpop.f32.mrb[8].mxu0  ;;  %1895 = vadd.xlane.f32.xlu0 %v1873_v7  ;;  %v1620_v23 = vpop.f32.mrb[9].mxu1  ;;  %v1872_v49 = vmul.f32 %v3744_v21, %v3744_v21 }
 0x3db   : > { %v1822_v58 = vadd.f32 %v2410_v38, %v2378_v18  ;;  %1897 = vadd.xlane.f32.xlu1 %v1874_v40  ;;  %v1813_v44 = vpop.f32.mrb[9].mxu0  ;;  %v2379_v51 = vpop.f32.mrb[10].mxu1 }
 0x3dc   : > { %v1814_v26 = vadd.f32 %v1813_v44, %v1620_v23  ;;  %v2411_v43 = vpop.f32.mrb[10].mxu0  ;;  %v1623_v25 = vpop.f32.mrb[11].mxu1 }
 0x3dd   : > { %v3751_v39 = vadd.f32 %v3710_v20, %v1822_v58  ;;  %v1825_v17 = vadd.f32 %v2411_v43, %v2379_v51  ;;  %v1816_v33 = vpop.f32.mrb[11].mxu0 }
 0x3de   : > { %v1817_v55 = vadd.f32 %v1816_v33, %v1623_v25  ;;  %1891 = vadd.xlane.f32.xlu0 %v1871_v0  ;;  %v3761_v63 = vadd.f32 %v3710_v20, %v1814_v26 }
 0x3df   : > { %v3756_v60 = vadd.f32 %v3710_v20, %v1825_v17  ;;  %1893 = vadd.xlane.f32.xlu1 %v1872_v49  ;;  %v1877_v30 = vmul.f32 %v3751_v39, %v3751_v39 }
 0x3e0   : > { %v3764_v3 = vadd.f32 %v3710_v20, %v1817_v55  ;;  %v1875_v29 = vmul.f32 %v3761_v63, %v3761_v63 }
 0x3e1   : > { %v2382_v2 = vpop.f32.mrb[12].mxu1  ;;  %v1878_v57 = vmul.f32 %v3756_v60, %v3756_v60 }
 0x3e2   : > { %v2414_v4 = vpop.f32.mrb[12].mxu0  ;;  %1903 = vadd.xlane.f32.xlu0 %v1877_v30  ;;  %v1636_v27 = vpop.f32.mrb[13].mxu1  ;;  %v1876_v22 = vmul.f32 %v3764_v3, %v3764_v3 }
 0x3e3   : > { %v1838_v31 = vadd.f32 %v2414_v4, %v2382_v2  ;;  %v1829_v5 = vpop.f32.mrb[13].mxu0  ;;  %1905 = vadd.xlane.f32.xlu1 %v1878_v57  ;;  %v2383_v54 = vpop.f32.mrb[14].mxu1 }
 0x3e4   : > { %v1830_v47 = vadd.f32 %v1829_v5, %v1636_v27  ;;  %v2415_v56 = vpop.f32.mrb[14].mxu0  ;;  %v1639_v42 = vpop.f32.mrb[15].mxu1 }
 0x3e5   : > { %v1841_v50 = vadd.f32 %v2415_v56, %v2383_v54  ;;  %v1832_v1 = vpop.f32.mrb[15].mxu0  ;;  %v3776_v13 = vadd.f32 %v3710_v20, %v1838_v31 }
 0x3e6   : > { %v3773_v35 = vadd.f32 %v3710_v20, %v1830_v47  ;;  %v1833_v34 = vadd.f32 %v1832_v1, %v1639_v42  ;;  %1899 = vadd.xlane.f32.xlu0 %v1875_v29 }
 0x3e7   : > { %1901 = vadd.xlane.f32.xlu1 %v1876_v22  ;;  %v3784_v52 = vadd.f32 %v3710_v20, %v1841_v50  ;;  %v1881_v37 = vmul.f32 %v3776_v13, %v3776_v13 }
 0x3e8   : > { %v3779_v36 = vadd.f32 %v3710_v20, %v1833_v34  ;;  %v1879_v48 = vmul.f32 %v3773_v35, %v3773_v35 }
 0x3e9   : > { %v1882_v59 = vmul.f32 %v3784_v52, %v3784_v52 }
 0x3ea   : > { %1907 = vadd.xlane.f32.xlu0 %v1879_v48  ;;  %v1880_v16 = vmul.f32 %v3779_v36, %v3779_v36 }
 0x3ec   : > { %1909 = vadd.xlane.f32.xlu1 %v1880_v16 }
 0x3ee   : > { %1911 = vadd.xlane.f32.xlu0 %v1881_v37 }
 0x3f0   : > { %1913 = vadd.xlane.f32.xlu1 %v1882_v59 }
 0x45e   : > { %v1888_v28 = vpop.xlane.xlu1 %1887 }
 0x45f   : > { %v1917_v8 = vmax.f32 %v1888_v28, 1e-24  ;;  %v1884_v9 = vpop.xlane.xlu0 %1883 }
 0x460   : > { %v1915_v45 = vmax.f32 %v1884_v9, 1e-24 }
 0x461   : > { %2650 = vrsqrt.f32 %v1917_v8 }
 0x462   : > { %2652 = vrsqrt.f32 %v1915_v45  ;;  %v1890_v20 = vpop.xlane.xlu1 %1889 }
 0x463   : > { %v1918_v24 = vmax.f32 %v1890_v20, 1e-24  ;;  %v1886_v11 = vpop.xlane.xlu0 %1885 }
 0x464   : > { %v1916_v12 = vmax.f32 %v1886_v11, 1e-24 }
 0x465   : > { %2654 = vrsqrt.f32 %v1918_v24 }
 0x466   : > { %2656 = vrsqrt.f32 %v1916_v12 }
 0x467   : > { %v1896_v15 = vpop.xlane.xlu0 %1895 }
 0x468   : > { %v1921_v14 = vmax.f32 %v1896_v15, 1e-24  ;;  %v1898_v61 = vpop.xlane.xlu1 %1897 }
 0x469   : > { %v1922_v6 = vmax.f32 %v1898_v61, 1e-24 }
 0x46a   : > { %2658 = vrsqrt.f32 %v1921_v14 }
 0x46b   : > { %v2651_v7 = vpop.eup %2650  ;;  %2660 = vrsqrt.f32 %v1922_v6  ;;  %v1892_v18 = vpop.xlane.xlu0 %1891 }
 0x46c   : > { %v2653_v40 = vpop.eup %2652  ;;  %v1919_v38 = vmax.f32 %v1892_v18, 1e-24  ;;  %v1894_v23 = vpop.xlane.xlu1 %1893  ;;  %v1949_v44 = vmul.f32 %v2651_v7, %v3713_v53 }
 0x46d   : > { %v1920_v58 = vmax.f32 %v1894_v23, 1e-24  ;;  %v1947_v26 = vmul.f32 %v2653_v40, %v3716_v19 }
 0x46e   : > { %2662 = vrsqrt.f32 %v1919_v38  ;;  %v1965_v30 = vmax.f32 %v1949_v44, 0.0 }
 0x46f   : > { %v2655_v51 = vpop.eup %2654  ;;  %2664 = vrsqrt.f32 %v1920_v58  ;;  %v1904_v43 = vpop.xlane.xlu0 %1903  ;;  %v1963_v53 = vmax.f32 %v1947_v26, 0.0 }
 0x470   : > { %v2657_v25 = vpop.eup %2656  ;;  %v1950_v0 = vmul.f32 %v2655_v51, %v3719_v41  ;;  %v1925_v17 = vmax.f32 %v1904_v43, 1e-24  ;;  %v1906_v33 = vpop.xlane.xlu1 %1905 }
 0x471   : > { %v1948_v49 = vmul.f32 %v2657_v25, %v3724_v62  ;;  %v1926_v55 = vmax.f32 %v1906_v33, 1e-24 }
 0x472   : > { %v1966_v2 = vmax.f32 %v1950_v0, 0.0  ;;  %2666 = vrsqrt.f32 %v1925_v17 }
 0x473   : > { %v1964_v57 = vmax.f32 %v1948_v49, 0.0  ;;  %2668 = vrsqrt.f32 %v1926_v55  ;;  %v1900_v4 = vpop.xlane.xlu0 %1899 }
 0x474   : > { %v2659_v19 = vpop.eup %2658  ;;  %v2281_v27 = vpack.c.bf16 %v1966_v2, %v1965_v30  ;;  %v1923_v31 = vmax.f32 %v1900_v4, 1e-24  ;;  %v1902_v5 = vpop.xlane.xlu1 %1901 }
 0x475   : > { %v2661_v54 = vpop.eup %2660  ;;  %v2276_v41 = vpack.c.bf16 %v1964_v57, %v1963_v53  ;;  %v1953_v47 = vmul.f32 %v2659_v19, %v3733_v46  ;;  %v1924_v56 = vmax.f32 %v1902_v5, 1e-24 }
 0x476   : > { %2313 = vst [vmem:[%s2995_s14 + $0x8] sm:$0xff] %v2281_v27   ;;  %v1954_v62 = vmul.f32 %v2661_v54, %v3736_v32  ;;  %2670 = vrsqrt.f32 %v1923_v31 }
 0x477   : > { %2277 = vst [vmem:[%s2995_s14] sm:$0xff] %v2276_v41   ;;  %v1969_v42 = vmax.f32 %v1953_v47, 0.0  ;;  %2672 = vrsqrt.f32 %v1924_v56  ;;  %v1908_v29 = vpop.xlane.xlu0 %1907 }
 0x478   : > { %v2663_v50 = vpop.eup %2662  ;;  %v1970_v1 = vmax.f32 %v1954_v62, 0.0  ;;  %v1927_v22 = vmax.f32 %v1908_v29, 1e-24 }
 0x479   : > { %v2665_v34 = vpop.eup %2664  ;;  %v1951_v48 = vmul.f32 %v2663_v50, %v3741_v10  ;;  %v1910_v16 = vpop.xlane.xlu1 %1909 }
 0x47a   : > { %v2291_v37 = vpack.c.bf16 %v1970_v1, %v1969_v42  ;;  %v1952_v46 = vmul.f32 %v2665_v34, %v3744_v21  ;;  %2674 = vrsqrt.f32 %v1927_v22  ;;  %v1928_v59 = vmax.f32 %v1910_v16, 1e-24 }
 0x47b   : > { %v1967_v28 = vmax.f32 %v1951_v48, 0.0  ;;  %v1912_v32 = vpop.xlane.xlu0 %1911 }
 0x47c   : > { %v2667_v8 = vpop.eup %2666  ;;  %2315 = vst [vmem:[%s2995_s14 + $0x18] sm:$0xff] %v2291_v37   ;;  %v1968_v9 = vmax.f32 %v1952_v46, 0.0  ;;  %2676 = vrsqrt.f32 %v1928_v59  ;;  %v1929_v45 = vmax.f32 %v1912_v32, 1e-24 }
 0x47d   : > { %v2669_v20 = vpop.eup %2668  ;;  %v1957_v24 = vmul.f32 %v2667_v8, %v3751_v39  ;;  %v1914_v11 = vpop.xlane.xlu1 %1913 }
 0x47e   : > { %v2286_v10 = vpack.c.bf16 %v1968_v9, %v1967_v28  ;;  %v1958_v12 = vmul.f32 %v2669_v20, %v3756_v60  ;;  %2678 = vrsqrt.f32 %v1929_v45  ;;  %v1930_v21 = vmax.f32 %v1914_v11, 1e-24 }
 0x47f   : > { %v1973_v15 = vmax.f32 %v1957_v24, 0.0 }
 0x480   : > { %v2671_v14 = vpop.eup %2670  ;;  %2314 = vst [vmem:[%s2995_s14 + $0x10] sm:$0xff] %v2286_v10   ;;  %v1974_v61 = vmax.f32 %v1958_v12, 0.0  ;;  %2680 = vrsqrt.f32 %v1930_v21 }
 0x481   : > { %v2673_v6 = vpop.eup %2672  ;;  %v1955_v7 = vmul.f32 %v2671_v14, %v3761_v63 }
 0x482   : > { %v2301_v18 = vpack.c.bf16 %v1974_v61, %v1973_v15  ;;  %v1956_v40 = vmul.f32 %v2673_v6, %v3764_v3 }
 0x483   : > { %v1971_v39 = vmax.f32 %v1955_v7, 0.0 }
 0x484   : > { %v2675_v38 = vpop.eup %2674  ;;  %2317 = vst [vmem:[%s2995_s14 + $0x28] sm:$0xff] %v2301_v18   ;;  %v1972_v23 = vmax.f32 %v1956_v40, 0.0 }
 0x485   : > { %v1959_v60 = vmul.f32 %v2675_v38, %v3773_v35 }
 0x486   : > { %v2677_v58 = vpop.eup %2676  ;;  %v2296_v44 = vpack.c.bf16 %v1972_v23, %v1971_v39 }
 0x487   : > { %v1960_v51 = vmul.f32 %v2677_v58, %v3779_v36  ;;  %v1975_v43 = vmax.f32 %v1959_v60, 0.0 }
 0x488   : > { %v2679_v26 = vpop.eup %2678  ;;  %2316 = vst [vmem:[%s2995_s14 + $0x20] sm:$0xff] %v2296_v44  }
 0x489   : > { %v1976_v25 = vmax.f32 %v1960_v51, 0.0  ;;  %v1961_v63 = vmul.f32 %v2679_v26, %v3776_v13 }
 0x48a   : > { %v2681_v0 = vpop.eup %2680 }
 0x48b   : > { %v2306_v3 = vpack.c.bf16 %v1976_v25, %v1975_v43  ;;  %v1962_v17 = vmul.f32 %v2681_v0, %v3784_v52  ;;  %v1977_v33 = vmax.f32 %v1961_v63, 0.0 }
 0x48d   : > { %2318 = vst [vmem:[%s2995_s14 + $0x30] sm:$0xff] %v2306_v3   ;;  %v1978_v49 = vmax.f32 %v1962_v17, 0.0 }
 0x48f   : > { %v2311_v55 = vpack.c.bf16 %v1978_v49, %v1977_v33 }
 0x491   : > { %2319 = vst [vmem:[%s2995_s14 + $0x38] sm:$0xff] %v2311_v55  }
 0x492 PF: > { %s23_s9 = sadd.s32 1, %s2770_s9   ;;  %s3893_s29 = smov %s2758_s30 }
 0x493   : > { %p20_p3 = scmp.ge.s32.totalorder %s23_s9, 4   ;;  %s3894_s30 = smov %s2904_s13 }
 0x494   : > { %s3895_s8 = smov %s2766_s0  ;;  %s3896_s0 = smov %s3898_s10 }
 0x495   :  { %22 = sbr.rel (!%p20_p3) target bundleno = 18 (0x12), region = 158 }

</bundles_post_ra>
